<compile_context>
chip_gen: v7x
topology: tpu7x:2x2x1
jax: 0.10.0
libtpu: 0.0.40
codegen_flags: <defaults>
</compile_context>

<pallas_src>
import functools

import jax
import jax.numpy as jnp
from jax.experimental import pallas as pl
from jax.experimental.pallas import tpu as pltpu

_DEFAULT_TILE = 1024                    # pixel tile (lane axis), multiple of 128
_VMEM_LIMIT_BYTES = 48 * 1024 * 1024    # <= physical VMEM on v5e/v6e/v7x


def _pick_tile(p, tile):
    # If the whole pixel axis fits, use the full extent (block == array dims is
    # always legal); otherwise use the 128-multiple tile so only the ragged
    # final block needs masked stores.
    return p if p <= tile else tile


def _compiler_params():
    return pltpu.CompilerParams(
        dimension_semantics=("parallel", "parallel"),
        vmem_limit_bytes=_VMEM_LIMIT_BYTES,
    )


# -----------------------------------------------------------------------------
# Stage 1: single block-structured matmul producing
#   out_xl = convl2l(x_l)+convg2l(x_g),  a = convl2g(x_l),  xh = ReLU(BN1(conv1(x_g)))
# -----------------------------------------------------------------------------
def _stage1_kernel(w_ref, b1_ref, x_ref, oxl_ref, a_ref, xh_ref, *, out_cl, out_cg):
    xb = x_ref[0].astype(jnp.bfloat16)                     # (C, T), cast in-VMEM
    y = jnp.dot(w_ref[...], xb, preferred_element_type=jnp.float32)  # (Ctot, T) f32
    oxl_ref[0] = y[:out_cl, :].astype(oxl_ref.dtype)
    a_ref[0] = y[out_cl:out_cl + out_cg, :].astype(a_ref.dtype)
    xh = jnp.maximum(y[out_cl + out_cg:, :] + b1_ref[...], 0.0)
    xh_ref[0] = xh.astype(xh_ref.dtype)


def ffc_stage1(x3, w_big, b1, *, out_cl, out_cg, tile):
    n, c, p = x3.shape
    ctot = w_big.shape[0]
    ch = ctot - out_cl - out_cg
    t = _pick_tile(p, tile)
    grid = (n, pl.cdiv(p, t))

    wmap = lambda bi, pi: (0, 0)
    xmap = lambda bi, pi: (bi, 0, pi)

    flops = 2 * n * p * ctot * c
    bytes_accessed = n * p * (4 * c + 4 * out_cl + 2 * out_cg + 2 * ch) + 2 * ctot * c

    return pl.pallas_call(
        functools.partial(_stage1_kernel, out_cl=out_cl, out_cg=out_cg),
        out_shape=(
            jax.ShapeDtypeStruct((n, out_cl, p), jnp.float32),    # user-visible
            jax.ShapeDtypeStruct((n, out_cg, p), jnp.bfloat16),   # residual partial
            jax.ShapeDtypeStruct((n, ch, p), jnp.bfloat16),       # hidden stream
        ),
        grid_spec=pltpu.PrefetchScalarGridSpec(
            num_scalar_prefetch=0,
            grid=grid,
            in_specs=[
                pl.BlockSpec((ctot, c), wmap),
                pl.BlockSpec((ch, 1), wmap),
                pl.BlockSpec((1, c, t), xmap),
            ],
            out_specs=(
                pl.BlockSpec((1, out_cl, t), xmap),
                pl.BlockSpec((1, out_cg, t), xmap),
                pl.BlockSpec((1, ch, t), xmap),
            ),
        ),
        compiler_params=_compiler_params(),
        cost_estimate=pl.CostEstimate(flops=flops, transcendentals=0,
                                      bytes_accessed=bytes_accessed),
    )(w_big, b1, x3)


# -----------------------------------------------------------------------------
# FourierUnit conv: 2 stacked matmuls (re-weights, im-weights), BN+ReLU fused,
# outputs (re, im) directly.
# -----------------------------------------------------------------------------
def _fu_conv_kernel(wre_ref, wim_ref, b_ref, re_ref, im_ref, ore_ref, oim_ref, *, co):
    y = (jnp.dot(wre_ref[...], re_ref[0], preferred_element_type=jnp.float32)
         + jnp.dot(wim_ref[...], im_ref[0], preferred_element_type=jnp.float32)
         + b_ref[...])
    y = jnp.maximum(y, 0.0)
    ore_ref[0] = y[:co, :].astype(ore_ref.dtype)
    oim_ref[0] = y[co:, :].astype(oim_ref.dtype)


def _fu_conv(re3, im3, w_re, w_im, b, *, tile):
    n, c, p = re3.shape
    co2 = w_re.shape[0]
    co = co2 // 2
    t = _pick_tile(p, tile)
    grid = (n, pl.cdiv(p, t))

    wmap = lambda bi_, pi: (0, 0)
    xmap = lambda bi_, pi: (bi_, 0, pi)

    flops = 2 * n * p * co2 * c * 2
    bytes_accessed = 2 * n * p * (2 * c + 2 * co) + 2 * 2 * co2 * c

    return pl.pallas_call(
        functools.partial(_fu_conv_kernel, co=co),
        out_shape=(
            jax.ShapeDtypeStruct((n, co, p), jnp.bfloat16),
            jax.ShapeDtypeStruct((n, co, p), jnp.bfloat16),
        ),
        grid_spec=pltpu.PrefetchScalarGridSpec(
            num_scalar_prefetch=0,
            grid=grid,
            in_specs=[
                pl.BlockSpec((co2, c), wmap),
                pl.BlockSpec((co2, c), wmap),
                pl.BlockSpec((co2, 1), wmap),
                pl.BlockSpec((1, c, t), xmap),
                pl.BlockSpec((1, c, t), xmap),
            ],
            out_specs=(
                pl.BlockSpec((1, co, t), xmap),
                pl.BlockSpec((1, co, t), xmap),
            ),
        ),
        compiler_params=_compiler_params(),
        cost_estimate=pl.CostEstimate(flops=flops, transcendentals=0,
                                      bytes_accessed=bytes_accessed),
    )(w_re, w_im, b, re3, im3)


def fourier_unit(x, fup, *, tile):
    """x: (n, c, h, w) (any float dtype).  fup: prepared (stacked, BN-folded) weights."""
    n, c, h, wd = x.shape
    # TODO(synk): rfft2/irfft2 have no Pallas primitive; they run as XLA FFT ops.
    f = jnp.fft.rfft2(x.astype(jnp.float32), norm="ortho")     # (n, c, h, wf) c64
    wf = f.shape[-1]
    p = h * wf
    re = jnp.real(f).reshape(n, c, p).astype(jnp.bfloat16)
    im = jnp.imag(f).reshape(n, c, p).astype(jnp.bfloat16)

    ore, oim = _fu_conv(re, im, fup["w_re"], fup["w_im"], fup["b"], tile=tile)
    comp = (ore.astype(jnp.float32) + 1j * oim.astype(jnp.float32)).reshape(n, -1, h, wf)
    return jnp.fft.irfft2(comp, s=(h, wd), norm="ortho").astype(jnp.bfloat16)


# -----------------------------------------------------------------------------
# Global-branch output: out_xg = convl2g(x_l) + conv2(xh + fu + xs)  (fused)
# -----------------------------------------------------------------------------
def _global_out_kernel(w2_ref, a_ref, xh_ref, fu_ref, xs_ref, o_ref):
    z = (xh_ref[0].astype(jnp.float32)
         + fu_ref[0].astype(jnp.float32)
         + xs_ref[0].astype(jnp.float32))
    o_ref[0] = (a_ref[0].astype(jnp.float32)
                + jnp.dot(w2_ref[...], z.astype(jnp.bfloat16),
                          preferred_element_type=jnp.float32))


def ffc_global_out(a3, xh3, fu3, xs3, w2, *, tile):
    n, out_cg, p = a3.shape
    ch = w2.shape[1]
    t = _pick_tile(p, tile)
    grid = (n, pl.cdiv(p, t))

    wmap = lambda bi, pi: (0, 0)
    xmap = lambda bi, pi: (bi, 0, pi)

    flops = 2 * n * p * out_cg * ch + 3 * n * p * ch
    bytes_accessed = n * p * (2 * out_cg + 3 * 2 * ch + 4 * out_cg) + 2 * out_cg * ch

    return pl.pallas_call(
        _global_out_kernel,
        out_shape=jax.ShapeDtypeStruct((n, out_cg, p), jnp.float32),
        grid_spec=pltpu.PrefetchScalarGridSpec(
            num_scalar_prefetch=0,
            grid=grid,
            in_specs=[
                pl.BlockSpec((out_cg, ch), wmap),
                pl.BlockSpec((1, out_cg, t), xmap),
                pl.BlockSpec((1, ch, t), xmap),
                pl.BlockSpec((1, ch, t), xmap),
                pl.BlockSpec((1, ch, t), xmap),
            ],
            out_specs=pl.BlockSpec((1, out_cg, t), xmap),
        ),
        compiler_params=_compiler_params(),
        cost_estimate=pl.CostEstimate(flops=flops, transcendentals=0,
                                      bytes_accessed=bytes_accessed),
    )(w2, a3, xh3, fu3, xs3)


# -----------------------------------------------------------------------------
# FFC forward (returns (out_xl, out_xg) like the PyTorch module)
# -----------------------------------------------------------------------------
def ffc_forward(x, prep, *, tile=_DEFAULT_TILE):
    n, c, h, w = x.shape
    hw = h * w
    w_big = prep["w_big"]
    w2 = prep["w2"]
    out_cg, ch = w2.shape
    out_cl = w_big.shape[0] - out_cg - ch

    x3 = x.reshape(n, c, hw)                       # free reshape; stays f32 in HBM
    out_xl3, a3, xh3 = ffc_stage1(x3, w_big, prep["b1"],
                                  out_cl=out_cl, out_cg=out_cg, tile=tile)

    out_xl = out_xl3.reshape(n, out_cl, h, w)
    xh = xh3.reshape(n, ch, h, w)                  # bf16 hidden stream

    # FourierUnit on the full hidden tensor
    fu_out = fourier_unit(xh, prep["fu"], tile=tile)

    # LFU: fold the 2x2 spatial quadrants of the first ch//4 channels into channels
    c4 = ch // 4
    xs = xh[:, :c4]
    xs = jnp.concatenate(jnp.split(xs, 2, axis=2), axis=1)     # split along H
    xs = jnp.concatenate(jnp.split(xs, 2, axis=3), axis=1)     # split along W
    xs = fourier_unit(xs, prep["lfu"], tile=tile)
    # TODO(synk): the 2x2 replication is materialized (in bf16) instead of being
    #             expressed via the global_out BlockSpec index_map; a flat-pixel
    #             tile cannot address the quadrant-periodic source without a gather.
    xs = jnp.tile(xs, (1, 1, 2, 2))

    out_xg3 = ffc_global_out(a3, xh3, fu_out.reshape(n, ch, hw),
                             xs.reshape(n, ch, hw), w2, tile=tile)
    out_xg = out_xg3.reshape(n, -1, h, w)
    return out_xl, out_xg


# -----------------------------------------------------------------------------
# One-time parameter preparation (hoisted out of the hot path / jit)
# -----------------------------------------------------------------------------
def prepare_params(p):
    """BN folding, block-matmul assembly, re/im weight stacking, bf16 casts."""
    out_cl, in_cl = p["w_l2l"].shape
    in_cg = p["w_g2l"].shape[1]
    out_cg = p["w_l2g"].shape[0]
    ch = p["w1"].shape[0]
    c = in_cl + in_cg

    # W_big = [[W_l2l | W_g2l], [W_l2g | 0], [0 | W1 * bn1_scale]]
    w1s = p["w1"] * p["bn1_s"][:, None]
    w_big = jnp.zeros((out_cl + out_cg + ch, c), jnp.float32)
    w_big = w_big.at[:out_cl, :in_cl].set(p["w_l2l"])
    w_big = w_big.at[:out_cl, in_cl:].set(p["w_g2l"])
    w_big = w_big.at[out_cl:out_cl + out_cg, :in_cl].set(p["w_l2g"])
    w_big = w_big.at[out_cl + out_cg:, in_cl:].set(w1s)

    # FourierUnit weights assume the old torch.rfft interleaved channel layout
    # [c0_re, c0_im, c1_re, c1_im, ...]; de-interleave, fold BN scale, stack so
    # the kernel needs only two matmuls: y = W_re @ re + W_im @ im + b.
    def fu_prep(w, s, t):
        se, so = s[0::2], s[1::2]
        wrr = w[0::2, 0::2] * se[:, None]
        wri = w[0::2, 1::2] * se[:, None]
        wir = w[1::2, 0::2] * so[:, None]
        wii = w[1::2, 1::2] * so[:, None]
        w_re = jnp.concatenate([wrr, wir], axis=0)       # multiplies re
        w_im = jnp.concatenate([wri, wii], axis=0)       # multiplies im
        b = jnp.concatenate([t[0::2], t[1::2]], axis=0).reshape(-1, 1)
        return {"w_re": w_re.astype(jnp.bfloat16),
                "w_im": w_im.astype(jnp.bfloat16),
                "b": b.astype(jnp.float32)}

    return {
        "w_big": w_big.astype(jnp.bfloat16),
        "b1": p["bn1_t"].reshape(-1, 1).astype(jnp.float32),
        "fu": fu_prep(p["w_fu"], p["bn_fu_s"], p["bn_fu_t"]),
        "lfu": fu_prep(p["w_lfu"], p["bn_lfu_s"], p["bn_lfu_t"]),
        "w2": p["w2"].astype(jnp.bfloat16),
    }


# -----------------------------------------------------------------------------
# Deterministic raw parameters (PyTorch-shaped, kernel_size=1 -> (Cout, Cin))
# -----------------------------------------------------------------------------
def _bn_eval_affine(c, eps=1e-5):
    gamma = jnp.ones((c,), jnp.float32)
    beta = jnp.zeros((c,), jnp.float32)
    running_mean = jnp.zeros((c,), jnp.float32)
    running_var = jnp.ones((c,), jnp.float32)
    scale = gamma / jnp.sqrt(running_var + eps)
    shift = beta - running_mean * scale
    return scale, shift


def make_params(key, in_channels, out_channels):
    in_cg = in_channels // 2
    in_cl = in_channels - in_cg
    out_cg = out_channels // 2
    out_cl = out_channels - out_cg
    ch = out_cg // 2                     # SpectralTransform hidden channels

    def conv_w(k, cout, cin):
        bound = 1.0 / jnp.sqrt(jnp.float32(cin))
        return jax.random.uniform(k, (cout, cin), jnp.float32, -bound, bound)

    ks = jax.random.split(key, 7)
    p = {
        "w_l2l": conv_w(ks[0], out_cl, in_cl),
        "w_g2l": conv_w(ks[1], out_cl, in_cg),
        "w_l2g": conv_w(ks[2], out_cg, in_cl),
        "w1":    conv_w(ks[3], ch, in_cg),
        "w_fu":  conv_w(ks[4], 2 * ch, 2 * ch),
        "w_lfu": conv_w(ks[5], 2 * ch, 2 * ch),
        "w2":    conv_w(ks[6], out_cg, ch),
    }
    p["bn1_s"], p["bn1_t"] = _bn_eval_affine(ch)
    p["bn_fu_s"], p["bn_fu_t"] = _bn_eval_affine(2 * ch)
    p["bn_lfu_s"], p["bn_lfu_t"] = _bn_eval_affine(2 * ch)
    return p


if __name__ == "__main__":
    key = jax.random.PRNGKey(0)
    k_x, k_p = jax.random.split(key)

    N, C, H, W = 2, 16, 16, 16           # NCHW, ratio_gin = ratio_gout = 0.5
    x = jax.random.normal(k_x, (N, C, H, W), jnp.float32)
    raw_params = make_params(k_p, in_channels=C, out_channels=C)
    prep = prepare_params(raw_params)    # one-time weight prep, outside the hot jit

    fwd = jax.jit(functools.partial(ffc_forward, tile=_DEFAULT_TILE))
    out_xl, out_xg = fwd(x, prep)
    jax.block_until_ready((out_xl, out_xg))

    assert out_xl.shape == (N, C - C // 2, H, W), out_xl.shape
    assert out_xg.shape == (N, C // 2, H, W), out_xg.shape
    assert bool(jnp.all(jnp.isfinite(out_xl)))
    assert bool(jnp.all(jnp.isfinite(out_xg)))
    print("KERNEL_OK")
</pallas_src>

<mosaic_0001>
module attributes {stable_mosaic.version = 11 : i64} {
  func.func @_stage1_kernel(%arg0: i32, %arg1: i32, %arg2: memref<20x16xbf16, #tpu.memory_space<vmem>>, %arg3: memref<4x1xf32, #tpu.memory_space<vmem>>, %arg4: memref<1x16x256xf32, #tpu.memory_space<vmem>>, %arg5: memref<1x8x256xf32, #tpu.memory_space<vmem>>, %arg6: memref<1x8x256xbf16, #tpu.memory_space<vmem>>, %arg7: memref<1x4x256xbf16, #tpu.memory_space<vmem>>) attributes {dimension_semantics = [#tpu.dimension_semantics<parallel>, #tpu.dimension_semantics<parallel>], iteration_bounds = array<i64: 2, 1>, scalar_prefetch = 0 : i64, scratch_operands = 0 : i64, tpu.core_type = #tpu.core_type<tc>, window_params = [{pipeline_mode = #tpu.pipeline_mode<synchronous>, transform_indices = @transform_0, window_bounds = array<i64: 20, 16>}, {pipeline_mode = #tpu.pipeline_mode<synchronous>, transform_indices = @transform_1, window_bounds = array<i64: 4, 1>}, {transform_indices = @transform_2, window_bounds = array<i64: 1, 16, 256>}, {transform_indices = @transform_3, window_bounds = array<i64: 1, 8, 256>}, {transform_indices = @transform_4, window_bounds = array<i64: 1, 8, 256>}, {transform_indices = @transform_5, window_bounds = array<i64: 1, 4, 256>}]} {
    %c0 = arith.constant 0 : index
    %c0_0 = arith.constant 0 : index
    %c0_1 = arith.constant 0 : index
    %0 = vector.load %arg4[%c0, %c0_0, %c0_1] : memref<1x16x256xf32, #tpu.memory_space<vmem>>, vector<1x16x256xf32>
    %1 = vector.shape_cast %0 : vector<1x16x256xf32> to vector<16x256xf32>
    %2 = arith.truncf %1 : vector<16x256xf32> to vector<16x256xbf16>
    %c0_2 = arith.constant 0 : index
    %c0_3 = arith.constant 0 : index
    %3 = vector.load %arg2[%c0_2, %c0_3] : memref<20x16xbf16, #tpu.memory_space<vmem>>, vector<20x16xbf16>
    %cst = arith.constant dense<0.000000e+00> : vector<20x256xf32>
    %4 = tpu.matmul %3, %2, %cst {dimension_numbers = #tpu.dot_dimension_numbers<[1], [0], [0], [1], [0, 0, 1, 1], [], []>} : vector<20x16xbf16>, vector<16x256xbf16>, vector<20x256xf32> -> vector<20x256xf32>
    %5 = vector.extract_strided_slice %4 {offsets = [0, 0], sizes = [8, 256], strides = [1, 1]} : vector<20x256xf32> to vector<8x256xf32>
    %c0_4 = arith.constant 0 : index
    %c0_5 = arith.constant 0 : index
    %c0_6 = arith.constant 0 : index
    %6 = vector.load %arg5[%c0_4, %c0_5, %c0_6] : memref<1x8x256xf32, #tpu.memory_space<vmem>>, vector<1x8x256xf32>
    %7 = vector.shape_cast %6 : vector<1x8x256xf32> to vector<8x256xf32>
    %8 = vector.shape_cast %5 : vector<8x256xf32> to vector<1x8x256xf32>
    tpu.vector_store %arg5[%c0_4, %c0_5, %c0_6], %8 {strides = array<i32>} : memref<1x8x256xf32, #tpu.memory_space<vmem>>, vector<1x8x256xf32>,
    %9 = vector.extract_strided_slice %4 {offsets = [8, 0], sizes = [8, 256], strides = [1, 1]} : vector<20x256xf32> to vector<8x256xf32>
    %10 = arith.truncf %9 : vector<8x256xf32> to vector<8x256xbf16>
    %c0_7 = arith.constant 0 : index
    %c0_8 = arith.constant 0 : index
    %c0_9 = arith.constant 0 : index
    %11 = vector.load %arg6[%c0_7, %c0_8, %c0_9] : memref<1x8x256xbf16, #tpu.memory_space<vmem>>, vector<1x8x256xbf16>
    %12 = vector.shape_cast %11 : vector<1x8x256xbf16> to vector<8x256xbf16>
    %13 = vector.shape_cast %10 : vector<8x256xbf16> to vector<1x8x256xbf16>
    tpu.vector_store %arg6[%c0_7, %c0_8, %c0_9], %13 {strides = array<i32>} : memref<1x8x256xbf16, #tpu.memory_space<vmem>>, vector<1x8x256xbf16>,
    %14 = vector.extract_strided_slice %4 {offsets = [16, 0], sizes = [4, 256], strides = [1, 1]} : vector<20x256xf32> to vector<4x256xf32>
    %c0_10 = arith.constant 0 : index
    %c0_11 = arith.constant 0 : index
    %15 = vector.load %arg3[%c0_10, %c0_11] : memref<4x1xf32, #tpu.memory_space<vmem>>, vector<4x1xf32>
    %16 = vector.broadcast %15 : vector<4x1xf32> to vector<4x256xf32>
    %17 = arith.addf %14, %16 : vector<4x256xf32>
    %cst_12 = arith.constant 0.000000e+00 : f32
    %18 = vector.broadcast %cst_12 : f32 to vector<4x256xf32>
    %19 = arith.maximumf %17, %18 : vector<4x256xf32>
    %20 = arith.truncf %19 : vector<4x256xf32> to vector<4x256xbf16>
    %c0_13 = arith.constant 0 : index
    %c0_14 = arith.constant 0 : index
    %c0_15 = arith.constant 0 : index
    %21 = vector.load %arg7[%c0_13, %c0_14, %c0_15] : memref<1x4x256xbf16, #tpu.memory_space<vmem>>, vector<1x4x256xbf16>
    %22 = vector.shape_cast %21 : vector<1x4x256xbf16> to vector<4x256xbf16>
    %23 = vector.shape_cast %20 : vector<4x256xbf16> to vector<1x4x256xbf16>
    tpu.vector_store %arg7[%c0_13, %c0_14, %c0_15], %23 {strides = array<i32>} : memref<1x4x256xbf16, #tpu.memory_space<vmem>>, vector<1x4x256xbf16>,
    return
  }
  func.func @transform_0(%arg0: i32, %arg1: i32) -> (i32, i32) {
    %c0_i32 = arith.constant 0 : i32
    %c0_i32_0 = arith.constant 0 : i32
    %c0_i32_1 = arith.constant 0 : i32
    return %c0_i32, %c0_i32_0 : i32, i32
  }
  func.func @transform_1(%arg0: i32, %arg1: i32) -> (i32, i32) {
    %c0_i32 = arith.constant 0 : i32
    %c0_i32_0 = arith.constant 0 : i32
    %c0_i32_1 = arith.constant 0 : i32
    return %c0_i32, %c0_i32_0 : i32, i32
  }
  func.func @transform_2(%arg0: i32, %arg1: i32) -> (i32, i32, i32) {
    %c0_i32 = arith.constant 0 : i32
    %c0_i32_0 = arith.constant 0 : i32
    return %arg0, %c0_i32, %arg1 : i32, i32, i32
  }
  func.func @transform_3(%arg0: i32, %arg1: i32) -> (i32, i32, i32) {
    %c0_i32 = arith.constant 0 : i32
    %c0_i32_0 = arith.constant 0 : i32
    return %arg0, %c0_i32, %arg1 : i32, i32, i32
  }
  func.func @transform_4(%arg0: i32, %arg1: i32) -> (i32, i32, i32) {
    %c0_i32 = arith.constant 0 : i32
    %c0_i32_0 = arith.constant 0 : i32
    return %arg0, %c0_i32, %arg1 : i32, i32, i32
  }
  func.func @transform_5(%arg0: i32, %arg1: i32) -> (i32, i32, i32) {
    %c0_i32 = arith.constant 0 : i32
    %c0_i32_0 = arith.constant 0 : i32
    return %arg0, %c0_i32, %arg1 : i32, i32, i32
  }
}

module attributes {stable_mosaic.version = 11 : i64} {
  func.func @_fu_conv_kernel(%arg0: i32, %arg1: i32, %arg2: memref<8x4xbf16, #tpu.memory_space<vmem>>, %arg3: memref<8x4xbf16, #tpu.memory_space<vmem>>, %arg4: memref<8x1xf32, #tpu.memory_space<vmem>>, %arg5: memref<1x4x40xbf16, #tpu.memory_space<vmem>>, %arg6: memref<1x4x40xbf16, #tpu.memory_space<vmem>>, %arg7: memref<1x4x40xbf16, #tpu.memory_space<vmem>>, %arg8: memref<1x4x40xbf16, #tpu.memory_space<vmem>>) attributes {dimension_semantics = [#tpu.dimension_semantics<parallel>, #tpu.dimension_semantics<parallel>], iteration_bounds = array<i64: 2, 1>, scalar_prefetch = 0 : i64, scratch_operands = 0 : i64, tpu.core_type = #tpu.core_type<tc>, window_params = [{pipeline_mode = #tpu.pipeline_mode<synchronous>, transform_indices = @transform_0, window_bounds = array<i64: 8, 4>}, {pipeline_mode = #tpu.pipeline_mode<synchronous>, transform_indices = @transform_1, window_bounds = array<i64: 8, 4>}, {pipeline_mode = #tpu.pipeline_mode<synchronous>, transform_indices = @transform_2, window_bounds = array<i64: 8, 1>}, {transform_indices = @transform_3, window_bounds = array<i64: 1, 4, 40>}, {transform_indices = @transform_4, window_bounds = array<i64: 1, 4, 40>}, {transform_indices = @transform_5, window_bounds = array<i64: 1, 4, 40>}, {transform_indices = @transform_6, window_bounds = array<i64: 1, 4, 40>}]} {
    %c0 = arith.constant 0 : index
    %c0_0 = arith.constant 0 : index
    %0 = vector.load %arg2[%c0, %c0_0] : memref<8x4xbf16, #tpu.memory_space<vmem>>, vector<8x4xbf16>
    %c0_1 = arith.constant 0 : index
    %c0_2 = arith.constant 0 : index
    %c0_3 = arith.constant 0 : index
    %1 = vector.load %arg5[%c0_1, %c0_2, %c0_3] : memref<1x4x40xbf16, #tpu.memory_space<vmem>>, vector<1x4x40xbf16>
    %2 = vector.shape_cast %1 : vector<1x4x40xbf16> to vector<4x40xbf16>
    %cst = arith.constant dense<0.000000e+00> : vector<8x40xf32>
    %3 = tpu.matmul %0, %2, %cst {dimension_numbers = #tpu.dot_dimension_numbers<[1], [0], [0], [1], [0, 0, 1, 1], [], []>} : vector<8x4xbf16>, vector<4x40xbf16>, vector<8x40xf32> -> vector<8x40xf32>
    %c0_4 = arith.constant 0 : index
    %c0_5 = arith.constant 0 : index
    %4 = vector.load %arg3[%c0_4, %c0_5] : memref<8x4xbf16, #tpu.memory_space<vmem>>, vector<8x4xbf16>
    %c0_6 = arith.constant 0 : index
    %c0_7 = arith.constant 0 : index
    %c0_8 = arith.constant 0 : index
    %5 = vector.load %arg6[%c0_6, %c0_7, %c0_8] : memref<1x4x40xbf16, #tpu.memory_space<vmem>>, vector<1x4x40xbf16>
    %6 = vector.shape_cast %5 : vector<1x4x40xbf16> to vector<4x40xbf16>
    %cst_9 = arith.constant dense<0.000000e+00> : vector<8x40xf32>
    %7 = tpu.matmul %4, %6, %cst_9 {dimension_numbers = #tpu.dot_dimension_numbers<[1], [0], [0], [1], [0, 0, 1, 1], [], []>} : vector<8x4xbf16>, vector<4x40xbf16>, vector<8x40xf32> -> vector<8x40xf32>
    %8 = arith.addf %3, %7 : vector<8x40xf32>
    %c0_10 = arith.constant 0 : index
    %c0_11 = arith.constant 0 : index
    %9 = vector.load %arg4[%c0_10, %c0_11] : memref<8x1xf32, #tpu.memory_space<vmem>>, vector<8x1xf32>
    %10 = vector.broadcast %9 : vector<8x1xf32> to vector<8x40xf32>
    %11 = arith.addf %8, %10 : vector<8x40xf32>
    %cst_12 = arith.constant 0.000000e+00 : f32
    %12 = vector.broadcast %cst_12 : f32 to vector<8x40xf32>
    %13 = arith.maximumf %11, %12 : vector<8x40xf32>
    %14 = vector.extract_strided_slice %13 {offsets = [0, 0], sizes = [4, 40], strides = [1, 1]} : vector<8x40xf32> to vector<4x40xf32>
    %15 = arith.truncf %14 : vector<4x40xf32> to vector<4x40xbf16>
    %c0_13 = arith.constant 0 : index
    %c0_14 = arith.constant 0 : index
    %c0_15 = arith.constant 0 : index
    %16 = vector.load %arg7[%c0_13, %c0_14, %c0_15] : memref<1x4x40xbf16, #tpu.memory_space<vmem>>, vector<1x4x40xbf16>
    %17 = vector.shape_cast %16 : vector<1x4x40xbf16> to vector<4x40xbf16>
    %18 = vector.shape_cast %15 : vector<4x40xbf16> to vector<1x4x40xbf16>
    tpu.vector_store %arg7[%c0_13, %c0_14, %c0_15], %18 {strides = array<i32>} : memref<1x4x40xbf16, #tpu.memory_space<vmem>>, vector<1x4x40xbf16>,
    %19 = vector.extract_strided_slice %13 {offsets = [4, 0], sizes = [4, 40], strides = [1, 1]} : vector<8x40xf32> to vector<4x40xf32>
    %20 = arith.truncf %19 : vector<4x40xf32> to vector<4x40xbf16>
    %c0_16 = arith.constant 0 : index
    %c0_17 = arith.constant 0 : index
    %c0_18 = arith.constant 0 : index
    %21 = vector.load %arg8[%c0_16, %c0_17, %c0_18] : memref<1x4x40xbf16, #tpu.memory_space<vmem>>, vector<1x4x40xbf16>
    %22 = vector.shape_cast %21 : vector<1x4x40xbf16> to vector<4x40xbf16>
    %23 = vector.shape_cast %20 : vector<4x40xbf16> to vector<1x4x40xbf16>
    tpu.vector_store %arg8[%c0_16, %c0_17, %c0_18], %23 {strides = array<i32>} : memref<1x4x40xbf16, #tpu.memory_space<vmem>>, vector<1x4x40xbf16>,
    return
  }
  func.func @transform_0(%arg0: i32, %arg1: i32) -> (i32, i32) {
    %c0_i32 = arith.constant 0 : i32
    %c0_i32_0 = arith.constant 0 : i32
    %c0_i32_1 = arith.constant 0 : i32
    return %c0_i32, %c0_i32_0 : i32, i32
  }
  func.func @transform_1(%arg0: i32, %arg1: i32) -> (i32, i32) {
    %c0_i32 = arith.constant 0 : i32
    %c0_i32_0 = arith.constant 0 : i32
    %c0_i32_1 = arith.constant 0 : i32
    return %c0_i32, %c0_i32_0 : i32, i32
  }
  func.func @transform_2(%arg0: i32, %arg1: i32) -> (i32, i32) {
    %c0_i32 = arith.constant 0 : i32
    %c0_i32_0 = arith.constant 0 : i32
    %c0_i32_1 = arith.constant 0 : i32
    return %c0_i32, %c0_i32_0 : i32, i32
  }
  func.func @transform_3(%arg0: i32, %arg1: i32) -> (i32, i32, i32) {
    %c0_i32 = arith.constant 0 : i32
    %c0_i32_0 = arith.constant 0 : i32
    return %arg0, %c0_i32, %arg1 : i32, i32, i32
  }
  func.func @transform_4(%arg0: i32, %arg1: i32) -> (i32, i32, i32) {
    %c0_i32 = arith.constant 0 : i32
    %c0_i32_0 = arith.constant 0 : i32
    return %arg0, %c0_i32, %arg1 : i32, i32, i32
  }
  func.func @transform_5(%arg0: i32, %arg1: i32) -> (i32, i32, i32) {
    %c0_i32 = arith.constant 0 : i32
    %c0_i32_0 = arith.constant 0 : i32
    return %arg0, %c0_i32, %arg1 : i32, i32, i32
  }
  func.func @transform_6(%arg0: i32, %arg1: i32) -> (i32, i32, i32) {
    %c0_i32 = arith.constant 0 : i32
    %c0_i32_0 = arith.constant 0 : i32
    return %arg0, %c0_i32, %arg1 : i32, i32, i32
  }
}

module attributes {stable_mosaic.version = 11 : i64} {
  func.func @_fu_conv_kernel(%arg0: i32, %arg1: i32, %arg2: memref<8x4xbf16, #tpu.memory_space<vmem>>, %arg3: memref<8x4xbf16, #tpu.memory_space<vmem>>, %arg4: memref<8x1xf32, #tpu.memory_space<vmem>>, %arg5: memref<1x4x144xbf16, #tpu.memory_space<vmem>>, %arg6: memref<1x4x144xbf16, #tpu.memory_space<vmem>>, %arg7: memref<1x4x144xbf16, #tpu.memory_space<vmem>>, %arg8: memref<1x4x144xbf16, #tpu.memory_space<vmem>>) attributes {dimension_semantics = [#tpu.dimension_semantics<parallel>, #tpu.dimension_semantics<parallel>], iteration_bounds = array<i64: 2, 1>, scalar_prefetch = 0 : i64, scratch_operands = 0 : i64, tpu.core_type = #tpu.core_type<tc>, window_params = [{pipeline_mode = #tpu.pipeline_mode<synchronous>, transform_indices = @transform_0, window_bounds = array<i64: 8, 4>}, {pipeline_mode = #tpu.pipeline_mode<synchronous>, transform_indices = @transform_1, window_bounds = array<i64: 8, 4>}, {pipeline_mode = #tpu.pipeline_mode<synchronous>, transform_indices = @transform_2, window_bounds = array<i64: 8, 1>}, {transform_indices = @transform_3, window_bounds = array<i64: 1, 4, 144>}, {transform_indices = @transform_4, window_bounds = array<i64: 1, 4, 144>}, {transform_indices = @transform_5, window_bounds = array<i64: 1, 4, 144>}, {transform_indices = @transform_6, window_bounds = array<i64: 1, 4, 144>}]} {
    %c0 = arith.constant 0 : index
    %c0_0 = arith.constant 0 : index
    %0 = vector.load %arg2[%c0, %c0_0] : memref<8x4xbf16, #tpu.memory_space<vmem>>, vector<8x4xbf16>
    %c0_1 = arith.constant 0 : index
    %c0_2 = arith.constant 0 : index
    %c0_3 = arith.constant 0 : index
    %1 = vector.load %arg5[%c0_1, %c0_2, %c0_3] : memref<1x4x144xbf16, #tpu.memory_space<vmem>>, vector<1x4x144xbf16>
    %2 = vector.shape_cast %1 : vector<1x4x144xbf16> to vector<4x144xbf16>
    %cst = arith.constant dense<0.000000e+00> : vector<8x144xf32>
    %3 = tpu.matmul %0, %2, %cst {dimension_numbers = #tpu.dot_dimension_numbers<[1], [0], [0], [1], [0, 0, 1, 1], [], []>} : vector<8x4xbf16>, vector<4x144xbf16>, vector<8x144xf32> -> vector<8x144xf32>
    %c0_4 = arith.constant 0 : index
    %c0_5 = arith.constant 0 : index
    %4 = vector.load %arg3[%c0_4, %c0_5] : memref<8x4xbf16, #tpu.memory_space<vmem>>, vector<8x4xbf16>
    %c0_6 = arith.constant 0 : index
    %c0_7 = arith.constant 0 : index
    %c0_8 = arith.constant 0 : index
    %5 = vector.load %arg6[%c0_6, %c0_7, %c0_8] : memref<1x4x144xbf16, #tpu.memory_space<vmem>>, vector<1x4x144xbf16>
    %6 = vector.shape_cast %5 : vector<1x4x144xbf16> to vector<4x144xbf16>
    %cst_9 = arith.constant dense<0.000000e+00> : vector<8x144xf32>
    %7 = tpu.matmul %4, %6, %cst_9 {dimension_numbers = #tpu.dot_dimension_numbers<[1], [0], [0], [1], [0, 0, 1, 1], [], []>} : vector<8x4xbf16>, vector<4x144xbf16>, vector<8x144xf32> -> vector<8x144xf32>
    %8 = arith.addf %3, %7 : vector<8x144xf32>
    %c0_10 = arith.constant 0 : index
    %c0_11 = arith.constant 0 : index
    %9 = vector.load %arg4[%c0_10, %c0_11] : memref<8x1xf32, #tpu.memory_space<vmem>>, vector<8x1xf32>
    %10 = vector.broadcast %9 : vector<8x1xf32> to vector<8x144xf32>
    %11 = arith.addf %8, %10 : vector<8x144xf32>
    %cst_12 = arith.constant 0.000000e+00 : f32
    %12 = vector.broadcast %cst_12 : f32 to vector<8x144xf32>
    %13 = arith.maximumf %11, %12 : vector<8x144xf32>
    %14 = vector.extract_strided_slice %13 {offsets = [0, 0], sizes = [4, 144], strides = [1, 1]} : vector<8x144xf32> to vector<4x144xf32>
    %15 = arith.truncf %14 : vector<4x144xf32> to vector<4x144xbf16>
    %c0_13 = arith.constant 0 : index
    %c0_14 = arith.constant 0 : index
    %c0_15 = arith.constant 0 : index
    %16 = vector.load %arg7[%c0_13, %c0_14, %c0_15] : memref<1x4x144xbf16, #tpu.memory_space<vmem>>, vector<1x4x144xbf16>
    %17 = vector.shape_cast %16 : vector<1x4x144xbf16> to vector<4x144xbf16>
    %18 = vector.shape_cast %15 : vector<4x144xbf16> to vector<1x4x144xbf16>
    tpu.vector_store %arg7[%c0_13, %c0_14, %c0_15], %18 {strides = array<i32>} : memref<1x4x144xbf16, #tpu.memory_space<vmem>>, vector<1x4x144xbf16>,
    %19 = vector.extract_strided_slice %13 {offsets = [4, 0], sizes = [4, 144], strides = [1, 1]} : vector<8x144xf32> to vector<4x144xf32>
    %20 = arith.truncf %19 : vector<4x144xf32> to vector<4x144xbf16>
    %c0_16 = arith.constant 0 : index
    %c0_17 = arith.constant 0 : index
    %c0_18 = arith.constant 0 : index
    %21 = vector.load %arg8[%c0_16, %c0_17, %c0_18] : memref<1x4x144xbf16, #tpu.memory_space<vmem>>, vector<1x4x144xbf16>
    %22 = vector.shape_cast %21 : vector<1x4x144xbf16> to vector<4x144xbf16>
    %23 = vector.shape_cast %20 : vector<4x144xbf16> to vector<1x4x144xbf16>
    tpu.vector_store %arg8[%c0_16, %c0_17, %c0_18], %23 {strides = array<i32>} : memref<1x4x144xbf16, #tpu.memory_space<vmem>>, vector<1x4x144xbf16>,
    return
  }
  func.func @transform_0(%arg0: i32, %arg1: i32) -> (i32, i32) {
    %c0_i32 = arith.constant 0 : i32
    %c0_i32_0 = arith.constant 0 : i32
    %c0_i32_1 = arith.constant 0 : i32
    return %c0_i32, %c0_i32_0 : i32, i32
  }
  func.func @transform_1(%arg0: i32, %arg1: i32) -> (i32, i32) {
    %c0_i32 = arith.constant 0 : i32
    %c0_i32_0 = arith.constant 0 : i32
    %c0_i32_1 = arith.constant 0 : i32
    return %c0_i32, %c0_i32_0 : i32, i32
  }
  func.func @transform_2(%arg0: i32, %arg1: i32) -> (i32, i32) {
    %c0_i32 = arith.constant 0 : i32
    %c0_i32_0 = arith.constant 0 : i32
    %c0_i32_1 = arith.constant 0 : i32
    return %c0_i32, %c0_i32_0 : i32, i32
  }
  func.func @transform_3(%arg0: i32, %arg1: i32) -> (i32, i32, i32) {
    %c0_i32 = arith.constant 0 : i32
    %c0_i32_0 = arith.constant 0 : i32
    return %arg0, %c0_i32, %arg1 : i32, i32, i32
  }
  func.func @transform_4(%arg0: i32, %arg1: i32) -> (i32, i32, i32) {
    %c0_i32 = arith.constant 0 : i32
    %c0_i32_0 = arith.constant 0 : i32
    return %arg0, %c0_i32, %arg1 : i32, i32, i32
  }
  func.func @transform_5(%arg0: i32, %arg1: i32) -> (i32, i32, i32) {
    %c0_i32 = arith.constant 0 : i32
    %c0_i32_0 = arith.constant 0 : i32
    return %arg0, %c0_i32, %arg1 : i32, i32, i32
  }
  func.func @transform_6(%arg0: i32, %arg1: i32) -> (i32, i32, i32) {
    %c0_i32 = arith.constant 0 : i32
    %c0_i32_0 = arith.constant 0 : i32
    return %arg0, %c0_i32, %arg1 : i32, i32, i32
  }
}

module attributes {stable_mosaic.version = 11 : i64} {
  func.func @_global_out_kernel(%arg0: i32, %arg1: i32, %arg2: memref<8x4xbf16, #tpu.memory_space<vmem>>, %arg3: memref<1x8x256xbf16, #tpu.memory_space<vmem>>, %arg4: memref<1x4x256xbf16, #tpu.memory_space<vmem>>, %arg5: memref<1x4x256xbf16, #tpu.memory_space<vmem>>, %arg6: memref<1x4x256xbf16, #tpu.memory_space<vmem>>, %arg7: memref<1x8x256xf32, #tpu.memory_space<vmem>>) attributes {dimension_semantics = [#tpu.dimension_semantics<parallel>, #tpu.dimension_semantics<parallel>], iteration_bounds = array<i64: 2, 1>, scalar_prefetch = 0 : i64, scratch_operands = 0 : i64, tpu.core_type = #tpu.core_type<tc>, window_params = [{pipeline_mode = #tpu.pipeline_mode<synchronous>, transform_indices = @transform_0, window_bounds = array<i64: 8, 4>}, {transform_indices = @transform_1, window_bounds = array<i64: 1, 8, 256>}, {transform_indices = @transform_2, window_bounds = array<i64: 1, 4, 256>}, {transform_indices = @transform_3, window_bounds = array<i64: 1, 4, 256>}, {transform_indices = @transform_4, window_bounds = array<i64: 1, 4, 256>}, {transform_indices = @transform_5, window_bounds = array<i64: 1, 8, 256>}]} {
    %c0 = arith.constant 0 : index
    %c0_0 = arith.constant 0 : index
    %c0_1 = arith.constant 0 : index
    %0 = vector.load %arg4[%c0, %c0_0, %c0_1] : memref<1x4x256xbf16, #tpu.memory_space<vmem>>, vector<1x4x256xbf16>
    %1 = vector.shape_cast %0 : vector<1x4x256xbf16> to vector<4x256xbf16>
    %2 = arith.extf %1 : vector<4x256xbf16> to vector<4x256xf32>
    %c0_2 = arith.constant 0 : index
    %c0_3 = arith.constant 0 : index
    %c0_4 = arith.constant 0 : index
    %3 = vector.load %arg5[%c0_2, %c0_3, %c0_4] : memref<1x4x256xbf16, #tpu.memory_space<vmem>>, vector<1x4x256xbf16>
    %4 = vector.shape_cast %3 : vector<1x4x256xbf16> to vector<4x256xbf16>
    %5 = arith.extf %4 : vector<4x256xbf16> to vector<4x256xf32>
    %6 = arith.addf %2, %5 : vector<4x256xf32>
    %c0_5 = arith.constant 0 : index
    %c0_6 = arith.constant 0 : index
    %c0_7 = arith.constant 0 : index
    %7 = vector.load %arg6[%c0_5, %c0_6, %c0_7] : memref<1x4x256xbf16, #tpu.memory_space<vmem>>, vector<1x4x256xbf16>
    %8 = vector.shape_cast %7 : vector<1x4x256xbf16> to vector<4x256xbf16>
    %9 = arith.extf %8 : vector<4x256xbf16> to vector<4x256xf32>
    %10 = arith.addf %6, %9 : vector<4x256xf32>
    %c0_8 = arith.constant 0 : index
    %c0_9 = arith.constant 0 : index
    %c0_10 = arith.constant 0 : index
    %11 = vector.load %arg3[%c0_8, %c0_9, %c0_10] : memref<1x8x256xbf16, #tpu.memory_space<vmem>>, vector<1x8x256xbf16>
    %12 = vector.shape_cast %11 : vector<1x8x256xbf16> to vector<8x256xbf16>
    %13 = arith.extf %12 : vector<8x256xbf16> to vector<8x256xf32>
    %c0_11 = arith.constant 0 : index
    %c0_12 = arith.constant 0 : index
    %14 = vector.load %arg2[%c0_11, %c0_12] : memref<8x4xbf16, #tpu.memory_space<vmem>>, vector<8x4xbf16>
    %15 = arith.truncf %10 : vector<4x256xf32> to vector<4x256xbf16>
    %cst = arith.constant dense<0.000000e+00> : vector<8x256xf32>
    %16 = tpu.matmul %14, %15, %cst {dimension_numbers = #tpu.dot_dimension_numbers<[1], [0], [0], [1], [0, 0, 1, 1], [], []>} : vector<8x4xbf16>, vector<4x256xbf16>, vector<8x256xf32> -> vector<8x256xf32>
    %17 = arith.addf %13, %16 : vector<8x256xf32>
    %c0_13 = arith.constant 0 : index
    %c0_14 = arith.constant 0 : index
    %c0_15 = arith.constant 0 : index
    %18 = vector.load %arg7[%c0_13, %c0_14, %c0_15] : memref<1x8x256xf32, #tpu.memory_space<vmem>>, vector<1x8x256xf32>
    %19 = vector.shape_cast %18 : vector<1x8x256xf32> to vector<8x256xf32>
    %20 = vector.shape_cast %17 : vector<8x256xf32> to vector<1x8x256xf32>
    tpu.vector_store %arg7[%c0_13, %c0_14, %c0_15], %20 {strides = array<i32>} : memref<1x8x256xf32, #tpu.memory_space<vmem>>, vector<1x8x256xf32>,
    return
  }
  func.func @transform_0(%arg0: i32, %arg1: i32) -> (i32, i32) {
    %c0_i32 = arith.constant 0 : i32
    %c0_i32_0 = arith.constant 0 : i32
    %c0_i32_1 = arith.constant 0 : i32
    return %c0_i32, %c0_i32_0 : i32, i32
  }
  func.func @transform_1(%arg0: i32, %arg1: i32) -> (i32, i32, i32) {
    %c0_i32 = arith.constant 0 : i32
    %c0_i32_0 = arith.constant 0 : i32
    return %arg0, %c0_i32, %arg1 : i32, i32, i32
  }
  func.func @transform_2(%arg0: i32, %arg1: i32) -> (i32, i32, i32) {
    %c0_i32 = arith.constant 0 : i32
    %c0_i32_0 = arith.constant 0 : i32
    return %arg0, %c0_i32, %arg1 : i32, i32, i32
  }
  func.func @transform_3(%arg0: i32, %arg1: i32) -> (i32, i32, i32) {
    %c0_i32 = arith.constant 0 : i32
    %c0_i32_0 = arith.constant 0 : i32
    return %arg0, %c0_i32, %arg1 : i32, i32, i32
  }
  func.func @transform_4(%arg0: i32, %arg1: i32) -> (i32, i32, i32) {
    %c0_i32 = arith.constant 0 : i32
    %c0_i32_0 = arith.constant 0 : i32
    return %arg0, %c0_i32, %arg1 : i32, i32, i32
  }
  func.func @transform_5(%arg0: i32, %arg1: i32) -> (i32, i32, i32) {
    %c0_i32 = arith.constant 0 : i32
    %c0_i32_0 = arith.constant 0 : i32
    return %arg0, %c0_i32, %arg1 : i32, i32, i32
  }
}

</mosaic_0001>

<bundles_post_ra>
// kernel: ffc_forward.4
= control target key start
LH: loop header
LB: loop body
LE: loop exit
PB: predicated region body
PF: predicated region fallthrough
CT: control target
= control target key end

     0   :  { %s721_s18 = smov 0   ;;  %s723_s19 = smov 0   ;;  %s775_s0 = inlined_call_operand.vmem [shape: bf16[20,16], index: 0, kind: input, shape index: {}]   ;;  %s776_s1 = inlined_call_operand.vmem [shape: f32[4,1], index: 1, kind: input, shape index: {}]   ;;  %s777_s2 = inlined_call_operand.vmem [shape: f32[2,16,256], index: 2, kind: input, shape index: {}]   ;;  %s778_s3 = inlined_call_operand.vmem [shape: f32[2,8,256], index: 3, kind: output, shape index: {0}]   ;;  %s779_s4 = inlined_call_operand.vmem [shape: bf16[2,8,256], index: 4, kind: output, shape index: {1}]   ;;  %s780_s5 = inlined_call_operand.vmem [shape: bf16[2,4,256], index: 5, kind: output, shape index: {2}]  }
   0x1   :  { %s725_s20 = smov 0  }
   0x2 LB: > { %s28_s21 = sadd.s32 1, %s684_s19  ;;  %p613_p0 = scmp.ge.s32.totalorder %s688_s20, 1  ;;  %s688_s20 = sphi %s725_s20, %s16_s20   ;;  %s684_s19 = sphi %s723_s19, %s782_s19   ;;  %s680_s18 = sphi %s721_s18, %s781_s18  }
   0x3   : > { %p30_p1 = scmp.ge.s32.totalorder %s28_s21, 2  ;;  %p217_p2 = scmp.lt.s32.totalorder %s688_s20, 3 }
   0x5   : > { %s784_s21 = smov (%p30_p1, %s28_s21), 0  ;;  %p218_p3 = pnand %p613_p0, %p217_p2 }
   0x6   : > { %p272_p4 = scmp.lt.s32.totalorder (!%p218_p3), %s680_s18, 1  ;;  %v690_v0 = vmov (!%p218_p3), 0   ;;  %v398_v1 = vld [vmem:[%s776_s1] sm:$0xf] (!%p218_p3)  ;;  %vm329_vm0 = vcmask (!%p218_p3), 130048  }
   0x7   : > { %221 = sbr.rel (%p218_p3) target bundleno = 244 (0xf4), region = 32  ;;  %368 = vmatprep.mubr.bf16.mxu0 (!%p218_p3), %v690_v0  ;;  %378 = vmatprep.mubr.bf16.mxu1 (!%p218_p3), %v690_v0  ;;  %v664_v8 = vld [vmem:[%s775_s0] sm:$0xff] (!%p218_p3)   ;;  %v665_v9 = vld [vmem:[%s775_s0 + $0x8] ss:$0 sps:$4 sm:$0x33] (!%p218_p3)  }
   0x8   : > { %663 = vset.pattern.permute.xlu0 (!%p218_p3), %v690_v0 }
   0x9   : > { %401 = vperm.xlu0 (!%p218_p3), %663, %v398_v1  }
   0xe   : > { %s786_s18 = smov (!%p272_p4, %s680_s18), 1 }
   0xf   : > { %s631_s24 = sshll.u32 %s786_s18, 5  ;;  %s632_s7 = sshll.u32 %s786_s18, 4 }
  0x10   : > { %s279_s27 = scalar_lea.vmem %s777_s2, %s631_s24  ;;  %s289_s10 = scalar_lea.vmem %s778_s3, %s632_s7 }
  0x11   : > { %v313_v2 = vld [vmem:[%s279_s27 + $0x8] sm:$0xff]  ;;  %v315_v3 = vld [vmem:[%s279_s27 + $0x18] sm:$0xff]  ;;  %v312_v4 = vld [vmem:[%s279_s27] sm:$0xff]  ;;  %s633_s11 = sshll.u32 %s786_s18, 3  ;;  %s634_s12 = sshll.u32 %s786_s18, 2 }
  0x12   : > { %v317_v5 = vpack.c.bf16 %v315_v3, %v313_v2  ;;  %v314_v6 = vld [vmem:[%s279_s27 + $0x10] sm:$0xff]  ;;  %s299_s15 = scalar_lea.vmem %s779_s4, %s633_s11  ;;  %s309_s22 = scalar_lea.vmem %s780_s5, %s634_s12 }
  0x13   : > { %v316_v7 = vpack.c.bf16 %v314_v6, %v312_v4 }
  0x14   : > { %336 = vmatprep.subr.bf16.mxu0 %v317_v5  ;;  %636 = vmatprep.subr.bf16.mxu1 %v317_v5 }
  0x15   : > { %337 = vmatpush1.bf16.msra.mxu0 %v316_v7  ;;  %637 = vmatpush1.bf16.msra.mxu1 %v316_v7 }
  0x18   : > { %624 = vmatmul.mubr.msk.bf16.vlgmr.msra.gmra.mrb[0].mxu0 %vm329_vm0, %v664_v8  ;;  %625 = vmatmul.mubr.msk.bf16.vlgmr.msra.gmra.mrb[0].mxu1 %vm329_vm0, %v665_v9 }
  0x88   : > { %v402_v10 = vpop.permute.xlu0 %401 }
  0xeb   : > { %v370_v11 = vpop.f32.mrb[0].mxu0  ;;  %v380_v12 = vpop.f32.mrb[0].mxu1 }
  0xec   : > { %387 = vst [vmem:[%s289_s10] sm:$0xff] %v370_v11  ;;  %v404_v13 = vadd.f32 %v402_v10, %v380_v12  ;;  %v372_v14 = vpop.f32.mrb[1].mxu0  ;;  %v382_v15 = vpop.f32.mrb[1].mxu1 }
  0xed   : > { %388 = vst [vmem:[%s289_s10 + $0x8] sm:$0xff] %v372_v14  ;;  %v405_v16 = vadd.f32 %v402_v10, %v382_v15  ;;  %v374_v17 = vpop.f32.mrb[2].mxu0  ;;  %v384_v18 = vpop.f32.mrb[2].mxu1 }
  0xee   : > { %v406_v19 = vmax.f32 %v404_v13, 0.0  ;;  %v376_v20 = vpop.f32.mrb[3].mxu0  ;;  %v385_v21 = vpop.f32.mrb[3].mxu1 }
  0xef   : > { %v407_v22 = vmax.f32 %v405_v16, 0.0  ;;  %v635_v23 = vpack.c.bf16 %v376_v20, %v374_v17 }
  0xf1   : > { %v627_v24 = vpack.c.bf16 %v407_v22, %v406_v19  ;;  %397 = vst [vmem:[%s299_s15] sm:$0xff] %v635_v23 }
  0xf3   : > { %628 = vst.sshfl [vmem:[%s309_s22] sm:$0x33 pattern:$0x76325410] %v627_v24 }
  0xf4 PF: > { %s16_s20 = sadd.s32 1, %s688_s20   ;;  %s781_s18 = smov %s684_s19 }
  0xf5   : > { %p13_p5 = scmp.ge.s32.totalorder %s16_s20, 4   ;;  %s782_s19 = smov %s784_s21 }
  0xf7   :  { %15 = sbr.rel (!%p13_p5) target bundleno = 2 (0x2), region = 86 }

// kernel: reverse.1
= control target key start
LH: loop header
LB: loop body
LE: loop exit
PB: predicated region body
PF: predicated region fallthrough
CT: control target
= control target key end

     0   :  { %v79_v8 = vld [vmem:[#allocation1 + $0x38] sm:$0xf]  ;;  %v89_v9 = vld [vmem:[#allocation1 + $0x30] sm:$0xf]  ;;  %v99_v10 = vld [vmem:[#allocation1 + $0x28] sm:$0xf]  ;;  %v156_v12 = vlaneseq  ;;  %s487_s0 = inlined_call_operand.vmem [shape: f32[2,4,8,3], index: 0, kind: input, shape index: {}]   ;;  %s488_s1 = inlined_call_operand.vmem [shape: f32[2,4,8,3], index: 1, kind: output, shape index: {}]  }
   0x1   :  { %v18_v0 = vld [vmem:[%s487_s0] sm:$0xf]  ;;  %v20_v1 = vld [vmem:[%s487_s0 + $0x4] sm:$0xf]  ;;  %v22_v2 = vld [vmem:[%s487_s0 + $0x8] sm:$0xf] }
   0x2   :  { %19 = vst [vmem:[#allocation1 + $0x4] sm:$0xf] %v18_v0  ;;  %21 = vst [vmem:[#allocation1 + $0xc] sm:$0xf] %v20_v1  ;;  %v24_v3 = vld [vmem:[%s487_s0 + $0xc] sm:$0xf] }
   0x3   :  { %23 = vst [vmem:[#allocation1 + $0x14] sm:$0xf] %v22_v2  ;;  %v26_v4 = vld [vmem:[%s487_s0 + $0x10] sm:$0xf]  ;;  %v28_v5 = vld [vmem:[%s487_s0 + $0x14] sm:$0xf] }
   0x4   :  { %25 = vst [vmem:[#allocation1 + $0x1c] sm:$0xf] %v24_v3  ;;  %27 = vst [vmem:[#allocation1 + $0x24] sm:$0xf] %v26_v4  ;;  %v30_v6 = vld [vmem:[%s487_s0 + $0x18] sm:$0xf] }
   0x5   :  { %29 = vst [vmem:[#allocation1 + $0x2c] sm:$0xf] %v28_v5  ;;  %v32_v7 = vld [vmem:[%s487_s0 + $0x1c] sm:$0xf]  ;;  %31 = vst [vmem:[#allocation1 + $0x34] sm:$0xf] %v30_v6 }
   0x6   :  { %33 = vst [vmem:[#allocation1 + $0x3c] sm:$0xf] %v32_v7  ;;  %81 = vst [vmem:[#allocation0 + $0x70] sm:$0xf] %v79_v8  ;;  %v109_v11 = vld [vmem:[#allocation1 + $0x20] sm:$0xf] }
   0x7   :  { %91 = vst [vmem:[#allocation0 + $0x60] sm:$0xf] %v89_v9  ;;  %101 = vst [vmem:[#allocation0 + $0x50] sm:$0xf] %v99_v10  ;;  %v119_v13 = vld [vmem:[#allocation1 + $0x18] sm:$0xf] }
   0x8   :  { %111 = vst [vmem:[#allocation0 + $0x40] sm:$0xf] %v109_v11  ;;  %v129_v14 = vld [vmem:[#allocation1 + $0x10] sm:$0xf]  ;;  %v139_v15 = vld [vmem:[#allocation1 + $0x8] sm:$0xf] }
   0x9   :  { %121 = vst [vmem:[#allocation0 + $0x30] sm:$0xf] %v119_v13  ;;  %131 = vst [vmem:[#allocation0 + $0x20] sm:$0xf] %v129_v14  ;;  %v146_v16 = vld [vmem:[#allocation1] sm:$0xf] }
   0xa   :  { %141 = vst [vmem:[#allocation0 + $0x10] sm:$0xf] %v139_v15  ;;  %147 = vst [vmem:[#allocation0] sm:$0xf] %v146_v16  ;;  %v456_v17 = vshrl.u32 %v156_v12, 7 }
   0xb   :  { %v124_v18 = vld [vmem:[#allocation1 + $0x14] sm:$0xf]  ;;  %v134_v19 = vld [vmem:[#allocation1 + $0xc] sm:$0xf]  ;;  %v143_v20 = vld [vmem:[#allocation1 + $0x4] sm:$0xf] }
   0xc   :  { %v94_v21 = vld [vmem:[#allocation1 + $0x2c] sm:$0xf]  ;;  %v104_v22 = vld [vmem:[#allocation1 + $0x24] sm:$0xf]  ;;  %v114_v23 = vld [vmem:[#allocation1 + $0x1c] sm:$0xf] }
   0xd   :  { %126 = vst [vmem:[#allocation0 + $0x28] sm:$0xf] %v124_v18  ;;  %136 = vst [vmem:[#allocation0 + $0x18] sm:$0xf] %v134_v19  ;;  %v74_v24 = vld [vmem:[#allocation1 + $0x3c] sm:$0xf] }
   0xe   :  { %145 = vst [vmem:[#allocation0 + $0x8] sm:$0xf] %v143_v20  ;;  %v84_v25 = vld [vmem:[#allocation1 + $0x34] sm:$0xf]  ;;  %96 = vst [vmem:[#allocation0 + $0x58] sm:$0xf] %v94_v21 }
   0xf   :  { %106 = vst [vmem:[#allocation0 + $0x48] sm:$0xf] %v104_v22  ;;  %116 = vst [vmem:[#allocation0 + $0x38] sm:$0xf] %v114_v23  ;;  %v247_v26 = vld [vmem:[#allocation0 + $0x77] ss:$-1 sm:$0xff] }
  0x10   :  { %76 = vst [vmem:[#allocation0 + $0x78] sm:$0xf] %v74_v24  ;;  %86 = vst [vmem:[#allocation0 + $0x68] sm:$0xf] %v84_v25  ;;  %v205_v27 = vld [vmem:[#allocation0 + $0x47] ss:$-1 sm:$0xff] }
  0x11   :  { %v219_v28 = vld [vmem:[#allocation0 + $0x57] ss:$-1 sm:$0xff]  ;;  %v233_v29 = vld [vmem:[#allocation0 + $0x67] ss:$-1 sm:$0xff]  ;;  %v206_v37 = vrot.slane %v205_v27, 5  ;;  %v248_v41 = vrot.slane %v247_v26, 5 }
  0x12   :  { %v163_v30 = vld [vmem:[#allocation0 + $0x17] ss:$-1 sm:$0xff]  ;;  %v177_v31 = vld [vmem:[#allocation0 + $0x27] ss:$-1 sm:$0xff]  ;;  %v220_v39 = vrot.slane %v219_v28, 5  ;;  %v234_v40 = vrot.slane %v233_v29, 5 }
  0x13   :  { %v191_v32 = vld [vmem:[#allocation0 + $0x37] ss:$-1 sm:$0xff]  ;;  %v149_v33 = vld [vmem:[#allocation0 + $0x7] ss:$-1 sm:$0xff]  ;;  %v164_v34 = vrot.slane %v163_v30, 5  ;;  %v178_v35 = vrot.slane %v177_v31, 5 }
  0x14   :  { %v192_v36 = vrot.slane %v191_v32, 5  ;;  %v150_v38 = vrot.slane %v149_v33, 5  ;;  %vm158_vm0 = vcmp.lt.s32.totalorder %v456_v17, 3  ;;  %207 = vst [vmem:[#allocation2 + $0x20] sm:$0xff] %v206_v37  ;;  %v168_v43 = vld [vmem:[#allocation0 + $0x1f] ss:$-1 sm:$0xff] }
  0x15   :  { %165 = vst [vmem:[#allocation2 + $0x8] sm:$0xff] %v164_v34  ;;  %179 = vst [vmem:[#allocation2 + $0x10] sm:$0xff] %v178_v35  ;;  %v154_v42 = vld [vmem:[#allocation0 + $0xf] ss:$-1 sm:$0xff]  ;;  %v169_v46 = vrot.slane %v168_v43, 5 }
  0x16   :  { %193 = vst [vmem:[#allocation2 + $0x18] sm:$0xff] %v192_v36  ;;  %151 = vst [vmem:[#allocation2] sm:$0xff] %v150_v38  ;;  %v182_v44 = vld [vmem:[#allocation0 + $0x2f] ss:$-1 sm:$0xff]  ;;  %v155_v45 = vrot.slane %v154_v42, 5 }
  0x17   :  { %221 = vst [vmem:[#allocation2 + $0x28] sm:$0xff] %v220_v39  ;;  %235 = vst [vmem:[#allocation2 + $0x30] sm:$0xff] %v234_v40  ;;  %v183_v47 = vrot.slane %v182_v44, 5  ;;  %v196_v48 = vld [vmem:[#allocation0 + $0x3f] ss:$-1 sm:$0xff] }
  0x18   :  { %249 = vst [vmem:[#allocation2 + $0x38] sm:$0xff] %v248_v41  ;;  %v197_v49 = vrot.slane %v196_v48, 5  ;;  %v210_v50 = vld [vmem:[#allocation0 + $0x4f] ss:$-1 sm:$0xff]  ;;  %v224_v51 = vld [vmem:[#allocation0 + $0x5f] ss:$-1 sm:$0xff] }
  0x19   :  { %159 = vst.msk [vmem:[#allocation2] sm:$0xff] %vm158_vm0, %v155_v45  ;;  %173 = vst.msk [vmem:[#allocation2 + $0x8] sm:$0xff] %vm158_vm0, %v169_v46  ;;  %v211_v52 = vrot.slane %v210_v50, 5  ;;  %v225_v53 = vrot.slane %v224_v51, 5  ;;  %v238_v54 = vld [vmem:[#allocation0 + $0x6f] ss:$-1 sm:$0xff] }
  0x1a   :  { %187 = vst.msk [vmem:[#allocation2 + $0x10] sm:$0xff] %vm158_vm0, %v183_v47  ;;  %v252_v55 = vld [vmem:[#allocation0 + $0x7f] ss:$-1 sm:$0xff]  ;;  %201 = vst.msk [vmem:[#allocation2 + $0x18] sm:$0xff] %vm158_vm0, %v197_v49  ;;  %v239_v56 = vrot.slane %v238_v54, 5 }
  0x1b   :  { %v253_v57 = vrot.slane %v252_v55, 5  ;;  %215 = vst.msk [vmem:[#allocation2 + $0x20] sm:$0xff] %vm158_vm0, %v211_v52  ;;  %229 = vst.msk [vmem:[#allocation2 + $0x28] sm:$0xff] %vm158_vm0, %v225_v53 }
  0x1c   :  { %243 = vst.msk [vmem:[#allocation2 + $0x30] sm:$0xff] %vm158_vm0, %v239_v56 }
  0x1d   :  { %257 = vst.msk [vmem:[#allocation2 + $0x38] sm:$0xff] %vm158_vm0, %v253_v57 }
  0x20   :  { %v261_v58 = vld [vmem:[#allocation2] sm:$0xf]  ;;  %v265_v59 = vld [vmem:[#allocation2 + $0x8] sm:$0xf] }
  0x21   :  { %v270_v60 = vld [vmem:[#allocation2 + $0x10] sm:$0xf]  ;;  %263 = vst [vmem:[#allocation3] sm:$0xf] %v261_v58  ;;  %268 = vst [vmem:[#allocation3 + $0x4] sm:$0xf] %v265_v59 }
  0x22   :  { %274 = vst [vmem:[#allocation3 + $0x8] sm:$0xf] %v270_v60  ;;  %v276_v61 = vld [vmem:[#allocation2 + $0x18] sm:$0xf]  ;;  %v282_v62 = vld [vmem:[#allocation2 + $0x20] sm:$0xf] }
  0x23   :  { %280 = vst [vmem:[#allocation3 + $0xc] sm:$0xf] %v276_v61  ;;  %v288_v63 = vld [vmem:[#allocation2 + $0x28] sm:$0xf]  ;;  %286 = vst [vmem:[#allocation3 + $0x10] sm:$0xf] %v282_v62 }
  0x24   :  { %292 = vst [vmem:[#allocation3 + $0x14] sm:$0xf] %v288_v63  ;;  %v294_v0 = vld [vmem:[#allocation2 + $0x30] sm:$0xf]  ;;  %v300_v1 = vld [vmem:[#allocation2 + $0x38] sm:$0xf] }
  0x25   :  { %298 = vst [vmem:[#allocation3 + $0x18] sm:$0xf] %v294_v0  ;;  %304 = vst [vmem:[#allocation3 + $0x1c] sm:$0xf] %v300_v1 }
  0x28   :  { %v320_v2 = vld [vmem:[#allocation3] sm:$0xff]  }
  0x29   :  { %321 = vst [vmem:[%s488_s1] sm:$0xff] %v320_v2  }
  0x2a   :  { %v324_v3 = vld [vmem:[#allocation3 + $0x8] sm:$0xff]  }
  0x2b   :  { %325 = vst [vmem:[%s488_s1 + $0x8] sm:$0xff] %v324_v3   ;;  %v328_v4 = vld [vmem:[#allocation3 + $0x10] sm:$0xff]  }
  0x2c   :  { %329 = vst [vmem:[%s488_s1 + $0x10] sm:$0xff] %v328_v4   ;;  %v332_v5 = vld [vmem:[#allocation3 + $0x18] sm:$0xff]  }
  0x2d   :  { %333 = vst [vmem:[%s488_s1 + $0x18] sm:$0xff] %v332_v5  }

// kernel: ffc_forward.6
= control target key start
LH: loop header
LB: loop body
LE: loop exit
PB: predicated region body
PF: predicated region fallthrough
CT: control target
= control target key end

     0   :  { %s697_s21 = smov 0   ;;  %s699_s22 = smov 0   ;;  %s751_s0 = inlined_call_operand.vmem [shape: bf16[8,4], index: 0, kind: input, shape index: {}]   ;;  %s752_s1 = inlined_call_operand.vmem [shape: bf16[8,4], index: 1, kind: input, shape index: {}]   ;;  %s753_s2 = inlined_call_operand.vmem [shape: f32[8,1], index: 2, kind: input, shape index: {}]   ;;  %s754_s3 = inlined_call_operand.vmem [shape: bf16[2,4,40], index: 3, kind: input, shape index: {}]   ;;  %s755_s4 = inlined_call_operand.vmem [shape: bf16[2,4,40], index: 4, kind: input, shape index: {}]   ;;  %s756_s5 = inlined_call_operand.vmem [shape: bf16[2,4,40], index: 5, kind: output, shape index: {0}]   ;;  %s757_s6 = inlined_call_operand.vmem [shape: bf16[2,4,40], index: 6, kind: output, shape index: {1}]  }
   0x1   :  { %s701_s23 = smov 0  }
   0x2 LB: > { %s29_s24 = sadd.s32 1, %s652_s22  ;;  %p580_p0 = scmp.ge.s32.totalorder %s656_s23, 1  ;;  %s656_s23 = sphi %s701_s23, %s17_s23   ;;  %s652_s22 = sphi %s699_s22, %s759_s22   ;;  %s648_s21 = sphi %s697_s21, %s758_s21  }
   0x3   : > { %p31_p1 = scmp.ge.s32.totalorder %s29_s24, 2  ;;  %p249_p2 = scmp.lt.s32.totalorder %s656_s23, 3 }
   0x5   : > { %s761_s24 = smov (%p31_p1, %s29_s24), 0  ;;  %p250_p3 = pnand %p580_p0, %p249_p2 }
   0x6   : > { %p297_p4 = scmp.lt.s32.totalorder (!%p250_p3), %s648_s21, 1  ;;  %v658_v0 = vmov (!%p250_p3), 0.0   ;;  %v424_v1 = vld [vmem:[%s753_s2] sm:$0xff] (!%p250_p3)  ;;  %vm659_vm0 = vmmov (!%p250_p3), 0   ;;  %v660_v2 = vmov (!%p250_p3), 0   ;;  %vm334_vm1 = vcmask (!%p250_p3), 1041408  }
   0x7   : > { %253 = sbr.rel (%p250_p3) target bundleno = 248 (0xf8), region = 40  ;;  %593 = vmatprep.subr.bf16.mxu0 (!%p250_p3), %v658_v0  ;;  %599 = vmatprep.subr.bf16.mxu1 (!%p250_p3), %v658_v0  ;;  %v328_v7 = vld [vmem:[%s752_s1] sm:$0xf] (!%p250_p3)  ;;  %vm330_vm2 = vcmask (!%p250_p3), 31744   ;;  %v661_v9 = vmov (!%p250_p3), 1983009808   ;;  %v439_v11 = vlaneseq (!%p250_p3) }
   0x8   : > { %595 = vmatprep.mubr.msk.bf16.mxu0 (!%p250_p3), %vm659_vm0, %v658_v0  ;;  %601 = vmatprep.mubr.msk.bf16.mxu1 (!%p250_p3), %vm659_vm0, %v658_v0  ;;  %v326_v8 = vld [vmem:[%s751_s0] sm:$0xf] (!%p250_p3)  ;;  %v437_v10 = vunpack.c.l.s4 (!%p250_p3), %v661_v9  ;;  %vm433_vm3 = vcmask (!%p250_p3), 320512  }
   0x9   : > { %633 = vset.pattern.permute.xlu0 (!%p250_p3), %v660_v2  ;;  %v440_v19 = vshrl.u32 (!%p250_p3), %v439_v11, 7 }
   0xa   : > { %427 = vperm.xlu0 (!%p250_p3), %633, %v424_v1   ;;  %v438_v18 = vunpack.c.0.s8 (!%p250_p3), %v437_v10 }
   0xc   : > { %v441_v25 = vsub.s32 (!%p250_p3), %v438_v18, %v440_v19 }
   0xe   : > { %s763_s21 = smov (!%p297_p4, %s648_s21), 1 }
   0xf   : > { %s718_s27 = sshll.u32 %s763_s21, 1 }
  0x10   : > { %s310_s30 = scalar_lea.vmem %s755_s4, %s718_s27  ;;  %s303_s9 = scalar_lea.vmem %s754_s3, %s718_s27 }
  0x11   : > { %v329_v3 = vld [vmem:[%s310_s30] sm:$0x3]  ;;  %s317_s16 = scalar_lea.vmem %s756_s5, %s718_s27  ;;  %s324_s19 = scalar_lea.vmem %s757_s6, %s718_s27 }
  0x12   : > { %v336_v4 = vsel %vm334_vm1, %v329_v3, 0  ;;  %v327_v5 = vld [vmem:[%s303_s9] sm:$0x3] }
  0x13   : > { %594 = vmatpush3.bf16.msra.mxu0 %v336_v4  ;;  %v382_v6 = vsel %vm334_vm1, %v327_v5, 0 }
  0x14   : > { %600 = vmatpush3.bf16.msra.mxu1 %v382_v6 }
  0x16   : > { %596 = vmatmul.mubr.msk.bf16.vlgmr.msra.gmra.mrb[0].mxu0 %vm330_vm2, %v328_v7 }
  0x17   : > { %602 = vmatmul.mubr.msk.bf16.vlgmr.msra.gmra.mrb[0].mxu1 %vm330_vm2, %v326_v8 }
  0x89   : > { %v428_v13 = vpop.permute.xlu0 %427 }
  0xe9   : > { %v372_v12 = vpop.f32.mrb[0].mxu0 }
  0xea   : > { %v418_v14 = vpop.f32.mrb[0].mxu1  ;;  %v597_v15 = vpop.f32.mrb[1].mxu0 }
  0xeb   : > { %v419_v16 = vadd.f32 %v418_v14, %v372_v12  ;;  %v603_v17 = vpop.f32.mrb[1].mxu1  ;;  %v375_v20 = vpop.f32.mrb[2].mxu0 }
  0xec   : > { %v421_v21 = vpop.f32.mrb[2].mxu1  ;;  %v598_v22 = vpop.f32.mrb[3].mxu0 }
  0xed   : > { %v430_v23 = vadd.f32 %v428_v13, %v419_v16  ;;  %v604_v24 = vpop.f32.mrb[3].mxu1 }
  0xef   : > { %v431_v26 = vmax.f32 %v430_v23, 0.0 }
  0xf1   : > { %v432_v27 = vpack.c.bf16 %v431_v26, %v431_v26 }
  0xf3   : > { %434 = vst.msk [vmem:[%s317_s16] sm:$0x3] %vm433_vm3, %v432_v27  ;;  %v442_v28 = vrot.slane %v432_v27, %v441_v25 }
  0xf5   : > { %v443_v29 = vcombine.high %v442_v28, %v442_v28 }
  0xf7   : > { %445 = vst.msk [vmem:[%s324_s19] sm:$0x3] %vm433_vm3, %v443_v29 }
  0xf8 PF: > { %s17_s23 = sadd.s32 1, %s656_s23   ;;  %s758_s21 = smov %s652_s22 }
  0xf9   : > { %p14_p5 = scmp.ge.s32.totalorder %s17_s23, 4   ;;  %s759_s22 = smov %s761_s24 }
  0xfb   :  { %16 = sbr.rel (!%p14_p5) target bundleno = 2 (0x2), region = 85 }

// kernel: tile.9
= control target key start
LH: loop header
LB: loop body
LE: loop exit
PB: predicated region body
PF: predicated region fallthrough
CT: control target
= control target key end

     0   :  { %vm2052_vm0 = vcmask 1041409   ;;  %vm2056_vm1 = vcmask 1042434   ;;  %vm2060_vm2 = vcmask 1043459   ;;  %vm2064_vm3 = vcmask 1044484   ;;  %s3597_s12 = smov 120   ;;  %s3598_s13 = smov 112   ;;  %s4257_s0 = inlined_call_operand.vmem [shape: bf16[2,4,2,8,2,8], index: 0, kind: input, shape index: {}]   ;;  %s4258_s1 = inlined_call_operand.vmem [shape: bf16[2,4,256], index: 1, kind: output, shape index: {}]  }
   0x1   :  { %v3376_v0 = vld [vmem:[%s4257_s0 + $0x7f] sm:$0x1]  ;;  %v3384_v1 = vld [vmem:[%s4257_s0 + $0x77] sm:$0x1]  ;;  %v3392_v2 = vld [vmem:[%s4257_s0 + $0x6f] sm:$0x1] }
   0x2   :  { %v17_v3 = vunpack.c.l.bf16 %v3376_v0  ;;  %v145_v4 = vunpack.c.l.bf16 %v3384_v1  ;;  %v273_v5 = vunpack.c.l.bf16 %v3392_v2  ;;  %v3400_v6 = vld [vmem:[%s4257_s0 + $0x67] sm:$0x1]  ;;  %v3408_v7 = vld [vmem:[%s4257_s0 + $0x5f] sm:$0x1]  ;;  %v3416_v8 = vld [vmem:[%s4257_s0 + $0x57] sm:$0x1] }
   0x3   :  { %v401_v9 = vunpack.c.l.bf16 %v3400_v6  ;;  %v529_v10 = vunpack.c.l.bf16 %v3408_v7  ;;  %v657_v11 = vunpack.c.l.bf16 %v3416_v8  ;;  %v3424_v12 = vld [vmem:[%s4257_s0 + $0x4f] sm:$0x1]  ;;  %v3432_v13 = vld [vmem:[%s4257_s0 + $0x47] sm:$0x1]  ;;  %v3440_v14 = vld [vmem:[%s4257_s0 + $0x3f] sm:$0x1] }
   0x4   :  { %20 = vst [vmem:[#allocation1 + $0x3f8] sm:$0x3] %v17_v3  ;;  %148 = vst [vmem:[#allocation1 + $0x3b8] sm:$0x3] %v145_v4  ;;  %v785_v15 = vunpack.c.l.bf16 %v3424_v12  ;;  %v913_v16 = vunpack.c.l.bf16 %v3432_v13  ;;  %v1041_v17 = vunpack.c.l.bf16 %v3440_v14  ;;  %v3448_v18 = vld [vmem:[%s4257_s0 + $0x37] sm:$0x1] }
   0x5   :  { %276 = vst [vmem:[#allocation1 + $0x378] sm:$0x3] %v273_v5  ;;  %v3456_v19 = vld [vmem:[%s4257_s0 + $0x2f] sm:$0x1]  ;;  %v3464_v20 = vld [vmem:[%s4257_s0 + $0x27] sm:$0x1]  ;;  %v1169_v21 = vunpack.c.l.bf16 %v3448_v18 }
   0x6   :  { %404 = vst [vmem:[#allocation1 + $0x338] sm:$0x3] %v401_v9  ;;  %532 = vst [vmem:[#allocation1 + $0x2f8] sm:$0x3] %v529_v10  ;;  %v1297_v22 = vunpack.c.l.bf16 %v3456_v19  ;;  %v1425_v23 = vunpack.c.l.bf16 %v3464_v20  ;;  %v3472_v24 = vld [vmem:[%s4257_s0 + $0x1f] sm:$0x1] }
   0x7   :  { %660 = vst [vmem:[#allocation1 + $0x2b8] sm:$0x3] %v657_v11  ;;  %v3480_v25 = vld [vmem:[%s4257_s0 + $0x17] sm:$0x1]  ;;  %v3488_v26 = vld [vmem:[%s4257_s0 + $0xf] sm:$0x1]  ;;  %v1553_v27 = vunpack.c.l.bf16 %v3472_v24 }
   0x8   :  { %788 = vst [vmem:[#allocation1 + $0x278] sm:$0x3] %v785_v15  ;;  %916 = vst [vmem:[#allocation1 + $0x238] sm:$0x3] %v913_v16  ;;  %v1681_v28 = vunpack.c.l.bf16 %v3480_v25  ;;  %v1809_v29 = vunpack.c.l.bf16 %v3488_v26  ;;  %v3496_v30 = vld [vmem:[%s4257_s0 + $0x7] sm:$0x1] }
   0x9   :  { %1044 = vst [vmem:[#allocation1 + $0x1f8] sm:$0x3] %v1041_v17  ;;  %v3377_v31 = vld [vmem:[%s4257_s0 + $0x7e] sm:$0x1]  ;;  %1172 = vst [vmem:[#allocation1 + $0x1b8] sm:$0x3] %v1169_v21  ;;  %v1937_v32 = vunpack.c.l.bf16 %v3496_v30 }
   0xa   :  { %1300 = vst [vmem:[#allocation1 + $0x178] sm:$0x3] %v1297_v22  ;;  %1428 = vst [vmem:[#allocation1 + $0x138] sm:$0x3] %v1425_v23  ;;  %v3385_v33 = vld [vmem:[%s4257_s0 + $0x76] sm:$0x1]  ;;  %v33_v34 = vunpack.c.l.bf16 %v3377_v31 }
   0xb   :  { %1556 = vst [vmem:[#allocation1 + $0xf8] sm:$0x3] %v1553_v27  ;;  %1684 = vst [vmem:[#allocation1 + $0xb8] sm:$0x3] %v1681_v28  ;;  %v3393_v35 = vld [vmem:[%s4257_s0 + $0x6e] sm:$0x1]  ;;  %v161_v36 = vunpack.c.l.bf16 %v3385_v33 }
   0xc   :  { %1812 = vst [vmem:[#allocation1 + $0x78] sm:$0x3] %v1809_v29  ;;  %1940 = vst [vmem:[#allocation1 + $0x38] sm:$0x3] %v1937_v32  ;;  %v289_v37 = vunpack.c.l.bf16 %v3393_v35  ;;  %v3401_v38 = vld [vmem:[%s4257_s0 + $0x66] sm:$0x1] }
   0xd   :  { %v3409_v39 = vld [vmem:[%s4257_s0 + $0x5e] sm:$0x1]  ;;  %v3417_v40 = vld [vmem:[%s4257_s0 + $0x56] sm:$0x1]  ;;  %36 = vst [vmem:[#allocation1 + $0x3f0] sm:$0x3] %v33_v34  ;;  %v417_v41 = vunpack.c.l.bf16 %v3401_v38 }
   0xe   :  { %v545_v42 = vunpack.c.l.bf16 %v3409_v39  ;;  %v673_v43 = vunpack.c.l.bf16 %v3417_v40  ;;  %v3425_v44 = vld [vmem:[%s4257_s0 + $0x4e] sm:$0x1]  ;;  %v3433_v45 = vld [vmem:[%s4257_s0 + $0x46] sm:$0x1]  ;;  %v3441_v46 = vld [vmem:[%s4257_s0 + $0x3e] sm:$0x1] }
   0xf   :  { %164 = vst [vmem:[#allocation1 + $0x3b0] sm:$0x3] %v161_v36  ;;  %292 = vst [vmem:[#allocation1 + $0x370] sm:$0x3] %v289_v37  ;;  %v801_v47 = vunpack.c.l.bf16 %v3425_v44  ;;  %v929_v48 = vunpack.c.l.bf16 %v3433_v45  ;;  %v1057_v49 = vunpack.c.l.bf16 %v3441_v46  ;;  %vm2068_vm4 = vcmask 1045509   ;;  %s3599_s9 = smov 104  }
  0x10   :  { %v2164_v50 = vld [vmem:[#allocation1 + $0x2b8] sm:$0x2]   ;;  %420 = vst [vmem:[#allocation1 + $0x330] sm:$0x3] %v417_v41  ;;  %548 = vst [vmem:[#allocation1 + $0x2f0] sm:$0x3] %v545_v42 }
  0x11   :  { %v2168_v51 = vld [vmem:[#allocation1 + $0x337] sm:$0x4]   ;;  %676 = vst [vmem:[#allocation1 + $0x2b0] sm:$0x3] %v673_v43  ;;  %vm2072_vm5 = vcmask 1046534   ;;  %vm2076_vm6 = vcmask 1047559  }
  0x12   :  { %v2162_v52 = vld [vmem:[#allocation1 + $0x239] sm:$0x1]   ;;  %804 = vst [vmem:[#allocation1 + $0x270] sm:$0x3] %v801_v47  ;;  %932 = vst [vmem:[#allocation1 + $0x230] sm:$0x3] %v929_v48 }
  0x13   :  { %v2172_v53 = vld [vmem:[#allocation1 + $0x3b6] sm:$0x8]   ;;  %1060 = vst [vmem:[#allocation1 + $0x1f0] sm:$0x3] %v1057_v49  ;;  %v2166_v55 = vsel %vm2052_vm0, %v2164_v50, %v2162_v52  ;;  %v3449_v2 = vld [vmem:[%s4257_s0 + $0x36] sm:$0x1] }
  0x14   :  { %v2132_v54 = vld [vmem:[#allocation1 + $0x137] sm:$0x4]   ;;  %v2170_v62 = vsel %vm2056_vm1, %v2168_v51, %v2166_v55  ;;  %v3457_v3 = vld [vmem:[%s4257_s0 + $0x2e] sm:$0x1]  ;;  %v1185_v6 = vunpack.c.l.bf16 %v3449_v2  ;;  %v3465_v8 = vld [vmem:[%s4257_s0 + $0x26] sm:$0x1] }
  0x15   :  { %v2176_v56 = vld [vmem:[#allocation1 + $0x275] sm:$0x10]   ;;  %v2174_v0 = vsel %vm2060_vm2, %v2172_v53, %v2170_v62  ;;  %v1313_v7 = vunpack.c.l.bf16 %v3457_v3  ;;  %v3473_v9 = vld [vmem:[%s4257_s0 + $0x1e] sm:$0x1]  ;;  %v3481_v10 = vld [vmem:[%s4257_s0 + $0x16] sm:$0x1]  ;;  %v1441_v14 = vunpack.c.l.bf16 %v3465_v8 }
  0x16   :  { %v2180_v57 = vld [vmem:[#allocation1 + $0x2f4] sm:$0x20]   ;;  %v2178_v5 = vsel %vm2064_vm3, %v2176_v56, %v2174_v0  ;;  %v1569_v15 = vunpack.c.l.bf16 %v3473_v9  ;;  %v3489_v16 = vld [vmem:[%s4257_s0 + $0xe] sm:$0x1]  ;;  %v3497_v17 = vld [vmem:[%s4257_s0 + $0x6] sm:$0x1]  ;;  %v1697_v21 = vunpack.c.l.bf16 %v3481_v10 }
  0x17   :  { %v2184_v58 = vld [vmem:[#allocation1 + $0x373] sm:$0x40]   ;;  %v2182_v13 = vsel %vm2068_vm4, %v2180_v57, %v2178_v5  ;;  %1188 = vst [vmem:[#allocation1 + $0x1b0] sm:$0x3] %v1185_v6  ;;  %1316 = vst [vmem:[#allocation1 + $0x170] sm:$0x3] %v1313_v7  ;;  %v1825_v22 = vunpack.c.l.bf16 %v3489_v16  ;;  %v1953_v27 = vunpack.c.l.bf16 %v3497_v17 }
  0x18   :  { %v2128_v59 = vld [vmem:[#allocation1 + $0xb8] sm:$0x2]   ;;  %v2186_v20 = vsel %vm2072_vm5, %v2184_v58, %v2182_v13  ;;  %v2310_v23 = vld [vmem:[#allocation1 + $0x2b0] sm:$0x2]   ;;  %1444 = vst [vmem:[#allocation1 + $0x130] sm:$0x3] %v1441_v14 }
  0x19   :  { %v2136_v60 = vld [vmem:[#allocation1 + $0x1b6] sm:$0x8]   ;;  %v2314_v24 = vld [vmem:[#allocation1 + $0x32f] sm:$0x4]   ;;  %1572 = vst [vmem:[#allocation1 + $0xf0] sm:$0x3] %v1569_v15 }
  0x1a   :  { %v2140_v61 = vld [vmem:[#allocation1 + $0x75] sm:$0x10]   ;;  %v2308_v28 = vld [vmem:[#allocation1 + $0x231] sm:$0x1]   ;;  %1700 = vst [vmem:[#allocation1 + $0xb0] sm:$0x3] %v1697_v21 }
  0x1b   :  { %v2126_v63 = vld [vmem:[#allocation1 + $0x39] sm:$0x1]   ;;  %v2318_v29 = vld [vmem:[#allocation1 + $0x3ae] sm:$0x8]   ;;  %1828 = vst [vmem:[#allocation1 + $0x70] sm:$0x3] %v1825_v22  ;;  %v2312_v32 = vsel %vm2052_vm0, %v2310_v23, %v2308_v28 }
  0x1c   :  { %v2188_v1 = vld [vmem:[#allocation1 + $0x3f2] sm:$0x80]   ;;  %v2130_v4 = vsel %vm2052_vm0, %v2128_v59, %v2126_v63  ;;  %v2322_v33 = vld [vmem:[#allocation1 + $0x26d] sm:$0x10]   ;;  %v2199_v34 = vld [vmem:[#allocation1 + $0x38] sm:$0x1]   ;;  %v2316_v36 = vsel %vm2056_vm1, %v2314_v24, %v2312_v32 }
  0x1d   :  { %v2134_v11 = vsel %vm2056_vm1, %v2132_v54, %v2130_v4  ;;  %v2144_v12 = vld [vmem:[#allocation1 + $0xf4] sm:$0x20]   ;;  %v2190_v31 = vsel %vm2076_vm6, %v2188_v1, %v2186_v20  ;;  %1956 = vst [vmem:[#allocation1 + $0x30] sm:$0x3] %v1953_v27  ;;  %v2201_v37 = vld [vmem:[#allocation1 + $0xb7] sm:$0x2]   ;;  %v2320_v41 = vsel %vm2060_vm2, %v2318_v29, %v2316_v36 }
  0x1e   :  { %v2138_v18 = vsel %vm2060_vm2, %v2136_v60, %v2134_v11  ;;  %v2148_v19 = vld [vmem:[#allocation1 + $0x173] sm:$0x40]   ;;  %v2205_v38 = vld [vmem:[#allocation1 + $0x136] sm:$0x4]   ;;  %v2326_v42 = vld [vmem:[#allocation1 + $0x2ec] sm:$0x20]   ;;  %v2203_v43 = vsel %vm2052_vm0, %v2201_v37, %v2199_v34  ;;  %v2324_v51 = vsel %vm2064_vm3, %v2322_v33, %v2320_v41 }
  0x1f   :  { %v2142_v25 = vsel %vm2064_vm3, %v2140_v61, %v2138_v18  ;;  %v2152_v26 = vld [vmem:[#allocation1 + $0x1f2] sm:$0x80]   ;;  %v2209_v39 = vld [vmem:[#allocation1 + $0x1b5] sm:$0x8]   ;;  %v2207_v47 = vsel %vm2056_vm1, %v2205_v38, %v2203_v43  ;;  %v2330_v57 = vld [vmem:[#allocation1 + $0x36b] sm:$0x40]   ;;  %v2328_v5 = vsel %vm2068_vm4, %v2326_v42, %v2324_v51 }
  0x20   :  { %v2146_v30 = vsel %vm2068_vm4, %v2144_v12, %v2142_v25  ;;  %v2213_v44 = vld [vmem:[#allocation1 + $0x74] sm:$0x10]   ;;  %v2211_v52 = vsel %vm2060_vm2, %v2209_v39, %v2207_v47  ;;  %v2278_v62 = vld [vmem:[#allocation1 + $0x12f] sm:$0x4]   ;;  %v2355_v20 = vld [vmem:[#allocation1 + $0x1ad] sm:$0x8]   ;;  %v2332_v25 = vsel %vm2072_vm5, %v2330_v57, %v2328_v5 }
  0x21   :  { %v2150_v35 = vsel %vm2072_vm5, %v2148_v19, %v2146_v30  ;;  %v2217_v45 = vld [vmem:[#allocation1 + $0xf3] sm:$0x20]   ;;  %v2215_v58 = vsel %vm2064_vm3, %v2213_v44, %v2211_v52  ;;  %v2282_v63 = vld [vmem:[#allocation1 + $0x1ae] sm:$0x8]   ;;  %v2347_v14 = vld [vmem:[#allocation1 + $0xaf] sm:$0x2]  }
  0x22   :  { %v2154_v40 = vsel %vm2076_vm6, %v2152_v26, %v2150_v35  ;;  %v2221_v48 = vld [vmem:[#allocation1 + $0x172] sm:$0x40]   ;;  %v2219_v0 = vsel %vm2068_vm4, %v2217_v45, %v2215_v58  ;;  %v2274_v3 = vld [vmem:[#allocation1 + $0xb0] sm:$0x2]   ;;  %v2351_v19 = vld [vmem:[#allocation1 + $0x12e] sm:$0x4]  }
  0x23   :  { %v3522_v46 = vpack.i.bf16 %v2190_v31, %v2154_v40  ;;  %v2235_v49 = vld [vmem:[#allocation1 + $0x238] sm:$0x1]   ;;  %v2286_v4 = vld [vmem:[#allocation1 + $0x6d] sm:$0x10]   ;;  %v2223_v6 = vsel %vm2072_vm5, %v2221_v48, %v2219_v0  ;;  %v2359_v21 = vld [vmem:[#allocation1 + $0x6c] sm:$0x10]  }
  0x24   :  { %v2237_v50 = vld [vmem:[#allocation1 + $0x2b7] sm:$0x2]   ;;  %v2272_v9 = vld [vmem:[#allocation1 + $0x31] sm:$0x1]   ;;  %v2345_v13 = vld [vmem:[#allocation1 + $0x30] sm:$0x1]  }
  0x25   :  { %v2239_v53 = vsel %vm2052_vm0, %v2237_v50, %v2235_v49  ;;  %v2241_v54 = vld [vmem:[#allocation1 + $0x336] sm:$0x4]   ;;  %3523 = vrot.lane.b32.xlu0 %v3522_v46, %s3597_s12  ;;  %v2334_v10 = vld [vmem:[#allocation1 + $0x3ea] sm:$0x80]   ;;  %v2276_v15 = vsel %vm2052_vm0, %v2274_v3, %v2272_v9  ;;  %v2349_v18 = vsel %vm2052_vm0, %v2347_v14, %v2345_v13  ;;  %v2363_v28 = vld [vmem:[#allocation1 + $0xeb] sm:$0x20]  }
  0x26   :  { %v2245_v55 = vld [vmem:[#allocation1 + $0x3b5] sm:$0x8]   ;;  %v2243_v60 = vsel %vm2056_vm1, %v2241_v54, %v2239_v53  ;;  %v2294_v16 = vld [vmem:[#allocation1 + $0x16b] sm:$0x40]   ;;  %v2280_v22 = vsel %vm2056_vm1, %v2278_v62, %v2276_v15  ;;  %v2353_v27 = vsel %vm2056_vm1, %v2351_v19, %v2349_v18  ;;  %v2367_v29 = vld [vmem:[#allocation1 + $0x16a] sm:$0x40]   ;;  %v2336_v43 = vsel %vm2076_vm6, %v2334_v10, %v2332_v25 }
  0x27   :  { %v2249_v56 = vld [vmem:[#allocation1 + $0x274] sm:$0x10]   ;;  %v2247_v1 = vsel %vm2060_vm2, %v2245_v55, %v2243_v60  ;;  %v2290_v23 = vld [vmem:[#allocation1 + $0xec] sm:$0x20]   ;;  %v2284_v30 = vsel %vm2060_vm2, %v2282_v63, %v2280_v22  ;;  %v2357_v32 = vsel %vm2060_vm2, %v2355_v20, %v2353_v27  ;;  %v2371_v33 = vld [vmem:[#allocation1 + $0x1e9] sm:$0x80]  }
  0x28   :  { %v2225_v59 = vld [vmem:[#allocation1 + $0x1f1] sm:$0x80]   ;;  %v2251_v7 = vsel %vm2064_vm3, %v2249_v56, %v2247_v1  ;;  %v2298_v24 = vld [vmem:[#allocation1 + $0x1ea] sm:$0x80]   ;;  %v2381_v34 = vld [vmem:[#allocation1 + $0x230] sm:$0x1]   ;;  %v2288_v36 = vsel %vm2064_vm3, %v2286_v4, %v2284_v30  ;;  %v2361_v37 = vsel %vm2064_vm3, %v2359_v21, %v2357_v32 }
  0x29   :  { %v2253_v61 = vld [vmem:[#allocation1 + $0x2f3] sm:$0x20]   ;;  %v2227_v11 = vsel %vm2076_vm6, %v2225_v59, %v2223_v6  ;;  %v2383_v35 = vld [vmem:[#allocation1 + $0x2af] sm:$0x2]   ;;  %v2292_v42 = vsel %vm2068_vm4, %v2290_v23, %v2288_v36  ;;  %v2365_v44 = vsel %vm2068_vm4, %v2363_v28, %v2361_v37  ;;  %v3378_v52 = vld [vmem:[%s4257_s0 + $0x7d] sm:$0x1] }
  0x2a   :  { %v2257_v2 = vld [vmem:[#allocation1 + $0x372] sm:$0x40]   ;;  %v2255_v12 = vsel %vm2068_vm4, %v2253_v61, %v2251_v7  ;;  %v2385_v38 = vsel %vm2052_vm0, %v2383_v35, %v2381_v34  ;;  %v2387_v39 = vld [vmem:[#allocation1 + $0x32e] sm:$0x4]   ;;  %v2296_v49 = vsel %vm2072_vm5, %v2294_v16, %v2292_v42  ;;  %v2369_v50 = vsel %vm2072_vm5, %v2367_v29, %v2365_v44  ;;  %v3386_v53 = vld [vmem:[%s4257_s0 + $0x75] sm:$0x1] }
  0x2b   :  { %v2261_v8 = vld [vmem:[#allocation1 + $0x3f1] sm:$0x80]   ;;  %v2259_v17 = vsel %vm2072_vm5, %v2257_v2, %v2255_v12  ;;  %v2391_v40 = vld [vmem:[#allocation1 + $0x3ad] sm:$0x8]   ;;  %v2389_v45 = vsel %vm2056_vm1, %v2387_v39, %v2385_v38  ;;  %v3394_v54 = vld [vmem:[%s4257_s0 + $0x6d] sm:$0x1]  ;;  %v2300_v55 = vsel %vm2076_vm6, %v2298_v24, %v2296_v49  ;;  %v2373_v56 = vsel %vm2076_vm6, %v2371_v33, %v2369_v50 }
  0x2c   :  { %v2263_v26 = vsel %vm2076_vm6, %v2261_v8, %v2259_v17  ;;  %v2395_v41 = vld [vmem:[#allocation1 + $0x26c] sm:$0x10]   ;;  %v2393_v51 = vsel %vm2060_vm2, %v2391_v40, %v2389_v45  ;;  %v49_v58 = vunpack.c.l.bf16 %v3378_v52  ;;  %v3402_v59 = vld [vmem:[%s4257_s0 + $0x65] sm:$0x1]  ;;  %v3410_v60 = vld [vmem:[%s4257_s0 + $0x5d] sm:$0x1]  ;;  %v3532_v62 = vpack.i.bf16 %v2336_v43, %v2300_v55 }
  0x2d   :  { %v3527_v31 = vpack.i.bf16 %v2263_v26, %v2227_v11  ;;  %v2399_v46 = vld [vmem:[#allocation1 + $0x2eb] sm:$0x20]   ;;  %v2397_v57 = vsel %vm2064_vm3, %v2395_v41, %v2393_v51  ;;  %v3418_v61 = vld [vmem:[%s4257_s0 + $0x55] sm:$0x1]  ;;  %v177_v0 = vunpack.c.l.bf16 %v3386_v53  ;;  %v305_v1 = vunpack.c.l.bf16 %v3394_v54  ;;  %v3426_v2 = vld [vmem:[%s4257_s0 + $0x4d] sm:$0x1] }
  0x2e   :  { %v2403_v47 = vld [vmem:[#allocation1 + $0x36a] sm:$0x40]   ;;  %v2401_v63 = vsel %vm2068_vm4, %v2399_v46, %v2397_v57  ;;  %v3434_v3 = vld [vmem:[%s4257_s0 + $0x45] sm:$0x1]  ;;  %v3442_v4 = vld [vmem:[%s4257_s0 + $0x3d] sm:$0x1]  ;;  %v433_v6 = vunpack.c.l.bf16 %v3402_v59  ;;  %v561_v7 = vunpack.c.l.bf16 %v3410_v60  ;;  %v689_v8 = vunpack.c.l.bf16 %v3418_v61  ;;  %3533 = vrot.lane.b32.xlu1 %v3532_v62, %s3599_s9 }
  0x2f   :  { %3528 = vrot.lane.b32.xlu0 %v3527_v31, %s3598_s13  ;;  %v2407_v48 = vld [vmem:[#allocation1 + $0x3e9] sm:$0x80]   ;;  %v2405_v5 = vsel %vm2072_vm5, %v2403_v47, %v2401_v63  ;;  %52 = vst [vmem:[#allocation1 + $0x3e8] sm:$0x3] %v49_v58  ;;  %v3450_v9 = vld [vmem:[%s4257_s0 + $0x35] sm:$0x1]  ;;  %v817_v13 = vunpack.c.l.bf16 %v3426_v2  ;;  %v945_v14 = vunpack.c.l.bf16 %v3434_v3  ;;  %v1073_v15 = vunpack.c.l.bf16 %v3442_v4 }
  0x30   :  { %v3458_v10 = vld [vmem:[%s4257_s0 + $0x2d] sm:$0x1]  ;;  %v3466_v11 = vld [vmem:[%s4257_s0 + $0x25] sm:$0x1]  ;;  %v2409_v12 = vsel %vm2076_vm6, %v2407_v48, %v2405_v5  ;;  %180 = vst [vmem:[#allocation1 + $0x3a8] sm:$0x3] %v177_v0  ;;  %v1201_v20 = vunpack.c.l.bf16 %v3450_v9 }
  0x31   :  { %308 = vst [vmem:[#allocation1 + $0x368] sm:$0x3] %v305_v1  ;;  %v3474_v16 = vld [vmem:[%s4257_s0 + $0x1d] sm:$0x1]  ;;  %v3482_v17 = vld [vmem:[%s4257_s0 + $0x15] sm:$0x1]  ;;  %v3537_v19 = vpack.i.bf16 %v2409_v12, %v2373_v56  ;;  %v1329_v21 = vunpack.c.l.bf16 %v3458_v10  ;;  %v1457_v22 = vunpack.c.l.bf16 %v3466_v11 }
  0x32   :  { %v3490_v18 = vld [vmem:[%s4257_s0 + $0xd] sm:$0x1]  ;;  %436 = vst [vmem:[#allocation1 + $0x328] sm:$0x3] %v433_v6  ;;  %564 = vst [vmem:[#allocation1 + $0x2e8] sm:$0x3] %v561_v7  ;;  %v1585_v25 = vunpack.c.l.bf16 %v3474_v16  ;;  %v1713_v26 = vunpack.c.l.bf16 %v3482_v17 }
  0x33   :  { %692 = vst [vmem:[#allocation1 + $0x2a8] sm:$0x3] %v689_v8  ;;  %v3498_v23 = vld [vmem:[%s4257_s0 + $0x5] sm:$0x1]  ;;  %v3379_v24 = vld [vmem:[%s4257_s0 + $0x7c] sm:$0x1]  ;;  %v1841_v27 = vunpack.c.l.bf16 %v3490_v18 }
  0x34   :  { %820 = vst [vmem:[#allocation1 + $0x268] sm:$0x3] %v817_v13  ;;  %948 = vst [vmem:[#allocation1 + $0x228] sm:$0x3] %v945_v14  ;;  %v1969_v28 = vunpack.c.l.bf16 %v3498_v23  ;;  %v3387_v29 = vld [vmem:[%s4257_s0 + $0x74] sm:$0x1]  ;;  %v65_v32 = vunpack.c.l.bf16 %v3379_v24 }
  0x35   :  { %1076 = vst [vmem:[#allocation1 + $0x1e8] sm:$0x3] %v1073_v15  ;;  %v3395_v30 = vld [vmem:[%s4257_s0 + $0x6c] sm:$0x1]  ;;  %v3403_v31 = vld [vmem:[%s4257_s0 + $0x64] sm:$0x1]  ;;  %v193_v33 = vunpack.c.l.bf16 %v3387_v29 }
  0x36   :  { %1204 = vst [vmem:[#allocation1 + $0x1a8] sm:$0x3] %v1201_v20  ;;  %1332 = vst [vmem:[#allocation1 + $0x168] sm:$0x3] %v1329_v21  ;;  %v321_v34 = vunpack.c.l.bf16 %v3395_v30  ;;  %v449_v35 = vunpack.c.l.bf16 %v3403_v31  ;;  %v3411_v36 = vld [vmem:[%s4257_s0 + $0x5c] sm:$0x1] }
  0x37   :  { %1460 = vst [vmem:[#allocation1 + $0x128] sm:$0x3] %v1457_v22  ;;  %v3419_v37 = vld [vmem:[%s4257_s0 + $0x54] sm:$0x1]  ;;  %v3427_v38 = vld [vmem:[%s4257_s0 + $0x4c] sm:$0x1]  ;;  %v577_v39 = vunpack.c.l.bf16 %v3411_v36 }
  0x38   :  { %s3600_s3 = smov 96   ;;  %1588 = vst [vmem:[#allocation1 + $0xe8] sm:$0x3] %v1585_v25  ;;  %1716 = vst [vmem:[#allocation1 + $0xa8] sm:$0x3] %v1713_v26  ;;  %v705_v40 = vunpack.c.l.bf16 %v3419_v37  ;;  %v833_v41 = vunpack.c.l.bf16 %v3427_v38  ;;  %s3601_s22 = smov 88  }
  0x39   :  { %3538 = vrot.lane.b32.xlu1 %v3537_v19, %s3600_s3  ;;  %1844 = vst [vmem:[#allocation1 + $0x68] sm:$0x3] %v1841_v27  ;;  %1972 = vst [vmem:[#allocation1 + $0x28] sm:$0x3] %v1969_v28  ;;  %v3435_v42 = vld [vmem:[%s4257_s0 + $0x44] sm:$0x1] }
  0x3a   :  { %v3443_v43 = vld [vmem:[%s4257_s0 + $0x3c] sm:$0x1]  ;;  %v3451_v44 = vld [vmem:[%s4257_s0 + $0x34] sm:$0x1]  ;;  %68 = vst [vmem:[#allocation1 + $0x3e0] sm:$0x3] %v65_v32  ;;  %v961_v45 = vunpack.c.l.bf16 %v3435_v42 }
  0x3b   :  { %196 = vst [vmem:[#allocation1 + $0x3a0] sm:$0x3] %v193_v33  ;;  %324 = vst [vmem:[#allocation1 + $0x360] sm:$0x3] %v321_v34  ;;  %v1089_v46 = vunpack.c.l.bf16 %v3443_v43  ;;  %v1217_v47 = vunpack.c.l.bf16 %v3451_v44  ;;  %v3459_v48 = vld [vmem:[%s4257_s0 + $0x2c] sm:$0x1] }
  0x3c   :  { %452 = vst [vmem:[#allocation1 + $0x320] sm:$0x3] %v449_v35  ;;  %v3467_v49 = vld [vmem:[%s4257_s0 + $0x24] sm:$0x1]  ;;  %v3475_v50 = vld [vmem:[%s4257_s0 + $0x1c] sm:$0x1]  ;;  %v1345_v51 = vunpack.c.l.bf16 %v3459_v48 }
  0x3d   :  { %580 = vst [vmem:[#allocation1 + $0x2e0] sm:$0x3] %v577_v39  ;;  %708 = vst [vmem:[#allocation1 + $0x2a0] sm:$0x3] %v705_v40  ;;  %v1473_v52 = vunpack.c.l.bf16 %v3467_v49  ;;  %v1601_v53 = vunpack.c.l.bf16 %v3475_v50  ;;  %v3483_v54 = vld [vmem:[%s4257_s0 + $0x14] sm:$0x1] }
  0x3e   :  { %836 = vst [vmem:[#allocation1 + $0x260] sm:$0x3] %v833_v41  ;;  %964 = vst [vmem:[#allocation1 + $0x220] sm:$0x3] %v961_v45  ;;  %v1729_v55 = vunpack.c.l.bf16 %v3483_v54  ;;  %v2456_v56 = vld [vmem:[#allocation1 + $0x2a8] sm:$0x2]  }
  0x3f   :  { %1092 = vst [vmem:[#allocation1 + $0x1e0] sm:$0x3] %v1089_v46  ;;  %1220 = vst [vmem:[#allocation1 + $0x1a0] sm:$0x3] %v1217_v47  ;;  %v2460_v57 = vld [vmem:[#allocation1 + $0x327] sm:$0x4]  }
  0x40   :  { %1348 = vst [vmem:[#allocation1 + $0x160] sm:$0x3] %v1345_v51  ;;  %1476 = vst [vmem:[#allocation1 + $0x120] sm:$0x3] %v1473_v52  ;;  %v2454_v58 = vld [vmem:[#allocation1 + $0x229] sm:$0x1]  }
  0x41   :  { %1604 = vst [vmem:[#allocation1 + $0xe0] sm:$0x3] %v1601_v53  ;;  %v2464_v59 = vld [vmem:[#allocation1 + $0x3a6] sm:$0x8]   ;;  %1732 = vst [vmem:[#allocation1 + $0xa0] sm:$0x3] %v1729_v55  ;;  %v2458_v63 = vsel %vm2052_vm0, %v2456_v56, %v2454_v58 }
  0x42   :  { %v2472_v60 = vld [vmem:[#allocation1 + $0x2e4] sm:$0x20]   ;;  %v2462_v5 = vsel %vm2056_vm1, %v2460_v57, %v2458_v63  ;;  %v2491_v10 = vld [vmem:[#allocation1 + $0x28] sm:$0x1]   ;;  %v3491_v42 = vld [vmem:[%s4257_s0 + $0xc] sm:$0x1] }
  0x43   :  { %v2424_v61 = vld [vmem:[#allocation1 + $0x127] sm:$0x4]   ;;  %v2466_v9 = vsel %vm2060_vm2, %v2464_v59, %v2462_v5  ;;  %v2493_v11 = vld [vmem:[#allocation1 + $0xa7] sm:$0x2]   ;;  %v3499_v43 = vld [vmem:[%s4257_s0 + $0x4] sm:$0x1]  ;;  %v1857_v48 = vunpack.c.l.bf16 %v3491_v42 }
  0x44   :  { %v2428_v62 = vld [vmem:[#allocation1 + $0x1a6] sm:$0x8]   ;;  %v2495_v15 = vsel %vm2052_vm0, %v2493_v11, %v2491_v10  ;;  %v2497_v16 = vld [vmem:[#allocation1 + $0x126] sm:$0x4]   ;;  %v1985_v52 = vunpack.c.l.bf16 %v3499_v43  ;;  %v2602_v56 = vld [vmem:[#allocation1 + $0x2a0] sm:$0x2]  }
  0x45   :  { %v2468_v0 = vld [vmem:[#allocation1 + $0x265] sm:$0x10]   ;;  %v2501_v17 = vld [vmem:[#allocation1 + $0x1a5] sm:$0x8]   ;;  %v2499_v23 = vsel %vm2056_vm1, %v2497_v16, %v2495_v15  ;;  %v2600_v53 = vld [vmem:[#allocation1 + $0x221] sm:$0x1]  }
  0x46   :  { %v2476_v1 = vld [vmem:[#allocation1 + $0x363] sm:$0x40]   ;;  %v2470_v14 = vsel %vm2064_vm3, %v2468_v0, %v2466_v9  ;;  %v2505_v18 = vld [vmem:[#allocation1 + $0x64] sm:$0x10]   ;;  %v2503_v28 = vsel %vm2060_vm2, %v2501_v17, %v2499_v23  ;;  %1860 = vst [vmem:[#allocation1 + $0x60] sm:$0x3] %v1857_v48 }
  0x47   :  { %v2418_v2 = vld [vmem:[#allocation1 + $0x29] sm:$0x1]   ;;  %v2537_v19 = vld [vmem:[#allocation1 + $0x3a5] sm:$0x8]   ;;  %v2474_v22 = vsel %vm2068_vm4, %v2472_v60, %v2470_v14  ;;  %v2507_v34 = vsel %vm2064_vm3, %v2505_v18, %v2503_v28  ;;  %v2606_v57 = vld [vmem:[#allocation1 + $0x31f] sm:$0x4]   ;;  %v2604_v60 = vsel %vm2052_vm0, %v2602_v56, %v2600_v53 }
  0x48   :  { %v2420_v3 = vld [vmem:[#allocation1 + $0xa8] sm:$0x2]   ;;  %v2509_v24 = vld [vmem:[#allocation1 + $0xe3] sm:$0x20]   ;;  %v2478_v27 = vsel %vm2072_vm5, %v2476_v1, %v2474_v22  ;;  %v2610_v58 = vld [vmem:[#allocation1 + $0x39e] sm:$0x8]   ;;  %v2608_v63 = vsel %vm2056_vm1, %v2606_v57, %v2604_v60 }
  0x49   :  { %v2432_v4 = vld [vmem:[#allocation1 + $0x65] sm:$0x10]   ;;  %v2422_v7 = vsel %vm2052_vm0, %v2420_v3, %v2418_v2  ;;  %v2513_v25 = vld [vmem:[#allocation1 + $0x162] sm:$0x40]   ;;  %v2511_v39 = vsel %vm2068_vm4, %v2509_v24, %v2507_v34  ;;  %1988 = vst [vmem:[#allocation1 + $0x20] sm:$0x3] %v1985_v52  ;;  %v2612_v2 = vsel %vm2060_vm2, %v2610_v58, %v2608_v63 }
  0x4a   :  { %v2480_v6 = vld [vmem:[#allocation1 + $0x3e2] sm:$0x80]   ;;  %v2426_v12 = vsel %vm2056_vm1, %v2424_v61, %v2422_v7  ;;  %v2527_v29 = vld [vmem:[#allocation1 + $0x228] sm:$0x1]   ;;  %v2515_v45 = vsel %vm2072_vm5, %v2513_v25, %v2511_v39  ;;  %v2614_v61 = vld [vmem:[#allocation1 + $0x25d] sm:$0x10]  }
  0x4b   :  { %v2436_v8 = vld [vmem:[#allocation1 + $0xe4] sm:$0x20]   ;;  %v2430_v20 = vsel %vm2060_vm2, %v2428_v62, %v2426_v12  ;;  %v2529_v30 = vld [vmem:[#allocation1 + $0x2a7] sm:$0x2]   ;;  %v2482_v33 = vsel %vm2076_vm6, %v2480_v6, %v2478_v27  ;;  %v2618_v0 = vld [vmem:[#allocation1 + $0x2dc] sm:$0x20]   ;;  %v2616_v5 = vsel %vm2064_vm3, %v2614_v61, %v2612_v2 }
  0x4c   :  { %v2444_v13 = vld [vmem:[#allocation1 + $0x1e2] sm:$0x80]   ;;  %v2434_v26 = vsel %vm2064_vm3, %v2432_v4, %v2430_v20  ;;  %v2533_v31 = vld [vmem:[#allocation1 + $0x326] sm:$0x4]   ;;  %v2531_v36 = vsel %vm2052_vm0, %v2529_v30, %v2527_v29  ;;  %v2622_v3 = vld [vmem:[#allocation1 + $0x35b] sm:$0x40]   ;;  %v2620_v10 = vsel %vm2068_vm4, %v2618_v0, %v2616_v5 }
  0x4d   :  { %v2440_v21 = vld [vmem:[#allocation1 + $0x163] sm:$0x40]   ;;  %v2438_v32 = vsel %vm2068_vm4, %v2436_v8, %v2434_v26  ;;  %v2517_v35 = vld [vmem:[#allocation1 + $0x1e1] sm:$0x80]   ;;  %v2535_v40 = vsel %vm2056_vm1, %v2533_v31, %v2531_v36  ;;  %v2566_v4 = vld [vmem:[#allocation1 + $0xa0] sm:$0x2]   ;;  %v2624_v16 = vsel %vm2072_vm5, %v2622_v3, %v2620_v10 }
  0x4e   :  { %v2541_v37 = vld [vmem:[#allocation1 + $0x264] sm:$0x10]   ;;  %v2442_v38 = vsel %vm2072_vm5, %v2440_v21, %v2438_v32  ;;  %v2539_v46 = vsel %vm2060_vm2, %v2537_v19, %v2535_v40  ;;  %v2519_v54 = vsel %vm2076_vm6, %v2517_v35, %v2515_v45  ;;  %v2626_v6 = vld [vmem:[#allocation1 + $0x3da] sm:$0x80]   ;;  %v2639_v7 = vld [vmem:[#allocation1 + $0x9f] sm:$0x2]  }
  0x4f   :  { %v2545_v41 = vld [vmem:[#allocation1 + $0x2e3] sm:$0x20]   ;;  %v2446_v44 = vsel %vm2076_vm6, %v2444_v13, %v2442_v38  ;;  %v2543_v50 = vsel %vm2064_vm3, %v2541_v37, %v2539_v46  ;;  %v2673_v8 = vld [vmem:[#allocation1 + $0x220] sm:$0x1]   ;;  %s3602_s23 = smov 80   ;;  %v3908_v28 = vsel %vm2076_vm6, %v2626_v6, %v2624_v16  ;;  %s3603_s20 = smov 72  }
  0x50   :  { %v2549_v47 = vld [vmem:[#allocation1 + $0x362] sm:$0x40]   ;;  %v3542_v49 = vpack.i.bf16 %v2482_v33, %v2446_v44  ;;  %v2547_v55 = vsel %vm2068_vm4, %v2545_v41, %v2543_v50  ;;  %v2570_v9 = vld [vmem:[#allocation1 + $0x11f] sm:$0x4]   ;;  %v2643_v11 = vld [vmem:[#allocation1 + $0x11e] sm:$0x4]  }
  0x51   :  { %v2553_v51 = vld [vmem:[#allocation1 + $0x3e1] sm:$0x80]   ;;  %v2551_v59 = vsel %vm2072_vm5, %v2549_v47, %v2547_v55  ;;  %v2675_v12 = vld [vmem:[#allocation1 + $0x29f] sm:$0x2]   ;;  %v2574_v15 = vld [vmem:[#allocation1 + $0x19e] sm:$0x8]  }
  0x52   :  { %3543 = vrot.lane.b32.xlu0 %v3542_v49, %s3601_s22  ;;  %v2555_v62 = vsel %vm2076_vm6, %v2553_v51, %v2551_v59  ;;  %v2679_v13 = vld [vmem:[#allocation1 + $0x31e] sm:$0x4]   ;;  %v2677_v18 = vsel %vm2052_vm0, %v2675_v12, %v2673_v8  ;;  %v2578_v22 = vld [vmem:[#allocation1 + $0x5d] sm:$0x10]   ;;  %v3380_v32 = vld [vmem:[%s4257_s0 + $0x7b] sm:$0x1] }
  0x53   :  { %v3547_v1 = vpack.i.bf16 %v2555_v62, %v2519_v54  ;;  %v2683_v14 = vld [vmem:[#allocation1 + $0x39d] sm:$0x8]   ;;  %v2681_v24 = vsel %vm2056_vm1, %v2679_v13, %v2677_v18  ;;  %v2564_v26 = vld [vmem:[#allocation1 + $0x21] sm:$0x1]   ;;  %v81_v38 = vunpack.c.l.bf16 %v3380_v32  ;;  %v3388_v39 = vld [vmem:[%s4257_s0 + $0x73] sm:$0x1] }
  0x54   :  { %v2647_v17 = vld [vmem:[#allocation1 + $0x19d] sm:$0x8]   ;;  %v2582_v27 = vld [vmem:[#allocation1 + $0xdc] sm:$0x20]   ;;  %v2685_v31 = vsel %vm2060_vm2, %v2683_v14, %v2681_v24  ;;  %v2568_v33 = vsel %vm2052_vm0, %v2566_v4, %v2564_v26  ;;  %v3396_v40 = vld [vmem:[%s4257_s0 + $0x6b] sm:$0x1]  ;;  %v209_v47 = vunpack.c.l.bf16 %v3388_v39 }
  0x55   :  { %3548 = vrot.lane.b32.xlu1 %v3547_v1, %s3602_s23  ;;  %v2687_v19 = vld [vmem:[#allocation1 + $0x25c] sm:$0x10]   ;;  %v2586_v34 = vld [vmem:[#allocation1 + $0x15b] sm:$0x40]   ;;  %v3404_v41 = vld [vmem:[%s4257_s0 + $0x63] sm:$0x1]  ;;  %v2572_v42 = vsel %vm2056_vm1, %v2570_v9, %v2568_v33  ;;  %v337_v53 = vunpack.c.l.bf16 %v3396_v40 }
  0x56   :  { %v2691_v20 = vld [vmem:[#allocation1 + $0x2db] sm:$0x20]   ;;  %v2689_v37 = vsel %vm2064_vm3, %v2687_v19, %v2685_v31  ;;  %v2590_v43 = vld [vmem:[#allocation1 + $0x1da] sm:$0x80]   ;;  %v3412_v48 = vld [vmem:[%s4257_s0 + $0x5b] sm:$0x1]  ;;  %v2576_v50 = vsel %vm2060_vm2, %v2574_v15, %v2572_v42  ;;  %v465_v60 = vunpack.c.l.bf16 %v3404_v41 }
  0x57   :  { %v2695_v21 = vld [vmem:[#allocation1 + $0x35a] sm:$0x40]   ;;  %v2693_v46 = vsel %vm2068_vm4, %v2691_v20, %v2689_v37  ;;  %v3420_v49 = vld [vmem:[%s4257_s0 + $0x53] sm:$0x1]  ;;  %84 = vst [vmem:[#allocation1 + $0x3d8] sm:$0x3] %v81_v38  ;;  %v2580_v57 = vsel %vm2064_vm3, %v2578_v22, %v2576_v50  ;;  %v593_v2 = vunpack.c.l.bf16 %v3412_v48 }
  0x58   :  { %v2651_v23 = vld [vmem:[#allocation1 + $0x5c] sm:$0x10]   ;;  %v2697_v52 = vsel %vm2072_vm5, %v2695_v21, %v2693_v46  ;;  %v3428_v54 = vld [vmem:[%s4257_s0 + $0x4b] sm:$0x1]  ;;  %v3436_v55 = vld [vmem:[%s4257_s0 + $0x43] sm:$0x1]  ;;  %v2584_v0 = vsel %vm2068_vm4, %v2582_v27, %v2580_v57  ;;  %v721_v3 = vunpack.c.l.bf16 %v3420_v49 }
  0x59   :  { %v2699_v25 = vld [vmem:[#allocation1 + $0x3d9] sm:$0x80]   ;;  %v3444_v56 = vld [vmem:[%s4257_s0 + $0x3b] sm:$0x1]  ;;  %212 = vst [vmem:[#allocation1 + $0x398] sm:$0x3] %v209_v47  ;;  %v849_v9 = vunpack.c.l.bf16 %v3428_v54  ;;  %v977_v10 = vunpack.c.l.bf16 %v3436_v55 }
  0x5a   :  { %v2637_v29 = vld [vmem:[#allocation1 + $0x20] sm:$0x1]   ;;  %v2701_v59 = vsel %vm2076_vm6, %v2699_v25, %v2697_v52  ;;  %v3452_v61 = vld [vmem:[%s4257_s0 + $0x33] sm:$0x1]  ;;  %v3460_v62 = vld [vmem:[%s4257_s0 + $0x2b] sm:$0x1]  ;;  %v1105_v16 = vunpack.c.l.bf16 %v3444_v56 }
  0x5b   :  { %v2655_v30 = vld [vmem:[#allocation1 + $0xdb] sm:$0x20]   ;;  %v2641_v35 = vsel %vm2052_vm0, %v2639_v7, %v2637_v29  ;;  %v3468_v63 = vld [vmem:[%s4257_s0 + $0x23] sm:$0x1]  ;;  %340 = vst [vmem:[#allocation1 + $0x358] sm:$0x3] %v337_v53  ;;  %v2588_v7 = vsel %vm2072_vm5, %v2586_v34, %v2584_v0 }
  0x5c   :  { %v2659_v36 = vld [vmem:[#allocation1 + $0x15a] sm:$0x40]   ;;  %v2645_v44 = vsel %vm2056_vm1, %v2643_v11, %v2641_v35  ;;  %v3476_v4 = vld [vmem:[%s4257_s0 + $0x1b] sm:$0x1]  ;;  %v3484_v5 = vld [vmem:[%s4257_s0 + $0x13] sm:$0x1]  ;;  %v2592_v14 = vsel %vm2076_vm6, %v2590_v43, %v2588_v7  ;;  %v1489_v24 = vunpack.c.l.bf16 %v3468_v63 }
  0x5d   :  { %v2663_v45 = vld [vmem:[#allocation1 + $0x1d9] sm:$0x80]   ;;  %v2649_v51 = vsel %vm2060_vm2, %v2647_v17, %v2645_v44  ;;  %v3492_v6 = vld [vmem:[%s4257_s0 + $0xb] sm:$0x1]  ;;  %468 = vst [vmem:[#allocation1 + $0x318] sm:$0x3] %v465_v60  ;;  %v1233_v17 = vunpack.c.l.bf16 %v3452_v61  ;;  %v3552_v21 = vpack.i.bf16 %v3908_v28, %v2592_v14  ;;  %v1617_v28 = vunpack.c.l.bf16 %v3476_v4 }
  0x5e   :  { %v2653_v58 = vsel %vm2064_vm3, %v2651_v23, %v2649_v51  ;;  %v3500_v11 = vld [vmem:[%s4257_s0 + $0x3] sm:$0x1]  ;;  %v3381_v12 = vld [vmem:[%s4257_s0 + $0x7a] sm:$0x1]  ;;  %v3389_v13 = vld [vmem:[%s4257_s0 + $0x72] sm:$0x1]  ;;  %v1361_v23 = vunpack.c.l.bf16 %v3460_v62  ;;  %v1745_v29 = vunpack.c.l.bf16 %v3484_v5 }
  0x5f   :  { %v2657_v1 = vsel %vm2068_vm4, %v2655_v30, %v2653_v58  ;;  %596 = vst [vmem:[#allocation1 + $0x2d8] sm:$0x3] %v593_v2  ;;  %724 = vst [vmem:[#allocation1 + $0x298] sm:$0x3] %v721_v3  ;;  %v3397_v18 = vld [vmem:[%s4257_s0 + $0x6a] sm:$0x1]  ;;  %v1873_v30 = vunpack.c.l.bf16 %v3492_v6  ;;  %v2001_v31 = vunpack.c.l.bf16 %v3500_v11  ;;  %3553 = vrot.lane.b32.xlu0 %v3552_v21, %s3603_s20  ;;  %v97_v35 = vunpack.c.l.bf16 %v3381_v12 }
  0x60   :  { %v2661_v8 = vsel %vm2072_vm5, %v2659_v36, %v2657_v1  ;;  %v3405_v19 = vld [vmem:[%s4257_s0 + $0x62] sm:$0x1]  ;;  %v3413_v20 = vld [vmem:[%s4257_s0 + $0x5a] sm:$0x1]  ;;  %852 = vst [vmem:[#allocation1 + $0x258] sm:$0x3] %v849_v9  ;;  %v225_v36 = vunpack.c.l.bf16 %v3389_v13  ;;  %v353_v37 = vunpack.c.l.bf16 %v3397_v18 }
  0x61   :  { %v2665_v15 = vsel %vm2076_vm6, %v2663_v45, %v2661_v8  ;;  %980 = vst [vmem:[#allocation1 + $0x218] sm:$0x3] %v977_v10  ;;  %v3421_v25 = vld [vmem:[%s4257_s0 + $0x52] sm:$0x1]  ;;  %v3429_v26 = vld [vmem:[%s4257_s0 + $0x4a] sm:$0x1]  ;;  %v481_v38 = vunpack.c.l.bf16 %v3405_v19  ;;  %v609_v40 = vunpack.c.l.bf16 %v3413_v20 }
  0x62   :  { %v3557_v22 = vpack.i.bf16 %v2701_v59, %v2665_v15  ;;  %v3437_v27 = vld [vmem:[%s4257_s0 + $0x42] sm:$0x1]  ;;  %1108 = vst [vmem:[#allocation1 + $0x1d8] sm:$0x3] %v1105_v16  ;;  %1236 = vst [vmem:[#allocation1 + $0x198] sm:$0x3] %v1233_v17  ;;  %v737_v41 = vunpack.c.l.bf16 %v3421_v25  ;;  %v865_v42 = vunpack.c.l.bf16 %v3429_v26 }
  0x63   :  { %v3445_v32 = vld [vmem:[%s4257_s0 + $0x3a] sm:$0x1]  ;;  %v3453_v33 = vld [vmem:[%s4257_s0 + $0x32] sm:$0x1]  ;;  %v3461_v34 = vld [vmem:[%s4257_s0 + $0x2a] sm:$0x1]  ;;  %v993_v43 = vunpack.c.l.bf16 %v3437_v27 }
  0x64   :  { %s3604_s21 = smov 64   ;;  %1364 = vst [vmem:[#allocation1 + $0x158] sm:$0x3] %v1361_v23  ;;  %1492 = vst [vmem:[#allocation1 + $0x118] sm:$0x3] %v1489_v24  ;;  %v1121_v45 = vunpack.c.l.bf16 %v3445_v32  ;;  %v1249_v46 = vunpack.c.l.bf16 %v3453_v33  ;;  %v1377_v47 = vunpack.c.l.bf16 %v3461_v34  ;;  %s3605_s3 = smov 56  }
  0x65   :  { %3558 = vrot.lane.b32.xlu1 %v3557_v22, %s3604_s21  ;;  %v3469_v39 = vld [vmem:[%s4257_s0 + $0x22] sm:$0x1]  ;;  %1620 = vst [vmem:[#allocation1 + $0xd8] sm:$0x3] %v1617_v28  ;;  %1748 = vst [vmem:[#allocation1 + $0x98] sm:$0x3] %v1745_v29 }
  0x66   :  { %1876 = vst [vmem:[#allocation1 + $0x58] sm:$0x3] %v1873_v30  ;;  %2004 = vst [vmem:[#allocation1 + $0x18] sm:$0x3] %v2001_v31  ;;  %v3477_v44 = vld [vmem:[%s4257_s0 + $0x1a] sm:$0x1]  ;;  %v1505_v48 = vunpack.c.l.bf16 %v3469_v39 }
  0x67   :  { %100 = vst [vmem:[#allocation1 + $0x3d0] sm:$0x3] %v97_v35  ;;  %228 = vst [vmem:[#allocation1 + $0x390] sm:$0x3] %v225_v36  ;;  %v3485_v49 = vld [vmem:[%s4257_s0 + $0x12] sm:$0x1]  ;;  %v1633_v52 = vunpack.c.l.bf16 %v3477_v44 }
  0x68   :  { %356 = vst [vmem:[#allocation1 + $0x350] sm:$0x3] %v353_v37  ;;  %484 = vst [vmem:[#allocation1 + $0x310] sm:$0x3] %v481_v38  ;;  %v2752_v50 = vld [vmem:[#allocation1 + $0x317] sm:$0x4]   ;;  %v1761_v53 = vunpack.c.l.bf16 %v3485_v49 }
  0x69   :  { %v2756_v51 = vld [vmem:[#allocation1 + $0x396] sm:$0x8]   ;;  %612 = vst [vmem:[#allocation1 + $0x2d0] sm:$0x3] %v609_v40  ;;  %740 = vst [vmem:[#allocation1 + $0x290] sm:$0x3] %v737_v41 }
  0x6a   :  { %868 = vst [vmem:[#allocation1 + $0x250] sm:$0x3] %v865_v42  ;;  %996 = vst [vmem:[#allocation1 + $0x210] sm:$0x3] %v993_v43  ;;  %v3493_v54 = vld [vmem:[%s4257_s0 + $0xa] sm:$0x1] }
  0x6b   :  { %v2748_v55 = vld [vmem:[#allocation1 + $0x298] sm:$0x2]   ;;  %v2821_v56 = vld [vmem:[#allocation1 + $0x297] sm:$0x2]   ;;  %1124 = vst [vmem:[#allocation1 + $0x1d0] sm:$0x3] %v1121_v45  ;;  %v1889_v58 = vunpack.c.l.bf16 %v3493_v54 }
  0x6c   :  { %v2825_v57 = vld [vmem:[#allocation1 + $0x316] sm:$0x4]   ;;  %1252 = vst [vmem:[#allocation1 + $0x190] sm:$0x3] %v1249_v46  ;;  %1380 = vst [vmem:[#allocation1 + $0x150] sm:$0x3] %v1377_v47 }
  0x6d   :  { %1508 = vst [vmem:[#allocation1 + $0x110] sm:$0x3] %v1505_v48  ;;  %v2746_v59 = vld [vmem:[#allocation1 + $0x219] sm:$0x1]   ;;  %v2819_v60 = vld [vmem:[#allocation1 + $0x218] sm:$0x1]  }
  0x6e   :  { %v2829_v61 = vld [vmem:[#allocation1 + $0x395] sm:$0x8]   ;;  %1636 = vst [vmem:[#allocation1 + $0xd0] sm:$0x3] %v1633_v52  ;;  %1764 = vst [vmem:[#allocation1 + $0x90] sm:$0x3] %v1761_v53  ;;  %v2750_v62 = vsel %vm2052_vm0, %v2748_v55, %v2746_v59  ;;  %v2823_v2 = vsel %vm2052_vm0, %v2821_v56, %v2819_v60 }
  0x6f   :  { %v2760_v63 = vld [vmem:[#allocation1 + $0x255] sm:$0x10]   ;;  %1892 = vst [vmem:[#allocation1 + $0x50] sm:$0x3] %v1889_v58  ;;  %v2754_v5 = vsel %vm2056_vm1, %v2752_v50, %v2750_v62  ;;  %v2793_v7 = vld [vmem:[#allocation1 + $0x195] sm:$0x8]   ;;  %v2827_v8 = vsel %vm2056_vm1, %v2825_v57, %v2823_v2 }
  0x70   :  { %v2764_v0 = vld [vmem:[#allocation1 + $0x2d4] sm:$0x20]   ;;  %v2758_v11 = vsel %vm2060_vm2, %v2756_v51, %v2754_v5  ;;  %v2789_v12 = vld [vmem:[#allocation1 + $0x116] sm:$0x4]   ;;  %v2831_v18 = vsel %vm2060_vm2, %v2829_v61, %v2827_v8  ;;  %v3501_v39 = vld [vmem:[%s4257_s0 + $0x2] sm:$0x1] }
  0x71   :  { %v2768_v1 = vld [vmem:[#allocation1 + $0x353] sm:$0x40]   ;;  %v2762_v15 = vsel %vm2064_vm3, %v2760_v63, %v2758_v11  ;;  %v2783_v16 = vld [vmem:[#allocation1 + $0x18] sm:$0x1]   ;;  %v2017_v44 = vunpack.c.l.bf16 %v3501_v39  ;;  %v2892_v48 = vld [vmem:[#allocation1 + $0x211] sm:$0x1]  }
  0x72   :  { %v2716_v3 = vld [vmem:[#allocation1 + $0x117] sm:$0x4]   ;;  %v2785_v17 = vld [vmem:[#allocation1 + $0x97] sm:$0x2]   ;;  %v2766_v23 = vsel %vm2068_vm4, %v2764_v0, %v2762_v15  ;;  %v2894_v52 = vld [vmem:[#allocation1 + $0x290] sm:$0x2]  }
  0x73   :  { %v2720_v4 = vld [vmem:[#allocation1 + $0x196] sm:$0x8]   ;;  %v2841_v19 = vld [vmem:[#allocation1 + $0x352] sm:$0x40]   ;;  %v2787_v24 = vsel %vm2052_vm0, %v2785_v17, %v2783_v16  ;;  %v2770_v28 = vsel %vm2072_vm5, %v2768_v1, %v2766_v23  ;;  %2020 = vst [vmem:[#allocation1 + $0x10] sm:$0x3] %v2017_v44  ;;  %v2896_v57 = vsel %vm2052_vm0, %v2894_v52, %v2892_v48 }
  0x74   :  { %v2772_v6 = vld [vmem:[#allocation1 + $0x3d2] sm:$0x80]   ;;  %v2797_v25 = vld [vmem:[#allocation1 + $0x54] sm:$0x10]   ;;  %v2791_v29 = vsel %vm2056_vm1, %v2789_v12, %v2787_v24  ;;  %v2898_v53 = vld [vmem:[#allocation1 + $0x30f] sm:$0x4]  }
  0x75   :  { %v2710_v9 = vld [vmem:[#allocation1 + $0x19] sm:$0x1]   ;;  %v2845_v26 = vld [vmem:[#allocation1 + $0x3d1] sm:$0x80]   ;;  %v2774_v35 = vsel %vm2076_vm6, %v2772_v6, %v2770_v28  ;;  %v2795_v36 = vsel %vm2060_vm2, %v2793_v7, %v2791_v29  ;;  %v2902_v54 = vld [vmem:[#allocation1 + $0x38e] sm:$0x8]   ;;  %v2900_v60 = vsel %vm2056_vm1, %v2898_v53, %v2896_v57 }
  0x76   :  { %v2712_v10 = vld [vmem:[#allocation1 + $0x98] sm:$0x2]   ;;  %v2801_v30 = vld [vmem:[#allocation1 + $0xd3] sm:$0x20]   ;;  %v2799_v41 = vsel %vm2064_vm3, %v2797_v25, %v2795_v36  ;;  %v2906_v58 = vld [vmem:[#allocation1 + $0x24d] sm:$0x10]   ;;  %v2904_v63 = vsel %vm2060_vm2, %v2902_v54, %v2900_v60 }
  0x77   :  { %v2714_v13 = vsel %vm2052_vm0, %v2712_v10, %v2710_v9  ;;  %v2724_v14 = vld [vmem:[#allocation1 + $0x55] sm:$0x10]   ;;  %v2833_v31 = vld [vmem:[#allocation1 + $0x254] sm:$0x10]   ;;  %v2803_v46 = vsel %vm2068_vm4, %v2801_v30, %v2799_v41  ;;  %v2910_v61 = vld [vmem:[#allocation1 + $0x2cc] sm:$0x20]   ;;  %v2908_v2 = vsel %vm2064_vm3, %v2906_v58, %v2904_v63 }
  0x78   :  { %v2718_v20 = vsel %vm2056_vm1, %v2716_v3, %v2714_v13  ;;  %v2728_v21 = vld [vmem:[#allocation1 + $0xd4] sm:$0x20]   ;;  %v2837_v32 = vld [vmem:[#allocation1 + $0x2d3] sm:$0x20]   ;;  %v2835_v38 = vsel %vm2064_vm3, %v2833_v31, %v2831_v18  ;;  %v2858_v62 = vld [vmem:[#allocation1 + $0x90] sm:$0x2]   ;;  %v2912_v7 = vsel %vm2068_vm4, %v2910_v61, %v2908_v2 }
  0x79   :  { %v2732_v22 = vld [vmem:[#allocation1 + $0x153] sm:$0x40]   ;;  %v2722_v27 = vsel %vm2060_vm2, %v2720_v4, %v2718_v20  ;;  %v2805_v37 = vld [vmem:[#allocation1 + $0x152] sm:$0x40]   ;;  %v2839_v43 = vsel %vm2068_vm4, %v2837_v32, %v2835_v38  ;;  %v2914_v0 = vld [vmem:[#allocation1 + $0x34b] sm:$0x40]  }
  0x7a   :  { %v2726_v33 = vsel %vm2064_vm3, %v2724_v14, %v2722_v27  ;;  %v2736_v34 = vld [vmem:[#allocation1 + $0x1d2] sm:$0x80]   ;;  %v2809_v42 = vld [vmem:[#allocation1 + $0x1d1] sm:$0x80]   ;;  %v2843_v47 = vsel %vm2072_vm5, %v2841_v19, %v2839_v43  ;;  %v2807_v50 = vsel %vm2072_vm5, %v2805_v37, %v2803_v46  ;;  %s3606_s4 = smov 48   ;;  %v2916_v13 = vsel %vm2072_vm5, %v2914_v0, %v2912_v7  ;;  %s3607_s26 = smov 40  }
  0x7b   :  { %v2730_v40 = vsel %vm2068_vm4, %v2728_v21, %v2726_v33  ;;  %v2847_v51 = vsel %vm2076_vm6, %v2845_v26, %v2843_v47  ;;  %v2811_v56 = vsel %vm2076_vm6, %v2809_v42, %v2807_v50  ;;  %v2862_v1 = vld [vmem:[#allocation1 + $0x10f] sm:$0x4]   ;;  %v2931_v4 = vld [vmem:[#allocation1 + $0x8f] sm:$0x2]   ;;  %v3382_v31 = vld [vmem:[%s4257_s0 + $0x79] sm:$0x1] }
  0x7c   :  { %v2734_v45 = vsel %vm2072_vm5, %v2732_v22, %v2730_v40  ;;  %v3567_v59 = vpack.i.bf16 %v2847_v51, %v2811_v56  ;;  %v2918_v3 = vld [vmem:[#allocation1 + $0x3ca] sm:$0x80]   ;;  %v2935_v5 = vld [vmem:[#allocation1 + $0x10e] sm:$0x4]   ;;  %v113_v39 = vunpack.c.l.bf16 %v3382_v31  ;;  %v3398_v40 = vld [vmem:[%s4257_s0 + $0x69] sm:$0x1] }
  0x7d   :  { %v2738_v49 = vsel %vm2076_vm6, %v2736_v34, %v2734_v45  ;;  %v2866_v6 = vld [vmem:[#allocation1 + $0x18e] sm:$0x8]   ;;  %v2939_v8 = vld [vmem:[#allocation1 + $0x18d] sm:$0x8]   ;;  %v4064_v26 = vsel %vm2076_vm6, %v2918_v3, %v2916_v13  ;;  %v3406_v41 = vld [vmem:[%s4257_s0 + $0x61] sm:$0x1]  ;;  %v369_v52 = vunpack.c.l.bf16 %v3398_v40 }
  0x7e   :  { %v3562_v55 = vpack.i.bf16 %v2774_v35, %v2738_v49  ;;  %3568 = vrot.lane.b32.xlu1 %v3567_v59, %s3606_s4  ;;  %v2965_v9 = vld [vmem:[#allocation1 + $0x210] sm:$0x1]   ;;  %v2870_v12 = vld [vmem:[#allocation1 + $0x4d] sm:$0x10]   ;;  %v3414_v46 = vld [vmem:[%s4257_s0 + $0x59] sm:$0x1]  ;;  %v497_v59 = vunpack.c.l.bf16 %v3406_v41 }
  0x7f   :  { %v2967_v10 = vld [vmem:[#allocation1 + $0x28f] sm:$0x2]   ;;  %v2856_v18 = vld [vmem:[#allocation1 + $0x11] sm:$0x1]   ;;  %v3430_v48 = vld [vmem:[%s4257_s0 + $0x49] sm:$0x1] }
  0x80   :  { %3563 = vrot.lane.b32.xlu0 %v3562_v55, %s3605_s3  ;;  %v2971_v11 = vld [vmem:[#allocation1 + $0x30e] sm:$0x4]   ;;  %v2969_v15 = vsel %vm2052_vm0, %v2967_v10, %v2965_v9  ;;  %v2874_v19 = vld [vmem:[#allocation1 + $0xcc] sm:$0x20]   ;;  %v2860_v24 = vsel %vm2052_vm0, %v2858_v62, %v2856_v18  ;;  %116 = vst [vmem:[#allocation1 + $0x3c8] sm:$0x3] %v113_v39 }
  0x81   :  { %v2943_v14 = vld [vmem:[#allocation1 + $0x4c] sm:$0x10]   ;;  %v2973_v22 = vsel %vm2056_vm1, %v2971_v11, %v2969_v15  ;;  %v2878_v25 = vld [vmem:[#allocation1 + $0x14b] sm:$0x40]   ;;  %v2864_v33 = vsel %vm2056_vm1, %v2862_v1, %v2860_v24  ;;  %v3438_v53 = vld [vmem:[%s4257_s0 + $0x41] sm:$0x1]  ;;  %v625_v1 = vunpack.c.l.bf16 %v3414_v46 }
  0x82   :  { %v2975_v16 = vld [vmem:[#allocation1 + $0x38d] sm:$0x8]   ;;  %v3390_v32 = vld [vmem:[%s4257_s0 + $0x71] sm:$0x1]  ;;  %v2868_v42 = vsel %vm2060_vm2, %v2866_v6, %v2864_v33  ;;  %v3446_v54 = vld [vmem:[%s4257_s0 + $0x39] sm:$0x1]  ;;  %v1009_v9 = vunpack.c.l.bf16 %v3438_v53 }
  0x83   :  { %v2979_v17 = vld [vmem:[#allocation1 + $0x24c] sm:$0x10]   ;;  %v2977_v29 = vsel %vm2060_vm2, %v2975_v16, %v2973_v22  ;;  %v2882_v34 = vld [vmem:[#allocation1 + $0x1ca] sm:$0x80]   ;;  %v241_v45 = vunpack.c.l.bf16 %v3390_v32  ;;  %v2872_v49 = vsel %vm2064_vm3, %v2870_v12, %v2868_v42  ;;  %v3462_v60 = vld [vmem:[%s4257_s0 + $0x29] sm:$0x1]  ;;  %v1137_v15 = vunpack.c.l.bf16 %v3446_v54 }
  0x84   :  { %v2929_v20 = vld [vmem:[#allocation1 + $0x10] sm:$0x1]   ;;  %v2981_v37 = vsel %vm2064_vm3, %v2979_v17, %v2977_v29  ;;  %v3422_v47 = vld [vmem:[%s4257_s0 + $0x51] sm:$0x1]  ;;  %v2876_v56 = vsel %vm2068_vm4, %v2874_v19, %v2872_v49  ;;  %v3470_v61 = vld [vmem:[%s4257_s0 + $0x21] sm:$0x1] }
  0x85   :  { %v2947_v21 = vld [vmem:[#allocation1 + $0xcb] sm:$0x20]   ;;  %v2933_v27 = vsel %vm2052_vm0, %v2931_v4, %v2929_v20  ;;  %v3454_v55 = vld [vmem:[%s4257_s0 + $0x31] sm:$0x1]  ;;  %244 = vst [vmem:[#allocation1 + $0x388] sm:$0x3] %v241_v45  ;;  %v2880_v63 = vsel %vm2072_vm5, %v2878_v25, %v2876_v56  ;;  %v753_v2 = vunpack.c.l.bf16 %v3422_v47  ;;  %v1393_v20 = vunpack.c.l.bf16 %v3462_v60 }
  0x86   :  { %v2983_v23 = vld [vmem:[#allocation1 + $0x2cb] sm:$0x20]   ;;  %v2937_v35 = vsel %vm2056_vm1, %v2935_v5, %v2933_v27  ;;  %v3478_v62 = vld [vmem:[%s4257_s0 + $0x19] sm:$0x1]  ;;  %372 = vst [vmem:[#allocation1 + $0x348] sm:$0x3] %v369_v52  ;;  %v2884_v6 = vsel %vm2076_vm6, %v2882_v34, %v2880_v63  ;;  %v1265_v16 = vunpack.c.l.bf16 %v3454_v55 }
  0x87   :  { %v2951_v28 = vld [vmem:[#allocation1 + $0x14a] sm:$0x40]   ;;  %v2941_v43 = vsel %vm2060_vm2, %v2939_v8, %v2937_v35  ;;  %v2985_v44 = vsel %vm2068_vm4, %v2983_v23, %v2981_v37  ;;  %v3486_v3 = vld [vmem:[%s4257_s0 + $0x11] sm:$0x1]  ;;  %v3494_v4 = vld [vmem:[%s4257_s0 + $0x9] sm:$0x1]  ;;  %v881_v8 = vunpack.c.l.bf16 %v3430_v48  ;;  %v3572_v13 = vpack.i.bf16 %v4064_v26, %v2884_v6 }
  0x88   :  { %v2987_v30 = vld [vmem:[#allocation1 + $0x34a] sm:$0x40]   ;;  %v2945_v50 = vsel %vm2064_vm3, %v2943_v14, %v2941_v43  ;;  %v3502_v5 = vld [vmem:[%s4257_s0 + $0x1] sm:$0x1]  ;;  %500 = vst [vmem:[#allocation1 + $0x308] sm:$0x3] %v497_v59  ;;  %v1649_v22 = vunpack.c.l.bf16 %v3478_v62  ;;  %v1777_v23 = vunpack.c.l.bf16 %v3486_v3  ;;  %v1905_v27 = vunpack.c.l.bf16 %v3494_v4 }
  0x89   :  { %v2955_v36 = vld [vmem:[#allocation1 + $0x1c9] sm:$0x80]   ;;  %v2989_v51 = vsel %vm2072_vm5, %v2987_v30, %v2985_v44  ;;  %v2949_v57 = vsel %vm2068_vm4, %v2947_v21, %v2945_v50  ;;  %v3383_v10 = vld [vmem:[%s4257_s0 + $0x78] sm:$0x1]  ;;  %v3399_v12 = vld [vmem:[%s4257_s0 + $0x68] sm:$0x1]  ;;  %v1521_v21 = vunpack.c.l.bf16 %v3470_v61  ;;  %3573 = vrot.lane.b32.xlu0 %v3572_v13, %s3607_s26 }
  0x8a   :  { %v2991_v38 = vld [vmem:[#allocation1 + $0x3c9] sm:$0x80]   ;;  %v2953_v0 = vsel %vm2072_vm5, %v2951_v28, %v2949_v57  ;;  %628 = vst [vmem:[#allocation1 + $0x2c8] sm:$0x3] %v625_v1  ;;  %756 = vst [vmem:[#allocation1 + $0x288] sm:$0x3] %v753_v2  ;;  %v2032_v28 = vunpack.c.l.bf16 %v3502_v5  ;;  %v129_v29 = vunpack.c.l.bf16 %v3383_v10  ;;  %v385_v33 = vunpack.c.l.bf16 %v3399_v12 }
  0x8b   :  { %v2993_v58 = vsel %vm2076_vm6, %v2991_v38, %v2989_v51  ;;  %v2957_v7 = vsel %vm2076_vm6, %v2955_v36, %v2953_v0  ;;  %v3391_v11 = vld [vmem:[%s4257_s0 + $0x70] sm:$0x1]  ;;  %v3407_v17 = vld [vmem:[%s4257_s0 + $0x60] sm:$0x1]  ;;  %v3415_v18 = vld [vmem:[%s4257_s0 + $0x58] sm:$0x1] }
  0x8c   :  { %v3577_v14 = vpack.i.bf16 %v2993_v58, %v2957_v7  ;;  %v3423_v19 = vld [vmem:[%s4257_s0 + $0x50] sm:$0x1]  ;;  %884 = vst [vmem:[#allocation1 + $0x248] sm:$0x3] %v881_v8  ;;  %1012 = vst [vmem:[#allocation1 + $0x208] sm:$0x3] %v1009_v9  ;;  %v257_v30 = vunpack.c.l.bf16 %v3391_v11  ;;  %v513_v34 = vunpack.c.l.bf16 %v3407_v17  ;;  %v641_v35 = vunpack.c.l.bf16 %v3415_v18 }
  0x8d   :  { %v3431_v24 = vld [vmem:[%s4257_s0 + $0x48] sm:$0x1]  ;;  %v3439_v25 = vld [vmem:[%s4257_s0 + $0x40] sm:$0x1]  ;;  %v3447_v26 = vld [vmem:[%s4257_s0 + $0x38] sm:$0x1]  ;;  %v769_v36 = vunpack.c.l.bf16 %v3423_v19 }
  0x8e   :  { %s3608_s27 = smov 32   ;;  %1140 = vst [vmem:[#allocation1 + $0x1c8] sm:$0x3] %v1137_v15  ;;  %1268 = vst [vmem:[#allocation1 + $0x188] sm:$0x3] %v1265_v16  ;;  %v897_v38 = vunpack.c.l.bf16 %v3431_v24  ;;  %v1025_v39 = vunpack.c.l.bf16 %v3439_v25  ;;  %v1153_v40 = vunpack.c.l.bf16 %v3447_v26  ;;  %s3610_s13 = smov 16  }
  0x8f   :  { %3578 = vrot.lane.b32.xlu1 %v3577_v14, %s3608_s27  ;;  %v3455_v31 = vld [vmem:[%s4257_s0 + $0x30] sm:$0x1]  ;;  %v3463_v32 = vld [vmem:[%s4257_s0 + $0x28] sm:$0x1]  ;;  %1396 = vst [vmem:[#allocation1 + $0x148] sm:$0x3] %v1393_v20 }
  0x90   :  { %1524 = vst [vmem:[#allocation1 + $0x108] sm:$0x3] %v1521_v21  ;;  %1652 = vst [vmem:[#allocation1 + $0xc8] sm:$0x3] %v1649_v22  ;;  %v3471_v37 = vld [vmem:[%s4257_s0 + $0x20] sm:$0x1]  ;;  %v1281_v41 = vunpack.c.l.bf16 %v3455_v31  ;;  %v1409_v43 = vunpack.c.l.bf16 %v3463_v32 }
  0x91   :  { %1780 = vst [vmem:[#allocation1 + $0x88] sm:$0x3] %v1777_v23  ;;  %1908 = vst [vmem:[#allocation1 + $0x48] sm:$0x3] %v1905_v27  ;;  %v3479_v42 = vld [vmem:[%s4257_s0 + $0x18] sm:$0x1]  ;;  %v1537_v44 = vunpack.c.l.bf16 %v3471_v37 }
  0x92   :  { %2035 = vst [vmem:[#allocation1 + $0x8] sm:$0x3] %v2032_v28  ;;  %132 = vst [vmem:[#allocation1 + $0x3c0] sm:$0x3] %v129_v29  ;;  %v1665_v45 = vunpack.c.l.bf16 %v3479_v42  ;;  %v3487_v46 = vld [vmem:[%s4257_s0 + $0x10] sm:$0x1] }
  0x93   :  { %260 = vst [vmem:[#allocation1 + $0x380] sm:$0x3] %v257_v30  ;;  %388 = vst [vmem:[#allocation1 + $0x340] sm:$0x3] %v385_v33  ;;  %v3044_v47 = vld [vmem:[#allocation1 + $0x307] sm:$0x4]   ;;  %v1793_v49 = vunpack.c.l.bf16 %v3487_v46 }
  0x94   :  { %516 = vst [vmem:[#allocation1 + $0x300] sm:$0x3] %v513_v34  ;;  %644 = vst [vmem:[#allocation1 + $0x2c0] sm:$0x3] %v641_v35  ;;  %v3048_v48 = vld [vmem:[#allocation1 + $0x386] sm:$0x8]  }
  0x95   :  { %772 = vst [vmem:[#allocation1 + $0x280] sm:$0x3] %v769_v36  ;;  %900 = vst [vmem:[#allocation1 + $0x240] sm:$0x3] %v897_v38  ;;  %v3495_v50 = vld [vmem:[%s4257_s0 + $0x8] sm:$0x1] }
  0x96   :  { %1028 = vst [vmem:[#allocation1 + $0x200] sm:$0x3] %v1025_v39  ;;  %1156 = vst [vmem:[#allocation1 + $0x1c0] sm:$0x3] %v1153_v40  ;;  %v3040_v51 = vld [vmem:[#allocation1 + $0x288] sm:$0x2]   ;;  %v1921_v54 = vunpack.c.l.bf16 %v3495_v50 }
  0x97   :  { %1284 = vst [vmem:[#allocation1 + $0x180] sm:$0x3] %v1281_v41  ;;  %v3113_v52 = vld [vmem:[#allocation1 + $0x287] sm:$0x2]   ;;  %1412 = vst [vmem:[#allocation1 + $0x140] sm:$0x3] %v1409_v43 }
  0x98   :  { %v3117_v53 = vld [vmem:[#allocation1 + $0x306] sm:$0x4]   ;;  %1540 = vst [vmem:[#allocation1 + $0x100] sm:$0x3] %v1537_v44  ;;  %1668 = vst [vmem:[#allocation1 + $0xc0] sm:$0x3] %v1665_v45 }
  0x99   :  { %v3038_v55 = vld [vmem:[#allocation1 + $0x209] sm:$0x1]   ;;  %v3111_v56 = vld [vmem:[#allocation1 + $0x208] sm:$0x1]   ;;  %1796 = vst [vmem:[#allocation1 + $0x80] sm:$0x3] %v1793_v49 }
  0x9a   :  { %v3121_v57 = vld [vmem:[#allocation1 + $0x385] sm:$0x8]   ;;  %v3042_v58 = vsel %vm2052_vm0, %v3040_v51, %v3038_v55  ;;  %v3052_v59 = vld [vmem:[#allocation1 + $0x245] sm:$0x10]   ;;  %v3115_v62 = vsel %vm2052_vm0, %v3113_v52, %v3111_v56  ;;  %1924 = vst [vmem:[#allocation1 + $0x40] sm:$0x3] %v1921_v54 }
  0x9b   :  { %v3056_v60 = vld [vmem:[#allocation1 + $0x2c4] sm:$0x20]   ;;  %v3046_v2 = vsel %vm2056_vm1, %v3044_v47, %v3042_v58  ;;  %v3119_v4 = vsel %vm2056_vm1, %v3117_v53, %v3115_v62  ;;  %v3085_v8 = vld [vmem:[#allocation1 + $0x185] sm:$0x8]   ;;  %v2045_v35 = vld [vmem:[%s4257_s0] sm:$0x1] }
  0x9c   :  { %v3060_v61 = vld [vmem:[#allocation1 + $0x343] sm:$0x40]   ;;  %v3050_v7 = vsel %vm2060_vm2, %v3048_v48, %v3046_v2  ;;  %v3075_v11 = vld [vmem:[#allocation1 + $0x8] sm:$0x1]   ;;  %v3123_v14 = vsel %vm2060_vm2, %v3121_v57, %v3119_v4  ;;  %v2046_v40 = vunpack.c.l.bf16 %v2045_v35  ;;  %v2089_v48 = vld [vmem:[#allocation1 + $0x23f] sm:$0x2]  }
  0x9d   :  { %v3004_v63 = vld [vmem:[#allocation1 + $0x88] sm:$0x2]   ;;  %v3054_v10 = vsel %vm2064_vm3, %v3052_v59, %v3050_v7  ;;  %v3077_v12 = vld [vmem:[#allocation1 + $0x87] sm:$0x2]   ;;  %v2087_v44 = vld [vmem:[#allocation1 + $0x200] sm:$0x1]  }
  0x9e   :  { %v3008_v0 = vld [vmem:[#allocation1 + $0x107] sm:$0x4]   ;;  %v3081_v13 = vld [vmem:[#allocation1 + $0x106] sm:$0x4]   ;;  %v3058_v19 = vsel %vm2068_vm4, %v3056_v60, %v3054_v10  ;;  %v3079_v20 = vsel %vm2052_vm0, %v3077_v12, %v3075_v11  ;;  %2048 = vst [vmem:[#allocation1] sm:$0x3] %v2046_v40  ;;  %v2091_v53 = vsel %vm2052_vm0, %v2089_v48, %v2087_v44 }
  0x9f   :  { %v3012_v1 = vld [vmem:[#allocation1 + $0x186] sm:$0x8]   ;;  %v3133_v15 = vld [vmem:[#allocation1 + $0x342] sm:$0x40]   ;;  %v3062_v24 = vsel %vm2072_vm5, %v3060_v61, %v3058_v19  ;;  %v3083_v25 = vsel %vm2056_vm1, %v3081_v13, %v3079_v20  ;;  %v2093_v49 = vld [vmem:[#allocation1 + $0x27e] sm:$0x4]  }
  0xa0   :  { %v3064_v3 = vld [vmem:[#allocation1 + $0x3c2] sm:$0x80]   ;;  %v3089_v21 = vld [vmem:[#allocation1 + $0x44] sm:$0x10]   ;;  %v3087_v32 = vsel %vm2060_vm2, %v3085_v8, %v3083_v25  ;;  %v2097_v50 = vld [vmem:[#allocation1 + $0x2bd] sm:$0x8]   ;;  %v2095_v56 = vsel %vm2056_vm1, %v2093_v49, %v2091_v53  ;;  %v3534_v53 = vpop.permute.xlu1 %3533 }
  0xa1   :  { %v3002_v5 = vld [vmem:[#allocation1 + $0x9] sm:$0x1]   ;;  %v3137_v22 = vld [vmem:[#allocation1 + $0x3c1] sm:$0x80]   ;;  %v3066_v31 = vsel %vm2076_vm6, %v3064_v3, %v3062_v24  ;;  %v3091_v37 = vsel %vm2064_vm3, %v3089_v21, %v3087_v32  ;;  %v2101_v54 = vld [vmem:[#allocation1 + $0x2fc] sm:$0x10]   ;;  %v2099_v59 = vsel %vm2060_vm2, %v2097_v50, %v2095_v56 }
  0xa2   :  { %v3016_v6 = vld [vmem:[#allocation1 + $0x45] sm:$0x10]   ;;  %v3006_v9 = vsel %vm2052_vm0, %v3004_v63, %v3002_v5  ;;  %v3093_v26 = vld [vmem:[#allocation1 + $0xc3] sm:$0x20]   ;;  %v2105_v57 = vld [vmem:[#allocation1 + $0x33b] sm:$0x20]   ;;  %v2103_v63 = vsel %vm2064_vm3, %v2101_v54, %v2099_v59  ;;  %v3536_v54 = vunpack.i.h.bf16 %v3534_v53 }
  0xa3   :  { %v3010_v16 = vsel %vm2056_vm1, %v3008_v0, %v3006_v9  ;;  %v3020_v17 = vld [vmem:[#allocation1 + $0xc4] sm:$0x20]   ;;  %v3125_v27 = vld [vmem:[#allocation1 + $0x244] sm:$0x10]   ;;  %v3095_v42 = vsel %vm2068_vm4, %v3093_v26, %v3091_v37  ;;  %s3609_s0 = smov 24   ;;  %v2107_v4 = vsel %vm2068_vm4, %v2105_v57, %v2103_v63  ;;  %vm2078_vm7 = vcmask 64512  }
  0xa4   :  { %v3024_v18 = vld [vmem:[#allocation1 + $0x143] sm:$0x40]   ;;  %v3014_v23 = vsel %vm2060_vm2, %v3012_v1, %v3010_v16  ;;  %v3129_v28 = vld [vmem:[#allocation1 + $0x2c3] sm:$0x20]   ;;  %v3127_v34 = vsel %vm2064_vm3, %v3125_v27, %v3123_v14  ;;  %v2051_v58 = vld [vmem:[#allocation1 + $0x3f] sm:$0x2]  }
  0xa5   :  { %v3018_v29 = vsel %vm2064_vm3, %v3016_v6, %v3014_v23  ;;  %v3028_v30 = vld [vmem:[#allocation1 + $0x1c2] sm:$0x80]   ;;  %v3097_v33 = vld [vmem:[#allocation1 + $0x142] sm:$0x40]   ;;  %v3131_v39 = vsel %vm2068_vm4, %v3129_v28, %v3127_v34  ;;  %v2109_v60 = vld [vmem:[#allocation1 + $0x37a] sm:$0x40]  }
  0xa6   :  { %v3022_v36 = vsel %vm2068_vm4, %v3020_v17, %v3018_v29  ;;  %v3101_v38 = vld [vmem:[#allocation1 + $0x1c1] sm:$0x80]   ;;  %v3135_v43 = vsel %vm2072_vm5, %v3133_v15, %v3131_v39  ;;  %v3099_v46 = vsel %vm2072_vm5, %v3097_v33, %v3095_v42  ;;  %v3150_v61 = vld [vmem:[#allocation1 + $0x80] sm:$0x2]   ;;  %v2055_v62 = vld [vmem:[#allocation1 + $0x7e] sm:$0x4]   ;;  %v2111_v9 = vsel %vm2072_vm5, %v2109_v60, %v2107_v4 }
  0xa7   :  { %v3026_v41 = vsel %vm2072_vm5, %v3024_v18, %v3022_v36  ;;  %v3139_v47 = vsel %vm2076_vm6, %v3137_v22, %v3135_v43  ;;  %v3103_v52 = vsel %vm2076_vm6, %v3101_v38, %v3099_v46  ;;  %v3154_v0 = vld [vmem:[#allocation1 + $0xff] sm:$0x4]   ;;  %v2059_v3 = vld [vmem:[#allocation1 + $0xbd] sm:$0x8]   ;;  %vm2157_vm8 = vcmask 1048512   ;;  %s3611_s14 = smov 8  }
  0xa8   :  { %v3030_v45 = vsel %vm2076_vm6, %v3028_v30, %v3026_v41  ;;  %v3587_v55 = vpack.i.bf16 %v3139_v47, %v3103_v52  ;;  %v3184_v1 = vld [vmem:[#allocation1 + $0x201] sm:$0x1]   ;;  %v2049_v14 = vld [vmem:[#allocation1] sm:$0x1]   ;;  %v3524_v47 = vpop.permute.xlu0 %3523  ;;  %vm2230_vm9 = vcmask 982912   ;;  %vm2303_vm10 = vcmask 917312  }
  0xa9   :  { %v3582_v51 = vpack.i.bf16 %v3066_v31, %v3030_v45  ;;  %v3186_v2 = vld [vmem:[#allocation1 + $0x280] sm:$0x2]   ;;  %v2113_v17 = vld [vmem:[#allocation1 + $0x3b9] sm:$0x80]   ;;  %v2053_v18 = vsel %vm2052_vm0, %v2051_v58, %v2049_v14  ;;  %v3526_v48 = vunpack.i.h.bf16 %v3524_v47  ;;  %v3525_v49 = vunpack.i.l.bf16 %v3524_v47 }
  0xaa   :  { %3588 = vrot.lane.b32.xlu1 %v3587_v55, %s3610_s13  ;;  %v3188_v5 = vsel %vm2052_vm0, %v3186_v2, %v3184_v1  ;;  %v3190_v6 = vld [vmem:[#allocation1 + $0x2ff] sm:$0x4]   ;;  %v2063_v19 = vld [vmem:[#allocation1 + $0xfc] sm:$0x10]   ;;  %v2115_v23 = vsel %vm2076_vm6, %v2113_v17, %v2111_v9  ;;  %v2057_v24 = vsel %vm2056_vm1, %v2055_v62, %v2053_v18  ;;  %v3535_v55 = vunpack.i.l.bf16 %v3534_v53 }
  0xab   :  { %3583 = vrot.lane.b32.xlu0 %v3582_v51, %s3609_s0  ;;  %v3194_v7 = vld [vmem:[#allocation1 + $0x37e] sm:$0x8]   ;;  %v3192_v11 = vsel %vm2056_vm1, %v3190_v6, %v3188_v5  ;;  %v2067_v25 = vld [vmem:[#allocation1 + $0x13b] sm:$0x20]   ;;  %v2061_v30 = vsel %vm2060_vm2, %v2059_v3, %v2057_v24  ;;  %vm2376_vm11 = vcmask 851712   ;;  %v3539_v56 = vpop.permute.xlu1 %3538  ;;  %vm2449_vm12 = vcmask 786112  }
  0xac   :  { %v3198_v8 = vld [vmem:[#allocation1 + $0x23d] sm:$0x10]   ;;  %v3196_v16 = vsel %vm2060_vm2, %v3194_v7, %v3192_v11  ;;  %v2071_v31 = vld [vmem:[#allocation1 + $0x17a] sm:$0x40]   ;;  %v2065_v35 = vsel %vm2064_vm3, %v2063_v19, %v2061_v30  ;;  %v3529_v50 = vpop.permute.xlu0 %3528  ;;  %v3541_v57 = vunpack.i.h.bf16 %v3539_v56  ;;  %v3540_v58 = vunpack.i.l.bf16 %v3539_v56 }
  0xad   :  { %v3158_v10 = vld [vmem:[#allocation1 + $0x17e] sm:$0x8]   ;;  %v3200_v22 = vsel %vm2064_vm3, %v3198_v8, %v3196_v16  ;;  %v2075_v36 = vld [vmem:[#allocation1 + $0x1b9] sm:$0x80]   ;;  %v2069_v39 = vsel %vm2068_vm4, %v2067_v25, %v2065_v35  ;;  %v3531_v51 = vunpack.i.h.bf16 %v3529_v50  ;;  %v3530_v52 = vunpack.i.l.bf16 %v3529_v50 }
  0xae   :  { %v3202_v12 = vld [vmem:[#allocation1 + $0x2bc] sm:$0x20]   ;;  %2118 = vst.msk [vmem:[#allocation0 + $0x10] ss:$8 sm:$0x3] %vm2078_vm7, %v2115_v23   ;;  %v2073_v42 = vsel %vm2072_vm5, %v2071_v31, %v2069_v39  ;;  %vm2522_vm13 = vcmask 720512  }
  0xaf   :  { %v3206_v13 = vld [vmem:[#allocation1 + $0x33b] sm:$0x40]   ;;  %v3204_v28 = vsel %vm2068_vm4, %v3202_v12, %v3200_v22  ;;  %2120 = vst.msk [vmem:[#allocation0 + $0x1] ss:$8 sm:$0xc] %vm2078_vm7, %v2115_v23   ;;  %v2077_v44 = vsel %vm2076_vm6, %v2075_v36, %v2073_v42  ;;  %vm2595_vm14 = vcmask 654912  }
  0xb0   :  { %v3148_v15 = vld [vmem:[#allocation1 + $0x1] sm:$0x1]   ;;  %v3208_v34 = vsel %vm2072_vm5, %v3206_v13, %v3204_v28  ;;  %2122 = vst.msk [vmem:[#allocation0 - $0xe] ss:$8 sm:$0x30] %vm2078_vm7, %v2115_v23   ;;  %vm2668_vm15 = vcmask 589312  }
  0xb1   :  { %v3152_v20 = vsel %vm2052_vm0, %v3150_v61, %v3148_v15  ;;  %v3162_v21 = vld [vmem:[#allocation1 + $0x3d] sm:$0x10]   ;;  %2124 = vst.msk [vmem:[#allocation0 - $0x1d] ss:$8 sm:$0xc0] %vm2078_vm7, %v2115_v23   ;;  %vm2741_vm0 = vcmask 523712  }
  0xb2   :  { %v3156_v26 = vsel %vm2056_vm1, %v3154_v0, %v3152_v20  ;;  %v3166_v27 = vld [vmem:[#allocation1 + $0xbc] sm:$0x20]   ;;  %2079 = vst.msk [vmem:[#allocation0] ss:$8 sm:$0x3] %vm2078_vm7, %v2077_v44   ;;  %vm2814_vm1 = vcmask 458112  }
  0xb3   :  { %v3210_v29 = vld [vmem:[#allocation1 + $0x3ba] sm:$0x80]   ;;  %v3160_v32 = vsel %vm2060_vm2, %v3158_v10, %v3156_v26  ;;  %2081 = vst.msk [vmem:[#allocation0 - $0xf] ss:$8 sm:$0xc] %vm2078_vm7, %v2077_v44   ;;  %vm2887_vm2 = vcmask 392512  }
  0xb4   :  { %v3170_v33 = vld [vmem:[#allocation1 + $0x13b] sm:$0x40]   ;;  %v3164_v37 = vsel %vm2064_vm3, %v3162_v21, %v3160_v32  ;;  %v3212_v41 = vsel %vm2076_vm6, %v3210_v29, %v3208_v34  ;;  %2083 = vst.msk [vmem:[#allocation0 - $0x1e] ss:$8 sm:$0x30] %vm2078_vm7, %v2077_v44   ;;  %vm2960_vm3 = vcmask 326912  }
  0xb5   :  { %v3174_v38 = vld [vmem:[#allocation1 + $0x1ba] sm:$0x80]   ;;  %v3168_v40 = vsel %vm2068_vm4, %v3166_v27, %v3164_v37  ;;  %2085 = vst.msk [vmem:[#allocation0 - $0x2d] ss:$8 sm:$0xc0] %vm2078_vm7, %v2077_v44   ;;  %vm3033_vm4 = vcmask 261312  }
  0xb6   :  { %v3172_v43 = vsel %vm2072_vm5, %v3170_v33, %v3168_v40  ;;  %2158 = vst.msk [vmem:[#allocation0] sm:$0xf] %vm2157_vm8, %v3525_v49   ;;  %2160 = vst.msk [vmem:[#allocation0 + $0x4] sm:$0xf0] %vm2157_vm8, %v3525_v49   ;;  %vm3106_vm5 = vcmask 195712   ;;  %v3612_v31 = vmov 0.0  }
  0xb7   :  { %v3176_v45 = vsel %vm2076_vm6, %v3174_v38, %v3172_v43  ;;  %2195 = vst.msk [vmem:[#allocation0 + $0x10] sm:$0xf] %vm2157_vm8, %v3526_v48   ;;  %2197 = vst.msk [vmem:[#allocation0 + $0x14] sm:$0xf0] %vm2157_vm8, %v3526_v48   ;;  %vm3179_vm6 = vcmask 130112  }
  0xb8   :  { %v3592_v46 = vpack.i.bf16 %v3212_v41, %v3176_v45  ;;  %2231 = vst.msk [vmem:[#allocation0] sm:$0xf] %vm2230_vm9, %v3530_v52   ;;  %2233 = vst.msk [vmem:[#allocation0 + $0x4] sm:$0xf0] %vm2230_vm9, %v3530_v52  }
  0xb9   :  { %2268 = vst.msk [vmem:[#allocation0 + $0x10] sm:$0xf] %vm2230_vm9, %v3531_v51   ;;  %2270 = vst.msk [vmem:[#allocation0 + $0x14] sm:$0xf0] %vm2230_vm9, %v3531_v51  }
  0xba   :  { %3593 = vrot.lane.b32.xlu0 %v3592_v46, %s3611_s14  ;;  %2304 = vst.msk [vmem:[#allocation0] sm:$0xf] %vm2303_vm10, %v3535_v55   ;;  %2306 = vst.msk [vmem:[#allocation0 + $0x4] sm:$0xf0] %vm2303_vm10, %v3535_v55  }
  0xbb   :  { %2341 = vst.msk [vmem:[#allocation0 + $0x10] sm:$0xf] %vm2303_vm10, %v3536_v54   ;;  %2343 = vst.msk [vmem:[#allocation0 + $0x14] sm:$0xf0] %vm2303_vm10, %v3536_v54  }
  0xbc   :  { %2377 = vst.msk [vmem:[#allocation0] sm:$0xf] %vm2376_vm11, %v3540_v58   ;;  %2379 = vst.msk [vmem:[#allocation0 + $0x4] sm:$0xf0] %vm2376_vm11, %v3540_v58  }
  0xbd   :  { %2414 = vst.msk [vmem:[#allocation0 + $0x10] sm:$0xf] %vm2376_vm11, %v3541_v57   ;;  %2416 = vst.msk [vmem:[#allocation0 + $0x14] sm:$0xf0] %vm2376_vm11, %v3541_v57  }
  0xc4   :  { %v3544_v59 = vpop.permute.xlu0 %3543 }
  0xc5   :  { %v3546_v60 = vunpack.i.h.bf16 %v3544_v59  ;;  %v3545_v61 = vunpack.i.l.bf16 %v3544_v59 }
  0xc7   :  { %2450 = vst.msk [vmem:[#allocation0] sm:$0xf] %vm2449_vm12, %v3545_v61   ;;  %2452 = vst.msk [vmem:[#allocation0 + $0x4] sm:$0xf0] %vm2449_vm12, %v3545_v61   ;;  %v3549_v62 = vpop.permute.xlu1 %3548 }
  0xc8   :  { %2487 = vst.msk [vmem:[#allocation0 + $0x10] sm:$0xf] %vm2449_vm12, %v3546_v60   ;;  %2489 = vst.msk [vmem:[#allocation0 + $0x14] sm:$0xf0] %vm2449_vm12, %v3546_v60   ;;  %v3551_v63 = vunpack.i.h.bf16 %v3549_v62  ;;  %v3550_v0 = vunpack.i.l.bf16 %v3549_v62 }
  0xca   :  { %2523 = vst.msk [vmem:[#allocation0] sm:$0xf] %vm2522_vm13, %v3550_v0   ;;  %2525 = vst.msk [vmem:[#allocation0 + $0x4] sm:$0xf0] %vm2522_vm13, %v3550_v0  }
  0xcb   :  { %2560 = vst.msk [vmem:[#allocation0 + $0x10] sm:$0xf] %vm2522_vm13, %v3551_v63   ;;  %2562 = vst.msk [vmem:[#allocation0 + $0x14] sm:$0xf0] %vm2522_vm13, %v3551_v63  }
  0xd1   :  { %v3554_v1 = vpop.permute.xlu0 %3553 }
  0xd2   :  { %v3556_v3 = vunpack.i.h.bf16 %v3554_v1  ;;  %v3555_v4 = vunpack.i.l.bf16 %v3554_v1 }
  0xd4   :  { %2596 = vst.msk [vmem:[#allocation0] sm:$0xf] %vm2595_vm14, %v3555_v4   ;;  %2598 = vst.msk [vmem:[#allocation0 + $0x4] sm:$0xf0] %vm2595_vm14, %v3555_v4  }
  0xd5   :  { %2633 = vst.msk [vmem:[#allocation0 + $0x10] sm:$0xf] %vm2595_vm14, %v3556_v3   ;;  %2635 = vst.msk [vmem:[#allocation0 + $0x14] sm:$0xf0] %vm2595_vm14, %v3556_v3  }
  0xd7   :  { %v3559_v2 = vpop.permute.xlu1 %3558 }
  0xd8   :  { %v3561_v5 = vunpack.i.h.bf16 %v3559_v2  ;;  %v3560_v6 = vunpack.i.l.bf16 %v3559_v2 }
  0xda   :  { %2669 = vst.msk [vmem:[#allocation0] sm:$0xf] %vm2668_vm15, %v3560_v6   ;;  %2671 = vst.msk [vmem:[#allocation0 + $0x4] sm:$0xf0] %vm2668_vm15, %v3560_v6  }
  0xdb   :  { %2706 = vst.msk [vmem:[#allocation0 + $0x10] sm:$0xf] %vm2668_vm15, %v3561_v5   ;;  %2708 = vst.msk [vmem:[#allocation0 + $0x14] sm:$0xf0] %vm2668_vm15, %v3561_v5  }
  0xf0   :  { %v3569_v10 = vpop.permute.xlu1 %3568 }
  0xf1   :  { %v3571_v11 = vunpack.i.h.bf16 %v3569_v10  ;;  %v3570_v12 = vunpack.i.l.bf16 %v3569_v10 }
  0xf2   :  { %v3564_v7 = vpop.permute.xlu0 %3563 }
  0xf3   :  { %v3566_v8 = vunpack.i.h.bf16 %v3564_v7  ;;  %v3565_v9 = vunpack.i.l.bf16 %v3564_v7 }
  0xf5   :  { %2742 = vst.msk [vmem:[#allocation0] sm:$0xf] %vm2741_vm0, %v3565_v9   ;;  %2744 = vst.msk [vmem:[#allocation0 + $0x4] sm:$0xf0] %vm2741_vm0, %v3565_v9  }
  0xf6   :  { %2779 = vst.msk [vmem:[#allocation0 + $0x10] sm:$0xf] %vm2741_vm0, %v3566_v8   ;;  %2781 = vst.msk [vmem:[#allocation0 + $0x14] sm:$0xf0] %vm2741_vm0, %v3566_v8  }
  0xf7   :  { %2815 = vst.msk [vmem:[#allocation0] sm:$0xf] %vm2814_vm1, %v3570_v12   ;;  %2817 = vst.msk [vmem:[#allocation0 + $0x4] sm:$0xf0] %vm2814_vm1, %v3570_v12  }
  0xf8   :  { %2852 = vst.msk [vmem:[#allocation0 + $0x10] sm:$0xf] %vm2814_vm1, %v3571_v11   ;;  %2854 = vst.msk [vmem:[#allocation0 + $0x14] sm:$0xf0] %vm2814_vm1, %v3571_v11  }
  0xfb   :  { %v3574_v13 = vpop.permute.xlu0 %3573 }
  0xfc   :  { %v3576_v15 = vunpack.i.h.bf16 %v3574_v13  ;;  %v3575_v16 = vunpack.i.l.bf16 %v3574_v13 }
  0xfe   :  { %2888 = vst.msk [vmem:[#allocation0] sm:$0xf] %vm2887_vm2, %v3575_v16   ;;  %2890 = vst.msk [vmem:[#allocation0 + $0x4] sm:$0xf0] %vm2887_vm2, %v3575_v16  }
  0xff   :  { %2925 = vst.msk [vmem:[#allocation0 + $0x10] sm:$0xf] %vm2887_vm2, %v3576_v15   ;;  %2927 = vst.msk [vmem:[#allocation0 + $0x14] sm:$0xf0] %vm2887_vm2, %v3576_v15  }
 0x101   :  { %v3579_v14 = vpop.permute.xlu1 %3578 }
 0x102   :  { %v3581_v17 = vunpack.i.h.bf16 %v3579_v14  ;;  %v3580_v18 = vunpack.i.l.bf16 %v3579_v14 }
 0x104   :  { %2961 = vst.msk [vmem:[#allocation0] sm:$0xf] %vm2960_vm3, %v3580_v18   ;;  %2963 = vst.msk [vmem:[#allocation0 + $0x4] sm:$0xf0] %vm2960_vm3, %v3580_v18  }
 0x105   :  { %2998 = vst.msk [vmem:[#allocation0 + $0x10] sm:$0xf] %vm2960_vm3, %v3581_v17   ;;  %3000 = vst.msk [vmem:[#allocation0 + $0x14] sm:$0xf0] %vm2960_vm3, %v3581_v17  }
 0x11c   :  { %v3589_v22 = vpop.permute.xlu1 %3588 }
 0x11d   :  { %v3584_v19 = vpop.permute.xlu0 %3583  ;;  %v3591_v23 = vunpack.i.h.bf16 %v3589_v22  ;;  %v3590_v24 = vunpack.i.l.bf16 %v3589_v22 }
 0x11e   :  { %v3586_v20 = vunpack.i.h.bf16 %v3584_v19  ;;  %v3585_v21 = vunpack.i.l.bf16 %v3584_v19 }
 0x120   :  { %3034 = vst.msk [vmem:[#allocation0] sm:$0xf] %vm3033_vm4, %v3585_v21   ;;  %3036 = vst.msk [vmem:[#allocation0 + $0x4] sm:$0xf0] %vm3033_vm4, %v3585_v21  }
 0x121   :  { %3071 = vst.msk [vmem:[#allocation0 + $0x10] sm:$0xf] %vm3033_vm4, %v3586_v20   ;;  %3073 = vst.msk [vmem:[#allocation0 + $0x14] sm:$0xf0] %vm3033_vm4, %v3586_v20  }
 0x122   :  { %3107 = vst.msk [vmem:[#allocation0] sm:$0xf] %vm3106_vm5, %v3590_v24   ;;  %3109 = vst.msk [vmem:[#allocation0 + $0x4] sm:$0xf0] %vm3106_vm5, %v3590_v24  }
 0x123   :  { %3144 = vst.msk [vmem:[#allocation0 + $0x10] sm:$0xf] %vm3106_vm5, %v3591_v23   ;;  %3146 = vst.msk [vmem:[#allocation0 + $0x14] sm:$0xf0] %vm3106_vm5, %v3591_v23  }
 0x12c   :  { %v3594_v25 = vpop.permute.xlu0 %3593 }
 0x12d   :  { %v3596_v26 = vunpack.i.h.bf16 %v3594_v25  ;;  %v3595_v27 = vunpack.i.l.bf16 %v3594_v25 }
 0x12f   :  { %3180 = vst.msk [vmem:[#allocation0] sm:$0xf] %vm3179_vm6, %v3595_v27   ;;  %3182 = vst.msk [vmem:[#allocation0 + $0x4] sm:$0xf0] %vm3179_vm6, %v3595_v27  }
 0x130   :  { %3217 = vst.msk [vmem:[#allocation0 + $0x10] sm:$0xf] %vm3179_vm6, %v3596_v26   ;;  %3219 = vst.msk [vmem:[#allocation0 + $0x14] sm:$0xf0] %vm3179_vm6, %v3596_v26  }
 0x136   :  { %v3224_v28 = vld [vmem:[#allocation0] sm:$0xf]  ;;  %v3229_v29 = vld [vmem:[#allocation0 + $0x8] sm:$0xf] }
 0x137   :  { %v3235_v30 = vld [vmem:[#allocation0 + $0x10] sm:$0xf]  ;;  %v3225_v32 = vpack.c.bf16 %v3612_v31, %v3224_v28  ;;  %v3230_v33 = vpack.c.bf16 %v3612_v31, %v3229_v29  ;;  %v3242_v35 = vld [vmem:[#allocation0 + $0x18] sm:$0xf] }
 0x138   :  { %v3236_v34 = vpack.c.bf16 %v3612_v31, %v3235_v30  ;;  %v3243_v36 = vpack.c.bf16 %v3612_v31, %v3242_v35 }
 0x139   :  { %3227 = vst [vmem:[%s4258_s1] sm:$0x3] %v3225_v32  ;;  %3503 = vst [vmem:[%s4258_s1 + $0x2] sm:$0x3] %v3230_v33 }
 0x13a   :  { %3504 = vst [vmem:[%s4258_s1 + $0x4] sm:$0x3] %v3236_v34  ;;  %3505 = vst [vmem:[%s4258_s1 + $0x6] sm:$0x3] %v3243_v36 }

// kernel: ffc_forward.5
= control target key start
LH: loop header
LB: loop body
LE: loop exit
PB: predicated region body
PF: predicated region fallthrough
CT: control target
= control target key end

     0   :  { %s774_s21 = smov 0   ;;  %s776_s22 = smov 0   ;;  %s833_s0 = inlined_call_operand.vmem [shape: bf16[8,4], index: 0, kind: input, shape index: {}]   ;;  %s834_s1 = inlined_call_operand.vmem [shape: bf16[8,4], index: 1, kind: input, shape index: {}]   ;;  %s835_s2 = inlined_call_operand.vmem [shape: f32[8,1], index: 2, kind: input, shape index: {}]   ;;  %s836_s3 = inlined_call_operand.vmem [shape: bf16[2,4,144], index: 3, kind: input, shape index: {}]   ;;  %s837_s4 = inlined_call_operand.vmem [shape: bf16[2,4,144], index: 4, kind: input, shape index: {}]   ;;  %s838_s5 = inlined_call_operand.vmem [shape: bf16[2,4,144], index: 5, kind: output, shape index: {0}]   ;;  %s839_s6 = inlined_call_operand.vmem [shape: bf16[2,4,144], index: 6, kind: output, shape index: {1}]  }
   0x1   :  { %s778_s23 = smov 0  }
   0x2 LB: > { %s29_s24 = sadd.s32 1, %s731_s22  ;;  %p664_p0 = scmp.ge.s32.totalorder %s735_s23, 1  ;;  %s735_s23 = sphi %s778_s23, %s17_s23   ;;  %s731_s22 = sphi %s776_s22, %s841_s22   ;;  %s727_s21 = sphi %s774_s21, %s840_s21  }
   0x3   : > { %p31_p1 = scmp.ge.s32.totalorder %s29_s24, 2  ;;  %p255_p2 = scmp.lt.s32.totalorder %s735_s23, 3 }
   0x5   : > { %s843_s24 = smov (%p31_p1, %s29_s24), 0  ;;  %p256_p3 = pnand %p664_p0, %p255_p2 }
   0x6   : > { %p312_p4 = scmp.lt.s32.totalorder (!%p256_p3), %s727_s21, 1  ;;  %v737_v0 = vmov (!%p256_p3), 0   ;;  %v476_v1 = vld [vmem:[%s835_s2] sm:$0xff] (!%p256_p3)  ;;  %vm369_vm0 = vcmask (!%p256_p3), 1041408   ;;  %vm365_vm1 = vcmask (!%p256_p3), 31744   ;;  %v494_v12 = vlaneseq (!%p256_p3) }
   0x7   : > { %259 = sbr.rel (%p256_p3) target bundleno = 251 (0xfb), region = 40  ;;  %408 = vmatprep.mubr.bf16.mxu0 (!%p256_p3), %v737_v0  ;;  %467 = vmatprep.mubr.bf16.mxu1 (!%p256_p3), %v737_v0  ;;  %v354_v8 = vld [vmem:[%s834_s1] sm:$0xf] (!%p256_p3)  ;;  %v738_v10 = vmov (!%p256_p3), 1983009808   ;;  %vm499_vm2 = vcmask (!%p256_p3), 125954  }
   0x8   : > { %712 = vset.pattern.permute.xlu0 (!%p256_p3), %v737_v0  ;;  %v352_v9 = vld [vmem:[%s833_s0] sm:$0xf] (!%p256_p3)  ;;  %v492_v11 = vunpack.c.l.s4 (!%p256_p3), %v738_v10  ;;  %v495_v22 = vshrl.u32 (!%p256_p3), %v494_v12, 7  ;;  %vm500_vm3 = vmor (!%p256_p3), %vm499_vm2, %vm369_vm0 }
   0x9   : > { %479 = vperm.xlu0 (!%p256_p3), %712, %v476_v1  }
   0xa   : > { %v493_v21 = vunpack.c.0.s8 (!%p256_p3), %v492_v11 }
   0xc   : > { %v496_v29 = vsub.s32 (!%p256_p3), %v493_v21, %v495_v22 }
   0xe   : > { %s845_s21 = smov (!%p312_p4, %s727_s21), 1 }
   0xf   : > { %s795_s27 = sshll.u32 %s845_s21, 2 }
  0x10   : > { %s329_s30 = scalar_lea.vmem %s837_s4, %s795_s27  ;;  %s319_s9 = scalar_lea.vmem %s836_s3, %s795_s27 }
  0x11   : > { %v673_v2 = vld.sshfl [vmem:[%s329_s30] sm:$0x33 pattern:$0x76325410]  ;;  %s339_s16 = scalar_lea.vmem %s838_s5, %s795_s27  ;;  %s349_s19 = scalar_lea.vmem %s839_s6, %s795_s27 }
  0x12   : > { %v364_v3 = vcombine.high %v673_v2, %v673_v2  ;;  %v676_v4 = vld.sshfl [vmem:[%s319_s9] sm:$0x33 pattern:$0x76325410]  ;;  %v371_v5 = vsel %vm369_vm0, %v673_v2, 0 }
  0x13   : > { %v425_v6 = vcombine.high %v676_v4, %v676_v4  ;;  %v430_v7 = vsel %vm369_vm0, %v676_v4, 0 }
  0x14   : > { %674 = vmatprep.subr.msk.bf16.mxu0 %vm369_vm0, %v364_v3 }
  0x15   : > { %677 = vmatprep.subr.msk.bf16.mxu1 %vm369_vm0, %v425_v6  ;;  %377 = vmatpush1.bf16.msra.mxu0 %v371_v5 }
  0x16   : > { %436 = vmatpush1.bf16.msra.mxu1 %v430_v7 }
  0x18   : > { %675 = vmatmul.mubr.msk.bf16.vlgmr.msra.gmra.mrb[0].mxu0 %vm365_vm1, %v354_v8 }
  0x19   : > { %678 = vmatmul.mubr.msk.bf16.vlgmr.msra.gmra.mrb[0].mxu1 %vm365_vm1, %v352_v9 }
  0x88   : > { %v480_v14 = vpop.permute.xlu0 %479 }
  0xeb   : > { %v410_v13 = vpop.f32.mrb[0].mxu0 }
  0xec   : > { %v469_v15 = vpop.f32.mrb[0].mxu1  ;;  %v412_v16 = vpop.f32.mrb[1].mxu0 }
  0xed   : > { %v470_v17 = vadd.f32 %v469_v15, %v410_v13  ;;  %v471_v18 = vpop.f32.mrb[1].mxu1  ;;  %v414_v19 = vpop.f32.mrb[2].mxu0 }
  0xee   : > { %v472_v20 = vadd.f32 %v471_v18, %v412_v16  ;;  %v473_v23 = vpop.f32.mrb[2].mxu1  ;;  %v415_v24 = vpop.f32.mrb[3].mxu0 }
  0xef   : > { %v482_v25 = vadd.f32 %v480_v14, %v470_v17  ;;  %v474_v26 = vpop.f32.mrb[3].mxu1 }
  0xf0   : > { %v483_v27 = vadd.f32 %v480_v14, %v472_v20 }
  0xf1   : > { %v484_v28 = vmax.f32 %v482_v25, 0.0 }
  0xf2   : > { %v485_v30 = vmax.f32 %v483_v27, 0.0 }
  0xf4   : > { %v679_v31 = vpack.c.bf16 %v485_v30, %v484_v28 }
  0xf6   : > { %v497_v32 = vrot.slane %v679_v31, %v496_v29 }
  0xf8   : > { %501 = vst.msk [vmem:[%s339_s16] sm:$0xf] %vm500_vm3, %v497_v32  ;;  %v502_v33 = vcombine.high %v497_v32, %v497_v32 }
  0xfa   : > { %504 = vst.msk [vmem:[%s349_s19] sm:$0xf] %vm500_vm3, %v502_v33 }
  0xfb PF: > { %s17_s23 = sadd.s32 1, %s735_s23   ;;  %s840_s21 = smov %s731_s22 }
  0xfc   : > { %p14_p5 = scmp.ge.s32.totalorder %s17_s23, 4   ;;  %s841_s22 = smov %s843_s24 }
  0xfe   :  { %16 = sbr.rel (!%p14_p5) target bundleno = 2 (0x2), region = 85 }

// kernel: reverse.0
= control target key start
LH: loop header
LB: loop body
LE: loop exit
PB: predicated region body
PF: predicated region fallthrough
CT: control target
= control target key end

     0   :  { %v71_v3 = vlaneseq  ;;  %v64_v9 = vld [vmem:[#allocation0 + $0x7] ss:$-1 sm:$0xff]  ;;  %v78_v12 = vld [vmem:[#allocation0 + $0x17] ss:$-1 sm:$0xff]  ;;  %s329_s0 = inlined_call_operand.vmem [shape: f32[2,4,16,7], index: 0, kind: input, shape index: {}]   ;;  %s330_s1 = inlined_call_operand.vmem [shape: f32[2,4,16,7], index: 1, kind: output, shape index: {}]  }
   0x1   :  { %v44_v0 = vld [vmem:[%s329_s0] sm:$0xff]  ;;  %v46_v1 = vld [vmem:[%s329_s0 + $0x8] sm:$0xff]  ;;  %v48_v2 = vld [vmem:[%s329_s0 + $0x10] sm:$0xff]  ;;  %v65_v10 = vrot.slane %v64_v9, 1  ;;  %v79_v14 = vrot.slane %v78_v12, 1 }
   0x2   :  { %45 = vst [vmem:[#allocation0 + $0x8] sm:$0xff] %v44_v0  ;;  %47 = vst [vmem:[#allocation0 + $0x18] sm:$0xff] %v46_v1  ;;  %v50_v4 = vld [vmem:[%s329_s0 + $0x18] sm:$0xff]  ;;  %v52_v5 = vld [vmem:[%s329_s0 + $0x20] sm:$0xff]  ;;  %v72_v11 = vshrl.u32 %v71_v3, 7 }
   0x3   :  { %49 = vst [vmem:[#allocation0 + $0x28] sm:$0xff] %v48_v2  ;;  %v54_v6 = vld [vmem:[%s329_s0 + $0x28] sm:$0xff]  ;;  %51 = vst [vmem:[#allocation0 + $0x38] sm:$0xff] %v50_v4  ;;  %v56_v7 = vld [vmem:[%s329_s0 + $0x30] sm:$0xff] }
   0x4   :  { %53 = vst [vmem:[#allocation0 + $0x48] sm:$0xff] %v52_v5  ;;  %55 = vst [vmem:[#allocation0 + $0x58] sm:$0xff] %v54_v6  ;;  %v58_v8 = vld [vmem:[%s329_s0 + $0x38] sm:$0xff]  ;;  %v92_v13 = vld [vmem:[#allocation0 + $0x27] ss:$-1 sm:$0xff]  ;;  %vm73_vm0 = vcmp.lt.s32.totalorder %v72_v11, 7 }
   0x5   :  { %57 = vst [vmem:[#allocation0 + $0x68] sm:$0xff] %v56_v7  ;;  %59 = vst [vmem:[#allocation0 + $0x78] sm:$0xff] %v58_v8  ;;  %v93_v15 = vrot.slane %v92_v13, 1  ;;  %v106_v16 = vld [vmem:[#allocation0 + $0x37] ss:$-1 sm:$0xff] }
   0x6   :  { %66 = vst [vmem:[#allocation1] sm:$0xff] %v65_v10  ;;  %v107_v17 = vrot.slane %v106_v16, 1  ;;  %v120_v18 = vld [vmem:[#allocation0 + $0x47] ss:$-1 sm:$0xff]  ;;  %v134_v19 = vld [vmem:[#allocation0 + $0x57] ss:$-1 sm:$0xff] }
   0x7   :  { %80 = vst [vmem:[#allocation1 + $0x8] sm:$0xff] %v79_v14  ;;  %94 = vst [vmem:[#allocation1 + $0x10] sm:$0xff] %v93_v15  ;;  %v121_v20 = vrot.slane %v120_v18, 1  ;;  %v135_v21 = vrot.slane %v134_v19, 1  ;;  %v148_v22 = vld [vmem:[#allocation0 + $0x67] ss:$-1 sm:$0xff] }
   0x8   :  { %v162_v23 = vld [vmem:[#allocation0 + $0x77] ss:$-1 sm:$0xff]  ;;  %108 = vst [vmem:[#allocation1 + $0x18] sm:$0xff] %v107_v17  ;;  %v149_v24 = vrot.slane %v148_v22, 1 }
   0x9   :  { %v163_v25 = vrot.slane %v162_v23, 1  ;;  %v69_v26 = vld [vmem:[#allocation0 + $0xf] ss:$-1 sm:$0xff]  ;;  %v83_v27 = vld [vmem:[#allocation0 + $0x1f] ss:$-1 sm:$0xff]  ;;  %122 = vst [vmem:[#allocation1 + $0x20] sm:$0xff] %v121_v20 }
   0xa   :  { %v97_v28 = vld [vmem:[#allocation0 + $0x2f] ss:$-1 sm:$0xff]  ;;  %136 = vst [vmem:[#allocation1 + $0x28] sm:$0xff] %v135_v21  ;;  %v70_v29 = vrot.slane %v69_v26, 1  ;;  %v84_v30 = vrot.slane %v83_v27, 1  ;;  %150 = vst [vmem:[#allocation1 + $0x30] sm:$0xff] %v149_v24 }
   0xb   :  { %v98_v31 = vrot.slane %v97_v28, 1  ;;  %v111_v32 = vld [vmem:[#allocation0 + $0x3f] ss:$-1 sm:$0xff]  ;;  %164 = vst [vmem:[#allocation1 + $0x38] sm:$0xff] %v163_v25  ;;  %v125_v34 = vld [vmem:[#allocation0 + $0x4f] ss:$-1 sm:$0xff] }
   0xc   :  { %v112_v33 = vrot.slane %v111_v32, 1  ;;  %v139_v35 = vld [vmem:[#allocation0 + $0x5f] ss:$-1 sm:$0xff]  ;;  %74 = vst.msk [vmem:[#allocation1] sm:$0xff] %vm73_vm0, %v70_v29  ;;  %88 = vst.msk [vmem:[#allocation1 + $0x8] sm:$0xff] %vm73_vm0, %v84_v30  ;;  %v126_v36 = vrot.slane %v125_v34, 1 }
   0xd   :  { %102 = vst.msk [vmem:[#allocation1 + $0x10] sm:$0xff] %vm73_vm0, %v98_v31  ;;  %v140_v37 = vrot.slane %v139_v35, 1  ;;  %v153_v38 = vld [vmem:[#allocation0 + $0x6f] ss:$-1 sm:$0xff]  ;;  %v167_v39 = vld [vmem:[#allocation0 + $0x7f] ss:$-1 sm:$0xff] }
   0xe   :  { %116 = vst.msk [vmem:[#allocation1 + $0x18] sm:$0xff] %vm73_vm0, %v112_v33  ;;  %v154_v40 = vrot.slane %v153_v38, 1  ;;  %v168_v41 = vrot.slane %v167_v39, 1  ;;  %130 = vst.msk [vmem:[#allocation1 + $0x20] sm:$0xff] %vm73_vm0, %v126_v36 }
   0xf   :  { %144 = vst.msk [vmem:[#allocation1 + $0x28] sm:$0xff] %vm73_vm0, %v140_v37 }
  0x10   :  { %158 = vst.msk [vmem:[#allocation1 + $0x30] sm:$0xff] %vm73_vm0, %v154_v40  ;;  %172 = vst.msk [vmem:[#allocation1 + $0x38] sm:$0xff] %vm73_vm0, %v168_v41 }
  0x13   :  { %v214_v42 = vld [vmem:[#allocation1] sm:$0xff]  ;;  %v216_v43 = vld [vmem:[#allocation1 + $0x8] sm:$0xff] }
  0x14   :  { %v218_v44 = vld [vmem:[#allocation1 + $0x10] sm:$0xff]  ;;  %215 = vst [vmem:[%s330_s1] sm:$0xff] %v214_v42  ;;  %217 = vst [vmem:[%s330_s1 + $0x8] sm:$0xff] %v216_v43 }
  0x15   :  { %219 = vst [vmem:[%s330_s1 + $0x10] sm:$0xff] %v218_v44  ;;  %v220_v45 = vld [vmem:[#allocation1 + $0x18] sm:$0xff]  ;;  %v222_v46 = vld [vmem:[#allocation1 + $0x20] sm:$0xff] }
  0x16   :  { %221 = vst [vmem:[%s330_s1 + $0x18] sm:$0xff] %v220_v45  ;;  %v224_v47 = vld [vmem:[#allocation1 + $0x28] sm:$0xff]  ;;  %223 = vst [vmem:[%s330_s1 + $0x20] sm:$0xff] %v222_v46 }
  0x17   :  { %225 = vst [vmem:[%s330_s1 + $0x28] sm:$0xff] %v224_v47  ;;  %v226_v48 = vld [vmem:[#allocation1 + $0x30] sm:$0xff]  ;;  %v228_v49 = vld [vmem:[#allocation1 + $0x38] sm:$0xff] }
  0x18   :  { %227 = vst [vmem:[%s330_s1 + $0x30] sm:$0xff] %v226_v48  ;;  %229 = vst [vmem:[%s330_s1 + $0x38] sm:$0xff] %v228_v49 }

// kernel: ffc_forward.7
= control target key start
LH: loop header
LB: loop body
LE: loop exit
PB: predicated region body
PF: predicated region fallthrough
CT: control target
= control target key end

     0   :  { %s691_s18 = smov 0   ;;  %s693_s19 = smov 0   ;;  %s741_s0 = inlined_call_operand.vmem [shape: bf16[8,4], index: 0, kind: input, shape index: {}]   ;;  %s742_s1 = inlined_call_operand.vmem [shape: bf16[2,8,256], index: 1, kind: input, shape index: {}]   ;;  %s743_s2 = inlined_call_operand.vmem [shape: bf16[2,4,256], index: 2, kind: input, shape index: {}]   ;;  %s744_s3 = inlined_call_operand.vmem [shape: bf16[2,4,256], index: 3, kind: input, shape index: {}]   ;;  %s745_s4 = inlined_call_operand.vmem [shape: bf16[2,4,256], index: 4, kind: input, shape index: {}]   ;;  %s746_s5 = inlined_call_operand.vmem [shape: f32[2,8,256], index: 5, kind: output, shape index: {}]  }
   0x1   :  { %s695_s20 = smov 0  }
   0x2 LB: > { %s27_s21 = sadd.s32 1, %s654_s19  ;;  %p591_p0 = scmp.ge.s32.totalorder %s658_s20, 1  ;;  %s658_s20 = sphi %s695_s20, %s15_s20   ;;  %s654_s19 = sphi %s693_s19, %s748_s19   ;;  %s650_s18 = sphi %s691_s18, %s747_s18  }
   0x3   : > { %p29_p1 = scmp.ge.s32.totalorder %s27_s21, 2  ;;  %p259_p2 = scmp.lt.s32.totalorder %s658_s20, 3 }
   0x5   : > { %s750_s21 = smov (%p29_p1, %s27_s21), 0  ;;  %p260_p3 = pnand %p591_p0, %p259_p2 }
   0x6   : > { %p323_p4 = scmp.lt.s32.totalorder (!%p260_p3), %s650_s18, 1  ;;  %v660_v0 = vmov (!%p260_p3), 0   ;;  %vm394_vm0 = vcmask (!%p260_p3), 1041408   ;;  %v384_v13 = vld [vmem:[%s741_s0] sm:$0xf] (!%p260_p3)  ;;  %vm390_vm1 = vcmask (!%p260_p3), 31744  }
   0x7   : > { %263 = sbr.rel (%p260_p3) target bundleno = 249 (0xf9), region = 40  ;;  %433 = vmatprep.mubr.bf16.mxu0 (!%p260_p3), %v660_v0 }
   0xe   : > { %s752_s18 = smov (!%p323_p4, %s650_s18), 1 }
   0xf   : > { %s607_s22 = sshll.u32 %s752_s18, 2  ;;  %s606_s9 = sshll.u32 %s752_s18, 3 }
  0x10   : > { %s340_s25 = scalar_lea.vmem %s743_s2, %s607_s22  ;;  %s350_s28 = scalar_lea.vmem %s744_s3, %s607_s22 }
  0x11   : > { %s360_s6 = scalar_lea.vmem %s745_s4, %s607_s22  ;;  %v373_v1 = vld [vmem:[%s340_s25] sm:$0xf]  ;;  %s330_s12 = scalar_lea.vmem %s742_s1, %s606_s9 }
  0x12   : > { %v375_v2 = vld [vmem:[%s350_s28] sm:$0xf]  ;;  %v374_v3 = vunpack.c.l.bf16 %v373_v1  ;;  %s610_s13 = sshll.u32 %s752_s18, 4 }
  0x13   : > { %v376_v4 = vunpack.c.l.bf16 %v375_v2  ;;  %v378_v5 = vld [vmem:[%s360_s6] sm:$0xf]  ;;  %s370_s16 = scalar_lea.vmem %s746_s5, %s610_s13 }
  0x14   : > { %v379_v6 = vunpack.c.l.bf16 %v378_v5  ;;  %v381_v14 = vld [vmem:[%s330_s12] sm:$0xff] }
  0x15   : > { %v377_v7 = vadd.f32 %v376_v4, %v374_v3  ;;  %v382_v15 = vunpack.c.l.bf16 %v381_v14  ;;  %v383_v16 = vunpack.c.h.bf16 %v381_v14 }
  0x17   : > { %v380_v8 = vadd.f32 %v379_v6, %v377_v7 }
  0x19   : > { %v386_v9 = vcombine.high %v380_v8, %v380_v8  ;;  %v388_v10 = vpack.c.bf16 %v380_v8, %v380_v8 }
  0x1b   : > { %v389_v11 = vpack.c.bf16 %v386_v9, %v386_v9  ;;  %v396_v12 = vsel %vm394_vm0, %v388_v10, 0 }
  0x1d   : > { %602 = vmatprep.subr.msk.bf16.mxu0 %vm394_vm0, %v389_v11 }
  0x1e   : > { %402 = vmatpush1.bf16.msra.mxu0 %v396_v12 }
  0x21   : > { %603 = vmatmul.mubr.msk.bf16.vlgmr.msra.gmra.mrb[0].mxu0 %vm390_vm1, %v384_v13 }
  0xf4   : > { %v435_v17 = vpop.f32.mrb[0].mxu0 }
  0xf5   : > { %v442_v18 = vadd.f32 %v435_v17, %v382_v15  ;;  %v437_v19 = vpop.f32.mrb[1].mxu0 }
  0xf6   : > { %v443_v20 = vadd.f32 %v437_v19, %v383_v16  ;;  %v439_v21 = vpop.f32.mrb[2].mxu0 }
  0xf7   : > { %444 = vst [vmem:[%s370_s16] sm:$0xff] %v442_v18  ;;  %v440_v22 = vpop.f32.mrb[3].mxu0 }
  0xf8   : > { %445 = vst [vmem:[%s370_s16 + $0x8] sm:$0xff] %v443_v20 }
  0xf9 PF: > { %s15_s20 = sadd.s32 1, %s658_s20   ;;  %s747_s18 = smov %s654_s19 }
  0xfa   : > { %p12_p5 = scmp.ge.s32.totalorder %s15_s20, 4   ;;  %s748_s19 = smov %s750_s21 }
  0xfc   :  { %14 = sbr.rel (!%p12_p5) target bundleno = 2 (0x2), region = 79 }

</bundles_post_ra>
